<compile_context>
chip_gen: v6e
topology: v6e:2x2x1
jax: 0.10.0
libtpu: 0.0.40
codegen_flags: <defaults>
</compile_context>

<pallas_src>
import functools
import math

import jax
import jax.numpy as jnp
import numpy as np
from jax import lax
from jax.experimental import pallas as pl
from jax.experimental.pallas import tpu as pltpu

BN_EPS = 1e-5
BN_SCALE = 1.0 / math.sqrt(1.0 + BN_EPS)   # eval-mode BatchNorm, default stats
MATMUL_DTYPE = jnp.bfloat16                # MXU operand dtype (f32 accumulate)


def _round_up(x, m):
    return (x + m - 1) // m * m


def _num_tensorcores():
    """TensorCores per device: 2 on v7x (and v4/v5p megacore), else 1."""
    try:
        kind = jax.devices()[0].device_kind.lower()
    except Exception:
        return 1
    if any(t in kind for t in ("v7", "7x", "v4", "v5p")):
        return 2
    return 1


def _m_tiling(M, tm_max):
    """Return (tm, padded_M, n_blocks) for the batch/M grid axis.

    Single-TC chips (v5e/v6e): fewest blocks that respect tm_max (no even
    bump).  Multi-TC chips (v7x): block count is a multiple of the TC count
    and real rows are split evenly, so the "parallel" axis actually balances.
    """
    if M <= tm_max:
        return M, M, 1
    cores = _num_tensorcores()
    n_blocks = cores * pl.cdiv(M, cores * tm_max)
    tm = _round_up(pl.cdiv(M, n_blocks), 16)
    return tm, tm * n_blocks, n_blocks


# ----------------------------- Pallas kernel ------------------------------ #

def _gated_stack_kernel(*refs, layer_meta):
    """Fused stack of gated matmul layers.

    refs = (x_ref, w0, b0, w1, b1, ..., o_ref).
    Each layer l: hg = act @ W_l + b_l   (f32 accumulation)
                  h  = hg[:, :n],  g = hg[:, g_off : g_off + n]  (g_off lane-aligned)
                  act = relu?( h * sigmoid(g) )   -> bf16 for the next matmul.
    """
    n_layers = len(layer_meta)
    x_ref = refs[0]
    o_ref = refs[-1]

    act = x_ref[...].astype(MATMUL_DTYPE)
    for l, (n, g_off, relu) in enumerate(layer_meta):
        w_ref = refs[1 + 2 * l]
        b_ref = refs[2 + 2 * l]
        hg = jnp.dot(act, w_ref[...],
                     preferred_element_type=jnp.float32) + b_ref[...]
        h = hg[:, :n]
        g = hg[:, g_off:g_off + n]
        # sigmoid via EUP exp + EUP approximate reciprocal (VALU stays free).
        out = h * pl.reciprocal(1.0 + jnp.exp(-g), approx=True)
        if relu:
            out = jnp.maximum(out, 0.0)
        if l + 1 < n_layers:
            act = out.astype(MATMUL_DTYPE)   # bf16 intermediate, stays in VMEM
        else:
            o_ref[...] = out.astype(o_ref.dtype)


def gated_stack(x, weights, meta, *, tm_max=512, single_buffer_weights=True):
    """Run the whole gated layer stack in one pallas_call.

    x: (M, K0) float32.  weights: tuple of (w_cat, b_cat) per layer, where
    w_cat is (K_l, g_off_l + n_l) bf16 laid out as [Wh | zeros | Wg] and
    b_cat is (1, g_off_l + n_l) float32.  meta: tuple of (n, g_off, relu).
    """
    M, K0 = x.shape
    n_last = meta[-1][0]

    tm, mp, n_blocks = _m_tiling(M, tm_max)
    if mp != M:                      # only when batch > tm_max (never here)
        x = jnp.pad(x, ((0, mp - M), (0, 0)))

    w_kwargs = {"pipeline_mode": pl.Buffered(1)} if single_buffer_weights else {}
    in_specs = [pl.BlockSpec((tm, K0), lambda i: (i, 0))]
    operands = [x]
    for w_cat, b_cat in weights:
        in_specs.append(pl.BlockSpec(w_cat.shape, lambda i: (0, 0), **w_kwargs))
        in_specs.append(pl.BlockSpec(b_cat.shape, lambda i: (0, 0), **w_kwargs))
        operands.extend((w_cat, b_cat))

    out = pl.pallas_call(
        functools.partial(_gated_stack_kernel, layer_meta=meta),
        out_shape=jax.ShapeDtypeStruct((mp, n_last), jnp.float32),
        grid_spec=pltpu.PrefetchScalarGridSpec(
            num_scalar_prefetch=0,
            grid=(n_blocks,),
            in_specs=in_specs,
            out_specs=pl.BlockSpec((tm, n_last), lambda i: (i, 0)),
        ),
        compiler_params=pltpu.CompilerParams(
            dimension_semantics=("parallel",)),
    )(*operands)
    return out if mp == M else out[:M]


# --------------------------- parameter handling ---------------------------- #

def init_params(key, *, in_channel, channels, n_layers, kernel,
                feat, hidden_size, n_mlp, out_size):
    """Deterministic init mimicking init_parameters(): uniform(-0.01, 0.01)."""
    def u(k, shape):
        return jax.random.uniform(k, shape, jnp.float32, -0.01, 0.01)

    keys = iter(jax.random.split(key, 4 * (n_layers + n_mlp)))
    params = {"conv": [], "mlp": []}
    for l in range(n_layers):
        in_s = in_channel if l == 0 else channels
        out_s = 1 if l == n_layers - 1 else channels
        params["conv"].append((
            u(next(keys), (out_s, in_s, kernel, kernel)),  # wh (PyTorch OIHW)
            u(next(keys), (out_s,)),                       # bh
            u(next(keys), (out_s, in_s, kernel, kernel)),  # wg
            u(next(keys), (out_s,)),                       # bg
        ))
    for l in range(n_mlp):
        in_s = feat if l == 0 else hidden_size
        out_s = out_size if l == n_mlp - 1 else hidden_size
        params["mlp"].append((
            u(next(keys), (out_s, in_s)),  # wh (PyTorch Linear: out, in)
            u(next(keys), (out_s,)),
            u(next(keys), (out_s, in_s)),  # wg
            u(next(keys), (out_s,)),
        ))
    return params


def _conv_as_dense(w_oihw, H, W, OH, OW, stride, pad, dil, input_order):
    """Exact dense lowering of a conv: (H*W*Cin, OH*OW*Cout) matrix.

    input_order 'chw' matches a flattened NCHW input (layer 0); 'hwc' matches
    the (oh, ow, co)-ordered output of the previous dense conv layer.
    Taps falling into the zero padding are dropped (== multiplying by 0).
    """
    w = np.asarray(w_oihw, np.float32)          # (Cout, Cin, k, k)
    Cout, Cin, k, _ = w.shape
    mat = np.zeros((H * W * Cin, OH * OW * Cout), np.float32)
    for oh in range(OH):
        for kh in range(k):
            h = oh * stride + kh * dil - pad
            if h < 0 or h >= H:
                continue
            for ow in range(OW):
                for kw in range(k):
                    wi = ow * stride + kw * dil - pad
                    if wi < 0 or wi >= W:
                        continue
                    c0 = (oh * OW + ow) * Cout
                    for ci in range(Cin):
                        if input_order == "chw":
                            r = (ci * H + h) * W + wi
                        else:
                            r = (h * W + wi) * Cin + ci
                        mat[r, c0:c0 + Cout] += w[:, ci, kh, kw]
    return mat


def _pack_gated(wh_mat, bh_vec, wg_mat, bg_vec, bn_scale):
    """Pack [Wh*s | 0 | Wg] with the gate block at a lane-aligned column."""
    K, n = wh_mat.shape
    g_off = _round_up(n, 128)            # lane-aligned h/g split (no relayout)
    w = np.zeros((K, g_off + n), np.float32)
    w[:, :n] = wh_mat * bn_scale
    w[:, g_off:] = wg_mat
    b = np.zeros((1, g_off + n), np.float32)
    b[0, :n] = bh_vec * bn_scale
    b[0, g_off:] = bg_vec
    return (jnp.asarray(w, dtype=MATMUL_DTYPE),
            jnp.asarray(b, dtype=jnp.float32),
            int(n), int(g_off))


def prepare_params(params, *, in_channel, in_hw, kernel, stride, dilation):
    """One-time prep: lower convs to dense gated matmuls, fold eval-mode BN,
    concat h|g (gate lane-aligned), cast weights to bf16."""
    weights, meta = [], []
    H, W = in_hw
    Cin = in_channel
    order = "chw"

    n_conv = len(params["conv"])
    for l, (wh, bh, wg, bg) in enumerate(params["conv"]):
        dil = (2 ** l) if dilation == 3 else dilation
        pad = 3 * (dil + 1)
        OH = (H + 2 * pad - dil * (kernel - 1) - 1) // stride + 1
        OW = (W + 2 * pad - dil * (kernel - 1) - 1) // stride + 1
        last = l == n_conv - 1
        scale = 1.0 if last else BN_SCALE
        wh_mat = _conv_as_dense(wh, H, W, OH, OW, stride, pad, dil, order)
        wg_mat = _conv_as_dense(wg, H, W, OH, OW, stride, pad, dil, order)
        bh_vec = np.tile(np.asarray(bh, np.float32), OH * OW)
        bg_vec = np.tile(np.asarray(bg, np.float32), OH * OW)
        w_cat, b_cat, n, g_off = _pack_gated(wh_mat, bh_vec, wg_mat, bg_vec, scale)
        weights.append((w_cat, b_cat))
        meta.append((n, g_off, not last))
        # Next layer consumes this layer's (oh, ow, co)-ordered output.
        H, W, Cin, order = OH, OW, wh.shape[0], "hwc"

    n_mlp = len(params["mlp"])
    for l, (wh, bh, wg, bg) in enumerate(params["mlp"]):
        last = l == n_mlp - 1
        scale = 1.0 if last else BN_SCALE
        w_cat, b_cat, n, g_off = _pack_gated(
            np.asarray(wh, np.float32).T, np.asarray(bh, np.float32),
            np.asarray(wg, np.float32).T, np.asarray(bg, np.float32), scale)
        weights.append((w_cat, b_cat))
        meta.append((n, g_off, not last))

    return tuple(weights), tuple(meta)


# -------------------------------- forward --------------------------------- #

def gated_cnn_forward(weights, x, *, meta, single_buffer_weights=True,
                      tm_max=512):
    """Pallas GatedCNN.forward (eval-mode BN / Dropout): one fused kernel."""
    # PyTorch: unsqueeze(1) for (B,H,W); flatten is NCHW order, which is
    # exactly the row order the layer-0 dense weights were built with, and the
    # last conv layer has Cout == 1 so the pre-MLP flatten also matches.
    x_flat = x.reshape(x.shape[0], -1)
    return gated_stack(x_flat, weights, meta, tm_max=tm_max,
                       single_buffer_weights=single_buffer_weights)


def reference_forward(params, x, *, kernel, stride, dilation):
    """Pure-JAX f32 reference (lax conv) for correctness checking."""
    if x.ndim < 4:
        x = x[:, None, :, :]
    n_layers = len(params["conv"])
    out = x
    for l in range(n_layers):
        dil = (2 ** l) if dilation == 3 else dilation
        pad = 3 * (dil + 1)
        wh, bh, wg, bg = params["conv"][l]

        def conv(z, w, b):
            y = lax.conv_general_dilated(
                z, w, window_strides=(stride, stride),
                padding=[(pad, pad), (pad, pad)],
                rhs_dilation=(dil, dil),
                dimension_numbers=("NCHW", "OIHW", "NCHW"))
            return y + b[None, :, None, None]

        y = conv(out, wh, bh) * jax.nn.sigmoid(conv(out, wg, bg))
        if l < n_layers - 1:
            y = jnp.maximum(y * BN_SCALE, 0.0)
        out = y
    out = out.reshape(x.shape[0], -1)
    n_mlp = len(params["mlp"])
    for l in range(n_mlp):
        wh, bh, wg, bg = params["mlp"][l]
        y = (out @ wh.T + bh) * jax.nn.sigmoid(out @ wg.T + bg)
        if l < n_mlp - 1:
            y = jnp.maximum(y * BN_SCALE, 0.0)
        out = y
    return out


# TODO(synk): training-mode Dropout2d/Dropout and BatchNorm running-stat
# updates are not implemented; eval-mode semantics (identity / fixed scale) are.

if __name__ == "__main__":
    # Small config: in_size=(16,16) -> in_channel=1, channels=4, n_layers=2,
    # hidden_size=32, n_mlp=2, out_size=8, args.kernel=3, args.dilation=1.
    B, H, W = 2, 16, 16
    kernel, stride, dilation = 3, 2, 1
    channels, n_layers = 4, 2
    hidden_size, n_mlp, out_size = 32, 2, 8

    # Spatial-size bookkeeping exactly as in GatedCNN.__init__
    size = [H, W]
    for l in range(n_layers):
        dil = (2 ** l) if dilation == 3 else dilation
        pad = 3 * (dil + 1)
        size[0] = int((size[0] + 2 * pad - (dil * (kernel - 1) + 1)) / stride + 1)
        size[1] = int((size[1] + 2 * pad - (dil * (kernel - 1) + 1)) / stride + 1)
    feat = size[0] * size[1]

    key = jax.random.PRNGKey(0)
    pkey, xkey = jax.random.split(key)
    params = init_params(pkey, in_channel=1, channels=channels,
                         n_layers=n_layers, kernel=kernel, feat=feat,
                         hidden_size=hidden_size, n_mlp=n_mlp,
                         out_size=out_size)
    x = jax.random.normal(xkey, (B, H, W), jnp.float32)

    # All weight prep (conv -> dense lowering, BN fold, h|g packing, bf16
    # cast) is hoisted out of the forward; the forward is a single jitted
    # pallas_call on a flattened input.
    weights, meta = prepare_params(params, in_channel=1, in_hw=(H, W),
                                   kernel=kernel, stride=stride,
                                   dilation=dilation)
    weights = jax.tree_util.tree_map(jax.block_until_ready, weights)

    def build_fwd(single_buffer):
        return jax.jit(functools.partial(
            gated_cnn_forward, meta=meta,
            single_buffer_weights=single_buffer))

    try:
        fwd = build_fwd(True)
        out = jax.block_until_ready(fwd(weights, x))
    except Exception:
        # Fallback if this jax build rejects single-buffered (Buffered(1))
        # grid-invariant operands; semantics are identical.
        fwd = build_fwd(False)
        out = jax.block_until_ready(fwd(weights, x))

    ref = reference_forward(params, x, kernel=kernel, stride=stride,
                            dilation=dilation)
    assert out.shape == (B, out_size), out.shape
    # bf16 matmul operands (f32 accumulation) + EUP approx reciprocal in the
    # gate -> compare with bf16-level tolerance.
    np.testing.assert_allclose(np.asarray(out), np.asarray(ref),
                               rtol=2e-2, atol=2e-4)
    print("KERNEL_OK")
</pallas_src>

<mosaic_0001>
module attributes {stable_mosaic.version = 11 : i64} {
  func.func @_gated_stack_kernel(%arg0: i32, %arg1: memref<2x256xf32, #tpu.memory_space<vmem>>, %arg2: memref<256x1444xbf16, #tpu.memory_space<vmem>>, %arg3: memref<1x1444xf32, #tpu.memory_space<vmem>>, %arg4: memref<676x400xbf16, #tpu.memory_space<vmem>>, %arg5: memref<1x400xf32, #tpu.memory_space<vmem>>, %arg6: memref<144x160xbf16, #tpu.memory_space<vmem>>, %arg7: memref<1x160xf32, #tpu.memory_space<vmem>>, %arg8: memref<32x136xbf16, #tpu.memory_space<vmem>>, %arg9: memref<1x136xf32, #tpu.memory_space<vmem>>, %arg10: memref<2x8xf32, #tpu.memory_space<vmem>>) attributes {dimension_semantics = [#tpu.dimension_semantics<parallel>], iteration_bounds = array<i64: 1>, scalar_prefetch = 0 : i64, scratch_operands = 0 : i64, tpu.core_type = #tpu.core_type<tc>, window_params = [{transform_indices = @transform_0, window_bounds = array<i64: 2, 256>}, {pipeline_mode = #tpu.pipeline_mode<synchronous>, transform_indices = @transform_1, window_bounds = array<i64: 256, 1444>}, {pipeline_mode = #tpu.pipeline_mode<synchronous>, transform_indices = @transform_2, window_bounds = array<i64: 1, 1444>}, {pipeline_mode = #tpu.pipeline_mode<synchronous>, transform_indices = @transform_3, window_bounds = array<i64: 676, 400>}, {pipeline_mode = #tpu.pipeline_mode<synchronous>, transform_indices = @transform_4, window_bounds = array<i64: 1, 400>}, {pipeline_mode = #tpu.pipeline_mode<synchronous>, transform_indices = @transform_5, window_bounds = array<i64: 144, 160>}, {pipeline_mode = #tpu.pipeline_mode<synchronous>, transform_indices = @transform_6, window_bounds = array<i64: 1, 160>}, {pipeline_mode = #tpu.pipeline_mode<synchronous>, transform_indices = @transform_7, window_bounds = array<i64: 32, 136>}, {pipeline_mode = #tpu.pipeline_mode<synchronous>, transform_indices = @transform_8, window_bounds = array<i64: 1, 136>}, {transform_indices = @transform_9, window_bounds = array<i64: 2, 8>}]} {
    %c0 = arith.constant 0 : index
    %c0_0 = arith.constant 0 : index
    %0 = vector.load %arg1[%c0, %c0_0] : memref<2x256xf32, #tpu.memory_space<vmem>>, vector<2x256xf32>
    %1 = arith.truncf %0 : vector<2x256xf32> to vector<2x256xbf16>
    %c0_1 = arith.constant 0 : index
    %c0_2 = arith.constant 0 : index
    %2 = vector.load %arg2[%c0_1, %c0_2] : memref<256x1444xbf16, #tpu.memory_space<vmem>>, vector<256x1444xbf16>
    %cst = arith.constant dense<0.000000e+00> : vector<2x1444xf32>
    %3 = tpu.matmul %1, %2, %cst {dimension_numbers = #tpu.dot_dimension_numbers<[1], [0], [0], [1], [0, 0, 1, 1], [], []>} : vector<2x256xbf16>, vector<256x1444xbf16>, vector<2x1444xf32> -> vector<2x1444xf32>
    %c0_3 = arith.constant 0 : index
    %c0_4 = arith.constant 0 : index
    %4 = vector.load %arg3[%c0_3, %c0_4] : memref<1x1444xf32, #tpu.memory_space<vmem>>, vector<1x1444xf32>
    %5 = vector.broadcast %4 : vector<1x1444xf32> to vector<2x1444xf32>
    %6 = arith.addf %3, %5 : vector<2x1444xf32>
    %7 = vector.extract_strided_slice %6 {offsets = [0, 0], sizes = [2, 676], strides = [1, 1]} : vector<2x1444xf32> to vector<2x676xf32>
    %8 = vector.extract_strided_slice %6 {offsets = [0, 768], sizes = [2, 676], strides = [1, 1]} : vector<2x1444xf32> to vector<2x676xf32>
    %cst_5 = arith.constant 0.000000e+00 : f32
    %9 = vector.broadcast %cst_5 : f32 to vector<2x676xf32>
    %10 = arith.subf %9, %8 : vector<2x676xf32>
    %11 = math.exp %10 : vector<2x676xf32>
    %cst_6 = arith.constant 1.000000e+00 : f32
    %12 = vector.broadcast %cst_6 : f32 to vector<2x676xf32>
    %13 = arith.addf %12, %11 : vector<2x676xf32>
    %14 = tpu.reciprocal %13 {approx = true} : vector<2x676xf32> -> vector<2x676xf32>
    %15 = arith.mulf %7, %14 : vector<2x676xf32>
    %cst_7 = arith.constant 0.000000e+00 : f32
    %16 = vector.broadcast %cst_7 : f32 to vector<2x676xf32>
    %17 = arith.maximumf %15, %16 : vector<2x676xf32>
    %18 = arith.truncf %17 : vector<2x676xf32> to vector<2x676xbf16>
    %c0_8 = arith.constant 0 : index
    %c0_9 = arith.constant 0 : index
    %19 = vector.load %arg4[%c0_8, %c0_9] : memref<676x400xbf16, #tpu.memory_space<vmem>>, vector<676x400xbf16>
    %cst_10 = arith.constant dense<0.000000e+00> : vector<2x400xf32>
    %20 = tpu.matmul %18, %19, %cst_10 {dimension_numbers = #tpu.dot_dimension_numbers<[1], [0], [0], [1], [0, 0, 1, 1], [], []>} : vector<2x676xbf16>, vector<676x400xbf16>, vector<2x400xf32> -> vector<2x400xf32>
    %c0_11 = arith.constant 0 : index
    %c0_12 = arith.constant 0 : index
    %21 = vector.load %arg5[%c0_11, %c0_12] : memref<1x400xf32, #tpu.memory_space<vmem>>, vector<1x400xf32>
    %22 = vector.broadcast %21 : vector<1x400xf32> to vector<2x400xf32>
    %23 = arith.addf %20, %22 : vector<2x400xf32>
    %24 = vector.extract_strided_slice %23 {offsets = [0, 0], sizes = [2, 144], strides = [1, 1]} : vector<2x400xf32> to vector<2x144xf32>
    %25 = vector.extract_strided_slice %23 {offsets = [0, 256], sizes = [2, 144], strides = [1, 1]} : vector<2x400xf32> to vector<2x144xf32>
    %cst_13 = arith.constant 0.000000e+00 : f32
    %26 = vector.broadcast %cst_13 : f32 to vector<2x144xf32>
    %27 = arith.subf %26, %25 : vector<2x144xf32>
    %28 = math.exp %27 : vector<2x144xf32>
    %cst_14 = arith.constant 1.000000e+00 : f32
    %29 = vector.broadcast %cst_14 : f32 to vector<2x144xf32>
    %30 = arith.addf %29, %28 : vector<2x144xf32>
    %31 = tpu.reciprocal %30 {approx = true} : vector<2x144xf32> -> vector<2x144xf32>
    %32 = arith.mulf %24, %31 : vector<2x144xf32>
    %33 = arith.truncf %32 : vector<2x144xf32> to vector<2x144xbf16>
    %c0_15 = arith.constant 0 : index
    %c0_16 = arith.constant 0 : index
    %34 = vector.load %arg6[%c0_15, %c0_16] : memref<144x160xbf16, #tpu.memory_space<vmem>>, vector<144x160xbf16>
    %cst_17 = arith.constant dense<0.000000e+00> : vector<2x160xf32>
    %35 = tpu.matmul %33, %34, %cst_17 {dimension_numbers = #tpu.dot_dimension_numbers<[1], [0], [0], [1], [0, 0, 1, 1], [], []>} : vector<2x144xbf16>, vector<144x160xbf16>, vector<2x160xf32> -> vector<2x160xf32>
    %c0_18 = arith.constant 0 : index
    %c0_19 = arith.constant 0 : index
    %36 = vector.load %arg7[%c0_18, %c0_19] : memref<1x160xf32, #tpu.memory_space<vmem>>, vector<1x160xf32>
    %37 = vector.broadcast %36 : vector<1x160xf32> to vector<2x160xf32>
    %38 = arith.addf %35, %37 : vector<2x160xf32>
    %39 = vector.extract_strided_slice %38 {offsets = [0, 0], sizes = [2, 32], strides = [1, 1]} : vector<2x160xf32> to vector<2x32xf32>
    %40 = vector.extract_strided_slice %38 {offsets = [0, 128], sizes = [2, 32], strides = [1, 1]} : vector<2x160xf32> to vector<2x32xf32>
    %cst_20 = arith.constant 0.000000e+00 : f32
    %41 = vector.broadcast %cst_20 : f32 to vector<2x32xf32>
    %42 = arith.subf %41, %40 : vector<2x32xf32>
    %43 = math.exp %42 : vector<2x32xf32>
    %cst_21 = arith.constant 1.000000e+00 : f32
    %44 = vector.broadcast %cst_21 : f32 to vector<2x32xf32>
    %45 = arith.addf %44, %43 : vector<2x32xf32>
    %46 = tpu.reciprocal %45 {approx = true} : vector<2x32xf32> -> vector<2x32xf32>
    %47 = arith.mulf %39, %46 : vector<2x32xf32>
    %cst_22 = arith.constant 0.000000e+00 : f32
    %48 = vector.broadcast %cst_22 : f32 to vector<2x32xf32>
    %49 = arith.maximumf %47, %48 : vector<2x32xf32>
    %50 = arith.truncf %49 : vector<2x32xf32> to vector<2x32xbf16>
    %c0_23 = arith.constant 0 : index
    %c0_24 = arith.constant 0 : index
    %51 = vector.load %arg8[%c0_23, %c0_24] : memref<32x136xbf16, #tpu.memory_space<vmem>>, vector<32x136xbf16>
    %cst_25 = arith.constant dense<0.000000e+00> : vector<2x136xf32>
    %52 = tpu.matmul %50, %51, %cst_25 {dimension_numbers = #tpu.dot_dimension_numbers<[1], [0], [0], [1], [0, 0, 1, 1], [], []>} : vector<2x32xbf16>, vector<32x136xbf16>, vector<2x136xf32> -> vector<2x136xf32>
    %c0_26 = arith.constant 0 : index
    %c0_27 = arith.constant 0 : index
    %53 = vector.load %arg9[%c0_26, %c0_27] : memref<1x136xf32, #tpu.memory_space<vmem>>, vector<1x136xf32>
    %54 = vector.broadcast %53 : vector<1x136xf32> to vector<2x136xf32>
    %55 = arith.addf %52, %54 : vector<2x136xf32>
    %56 = vector.extract_strided_slice %55 {offsets = [0, 0], sizes = [2, 8], strides = [1, 1]} : vector<2x136xf32> to vector<2x8xf32>
    %57 = vector.extract_strided_slice %55 {offsets = [0, 128], sizes = [2, 8], strides = [1, 1]} : vector<2x136xf32> to vector<2x8xf32>
    %cst_28 = arith.constant 0.000000e+00 : f32
    %58 = vector.broadcast %cst_28 : f32 to vector<2x8xf32>
    %59 = arith.subf %58, %57 : vector<2x8xf32>
    %60 = math.exp %59 : vector<2x8xf32>
    %cst_29 = arith.constant 1.000000e+00 : f32
    %61 = vector.broadcast %cst_29 : f32 to vector<2x8xf32>
    %62 = arith.addf %61, %60 : vector<2x8xf32>
    %63 = tpu.reciprocal %62 {approx = true} : vector<2x8xf32> -> vector<2x8xf32>
    %64 = arith.mulf %56, %63 : vector<2x8xf32>
    %c0_30 = arith.constant 0 : index
    %c0_31 = arith.constant 0 : index
    %65 = vector.load %arg10[%c0_30, %c0_31] : memref<2x8xf32, #tpu.memory_space<vmem>>, vector<2x8xf32>
    tpu.vector_store %arg10[%c0_30, %c0_31], %64 {strides = array<i32>} : memref<2x8xf32, #tpu.memory_space<vmem>>, vector<2x8xf32>,
    return
  }
  func.func @transform_0(%arg0: i32) -> (i32, i32) {
    %c0_i32 = arith.constant 0 : i32
    %c0_i32_0 = arith.constant 0 : i32
    return %arg0, %c0_i32 : i32, i32
  }
  func.func @transform_1(%arg0: i32) -> (i32, i32) {
    %c0_i32 = arith.constant 0 : i32
    %c0_i32_0 = arith.constant 0 : i32
    %c0_i32_1 = arith.constant 0 : i32
    return %c0_i32, %c0_i32_0 : i32, i32
  }
  func.func @transform_2(%arg0: i32) -> (i32, i32) {
    %c0_i32 = arith.constant 0 : i32
    %c0_i32_0 = arith.constant 0 : i32
    %c0_i32_1 = arith.constant 0 : i32
    return %c0_i32, %c0_i32_0 : i32, i32
  }
  func.func @transform_3(%arg0: i32) -> (i32, i32) {
    %c0_i32 = arith.constant 0 : i32
    %c0_i32_0 = arith.constant 0 : i32
    %c0_i32_1 = arith.constant 0 : i32
    return %c0_i32, %c0_i32_0 : i32, i32
  }
  func.func @transform_4(%arg0: i32) -> (i32, i32) {
    %c0_i32 = arith.constant 0 : i32
    %c0_i32_0 = arith.constant 0 : i32
    %c0_i32_1 = arith.constant 0 : i32
    return %c0_i32, %c0_i32_0 : i32, i32
  }
  func.func @transform_5(%arg0: i32) -> (i32, i32) {
    %c0_i32 = arith.constant 0 : i32
    %c0_i32_0 = arith.constant 0 : i32
    %c0_i32_1 = arith.constant 0 : i32
    return %c0_i32, %c0_i32_0 : i32, i32
  }
  func.func @transform_6(%arg0: i32) -> (i32, i32) {
    %c0_i32 = arith.constant 0 : i32
    %c0_i32_0 = arith.constant 0 : i32
    %c0_i32_1 = arith.constant 0 : i32
    return %c0_i32, %c0_i32_0 : i32, i32
  }
  func.func @transform_7(%arg0: i32) -> (i32, i32) {
    %c0_i32 = arith.constant 0 : i32
    %c0_i32_0 = arith.constant 0 : i32
    %c0_i32_1 = arith.constant 0 : i32
    return %c0_i32, %c0_i32_0 : i32, i32
  }
  func.func @transform_8(%arg0: i32) -> (i32, i32) {
    %c0_i32 = arith.constant 0 : i32
    %c0_i32_0 = arith.constant 0 : i32
    %c0_i32_1 = arith.constant 0 : i32
    return %c0_i32, %c0_i32_0 : i32, i32
  }
  func.func @transform_9(%arg0: i32) -> (i32, i32) {
    %c0_i32 = arith.constant 0 : i32
    %c0_i32_0 = arith.constant 0 : i32
    return %arg0, %c0_i32 : i32, i32
  }
}

module attributes {stable_mosaic.version = 11 : i64} {
  func.func @_gated_stack_kernel(%arg0: i32, %arg1: memref<2x256xf32, #tpu.memory_space<vmem>>, %arg2: memref<256x1444xbf16, #tpu.memory_space<vmem>>, %arg3: memref<1x1444xf32, #tpu.memory_space<vmem>>, %arg4: memref<676x400xbf16, #tpu.memory_space<vmem>>, %arg5: memref<1x400xf32, #tpu.memory_space<vmem>>, %arg6: memref<144x160xbf16, #tpu.memory_space<vmem>>, %arg7: memref<1x160xf32, #tpu.memory_space<vmem>>, %arg8: memref<32x136xbf16, #tpu.memory_space<vmem>>, %arg9: memref<1x136xf32, #tpu.memory_space<vmem>>, %arg10: memref<2x8xf32, #tpu.memory_space<vmem>>) attributes {dimension_semantics = [#tpu.dimension_semantics<parallel>], iteration_bounds = array<i64: 1>, scalar_prefetch = 0 : i64, scratch_operands = 0 : i64, tpu.core_type = #tpu.core_type<tc>, window_params = [{transform_indices = @transform_0, window_bounds = array<i64: 2, 256>}, {pipeline_mode = #tpu.pipeline_mode<synchronous>, transform_indices = @transform_1, window_bounds = array<i64: 256, 1444>}, {pipeline_mode = #tpu.pipeline_mode<synchronous>, transform_indices = @transform_2, window_bounds = array<i64: 1, 1444>}, {pipeline_mode = #tpu.pipeline_mode<synchronous>, transform_indices = @transform_3, window_bounds = array<i64: 676, 400>}, {pipeline_mode = #tpu.pipeline_mode<synchronous>, transform_indices = @transform_4, window_bounds = array<i64: 1, 400>}, {pipeline_mode = #tpu.pipeline_mode<synchronous>, transform_indices = @transform_5, window_bounds = array<i64: 144, 160>}, {pipeline_mode = #tpu.pipeline_mode<synchronous>, transform_indices = @transform_6, window_bounds = array<i64: 1, 160>}, {pipeline_mode = #tpu.pipeline_mode<synchronous>, transform_indices = @transform_7, window_bounds = array<i64: 32, 136>}, {pipeline_mode = #tpu.pipeline_mode<synchronous>, transform_indices = @transform_8, window_bounds = array<i64: 1, 136>}, {transform_indices = @transform_9, window_bounds = array<i64: 2, 8>}]} {
    %c0 = arith.constant 0 : index
    %c0_0 = arith.constant 0 : index
    %0 = vector.load %arg1[%c0, %c0_0] : memref<2x256xf32, #tpu.memory_space<vmem>>, vector<2x256xf32>
    %1 = arith.truncf %0 : vector<2x256xf32> to vector<2x256xbf16>
    %c0_1 = arith.constant 0 : index
    %c0_2 = arith.constant 0 : index
    %2 = vector.load %arg2[%c0_1, %c0_2] : memref<256x1444xbf16, #tpu.memory_space<vmem>>, vector<256x1444xbf16>
    %cst = arith.constant dense<0.000000e+00> : vector<2x1444xf32>
    %3 = tpu.matmul %1, %2, %cst {dimension_numbers = #tpu.dot_dimension_numbers<[1], [0], [0], [1], [0, 0, 1, 1], [], []>} : vector<2x256xbf16>, vector<256x1444xbf16>, vector<2x1444xf32> -> vector<2x1444xf32>
    %c0_3 = arith.constant 0 : index
    %c0_4 = arith.constant 0 : index
    %4 = vector.load %arg3[%c0_3, %c0_4] : memref<1x1444xf32, #tpu.memory_space<vmem>>, vector<1x1444xf32>
    %5 = vector.broadcast %4 : vector<1x1444xf32> to vector<2x1444xf32>
    %6 = arith.addf %3, %5 : vector<2x1444xf32>
    %7 = vector.extract_strided_slice %6 {offsets = [0, 0], sizes = [2, 676], strides = [1, 1]} : vector<2x1444xf32> to vector<2x676xf32>
    %8 = vector.extract_strided_slice %6 {offsets = [0, 768], sizes = [2, 676], strides = [1, 1]} : vector<2x1444xf32> to vector<2x676xf32>
    %cst_5 = arith.constant 0.000000e+00 : f32
    %9 = vector.broadcast %cst_5 : f32 to vector<2x676xf32>
    %10 = arith.subf %9, %8 : vector<2x676xf32>
    %11 = math.exp %10 : vector<2x676xf32>
    %cst_6 = arith.constant 1.000000e+00 : f32
    %12 = vector.broadcast %cst_6 : f32 to vector<2x676xf32>
    %13 = arith.addf %12, %11 : vector<2x676xf32>
    %14 = tpu.reciprocal %13 {approx = true} : vector<2x676xf32> -> vector<2x676xf32>
    %15 = arith.mulf %7, %14 : vector<2x676xf32>
    %cst_7 = arith.constant 0.000000e+00 : f32
    %16 = vector.broadcast %cst_7 : f32 to vector<2x676xf32>
    %17 = arith.maximumf %15, %16 : vector<2x676xf32>
    %18 = arith.truncf %17 : vector<2x676xf32> to vector<2x676xbf16>
    %c0_8 = arith.constant 0 : index
    %c0_9 = arith.constant 0 : index
    %19 = vector.load %arg4[%c0_8, %c0_9] : memref<676x400xbf16, #tpu.memory_space<vmem>>, vector<676x400xbf16>
    %cst_10 = arith.constant dense<0.000000e+00> : vector<2x400xf32>
    %20 = tpu.matmul %18, %19, %cst_10 {dimension_numbers = #tpu.dot_dimension_numbers<[1], [0], [0], [1], [0, 0, 1, 1], [], []>} : vector<2x676xbf16>, vector<676x400xbf16>, vector<2x400xf32> -> vector<2x400xf32>
    %c0_11 = arith.constant 0 : index
    %c0_12 = arith.constant 0 : index
    %21 = vector.load %arg5[%c0_11, %c0_12] : memref<1x400xf32, #tpu.memory_space<vmem>>, vector<1x400xf32>
    %22 = vector.broadcast %21 : vector<1x400xf32> to vector<2x400xf32>
    %23 = arith.addf %20, %22 : vector<2x400xf32>
    %24 = vector.extract_strided_slice %23 {offsets = [0, 0], sizes = [2, 144], strides = [1, 1]} : vector<2x400xf32> to vector<2x144xf32>
    %25 = vector.extract_strided_slice %23 {offsets = [0, 256], sizes = [2, 144], strides = [1, 1]} : vector<2x400xf32> to vector<2x144xf32>
    %cst_13 = arith.constant 0.000000e+00 : f32
    %26 = vector.broadcast %cst_13 : f32 to vector<2x144xf32>
    %27 = arith.subf %26, %25 : vector<2x144xf32>
    %28 = math.exp %27 : vector<2x144xf32>
    %cst_14 = arith.constant 1.000000e+00 : f32
    %29 = vector.broadcast %cst_14 : f32 to vector<2x144xf32>
    %30 = arith.addf %29, %28 : vector<2x144xf32>
    %31 = tpu.reciprocal %30 {approx = true} : vector<2x144xf32> -> vector<2x144xf32>
    %32 = arith.mulf %24, %31 : vector<2x144xf32>
    %33 = arith.truncf %32 : vector<2x144xf32> to vector<2x144xbf16>
    %c0_15 = arith.constant 0 : index
    %c0_16 = arith.constant 0 : index
    %34 = vector.load %arg6[%c0_15, %c0_16] : memref<144x160xbf16, #tpu.memory_space<vmem>>, vector<144x160xbf16>
    %cst_17 = arith.constant dense<0.000000e+00> : vector<2x160xf32>
    %35 = tpu.matmul %33, %34, %cst_17 {dimension_numbers = #tpu.dot_dimension_numbers<[1], [0], [0], [1], [0, 0, 1, 1], [], []>} : vector<2x144xbf16>, vector<144x160xbf16>, vector<2x160xf32> -> vector<2x160xf32>
    %c0_18 = arith.constant 0 : index
    %c0_19 = arith.constant 0 : index
    %36 = vector.load %arg7[%c0_18, %c0_19] : memref<1x160xf32, #tpu.memory_space<vmem>>, vector<1x160xf32>
    %37 = vector.broadcast %36 : vector<1x160xf32> to vector<2x160xf32>
    %38 = arith.addf %35, %37 : vector<2x160xf32>
    %39 = vector.extract_strided_slice %38 {offsets = [0, 0], sizes = [2, 32], strides = [1, 1]} : vector<2x160xf32> to vector<2x32xf32>
    %40 = vector.extract_strided_slice %38 {offsets = [0, 128], sizes = [2, 32], strides = [1, 1]} : vector<2x160xf32> to vector<2x32xf32>
    %cst_20 = arith.constant 0.000000e+00 : f32
    %41 = vector.broadcast %cst_20 : f32 to vector<2x32xf32>
    %42 = arith.subf %41, %40 : vector<2x32xf32>
    %43 = math.exp %42 : vector<2x32xf32>
    %cst_21 = arith.constant 1.000000e+00 : f32
    %44 = vector.broadcast %cst_21 : f32 to vector<2x32xf32>
    %45 = arith.addf %44, %43 : vector<2x32xf32>
    %46 = tpu.reciprocal %45 {approx = true} : vector<2x32xf32> -> vector<2x32xf32>
    %47 = arith.mulf %39, %46 : vector<2x32xf32>
    %cst_22 = arith.constant 0.000000e+00 : f32
    %48 = vector.broadcast %cst_22 : f32 to vector<2x32xf32>
    %49 = arith.maximumf %47, %48 : vector<2x32xf32>
    %50 = arith.truncf %49 : vector<2x32xf32> to vector<2x32xbf16>
    %c0_23 = arith.constant 0 : index
    %c0_24 = arith.constant 0 : index
    %51 = vector.load %arg8[%c0_23, %c0_24] : memref<32x136xbf16, #tpu.memory_space<vmem>>, vector<32x136xbf16>
    %cst_25 = arith.constant dense<0.000000e+00> : vector<2x136xf32>
    %52 = tpu.matmul %50, %51, %cst_25 {dimension_numbers = #tpu.dot_dimension_numbers<[1], [0], [0], [1], [0, 0, 1, 1], [], []>} : vector<2x32xbf16>, vector<32x136xbf16>, vector<2x136xf32> -> vector<2x136xf32>
    %c0_26 = arith.constant 0 : index
    %c0_27 = arith.constant 0 : index
    %53 = vector.load %arg9[%c0_26, %c0_27] : memref<1x136xf32, #tpu.memory_space<vmem>>, vector<1x136xf32>
    %54 = vector.broadcast %53 : vector<1x136xf32> to vector<2x136xf32>
    %55 = arith.addf %52, %54 : vector<2x136xf32>
    %56 = vector.extract_strided_slice %55 {offsets = [0, 0], sizes = [2, 8], strides = [1, 1]} : vector<2x136xf32> to vector<2x8xf32>
    %57 = vector.extract_strided_slice %55 {offsets = [0, 128], sizes = [2, 8], strides = [1, 1]} : vector<2x136xf32> to vector<2x8xf32>
    %cst_28 = arith.constant 0.000000e+00 : f32
    %58 = vector.broadcast %cst_28 : f32 to vector<2x8xf32>
    %59 = arith.subf %58, %57 : vector<2x8xf32>
    %60 = math.exp %59 : vector<2x8xf32>
    %cst_29 = arith.constant 1.000000e+00 : f32
    %61 = vector.broadcast %cst_29 : f32 to vector<2x8xf32>
    %62 = arith.addf %61, %60 : vector<2x8xf32>
    %63 = tpu.reciprocal %62 {approx = true} : vector<2x8xf32> -> vector<2x8xf32>
    %64 = arith.mulf %56, %63 : vector<2x8xf32>
    %c0_30 = arith.constant 0 : index
    %c0_31 = arith.constant 0 : index
    %65 = vector.load %arg10[%c0_30, %c0_31] : memref<2x8xf32, #tpu.memory_space<vmem>>, vector<2x8xf32>
    tpu.vector_store %arg10[%c0_30, %c0_31], %64 {strides = array<i32>} : memref<2x8xf32, #tpu.memory_space<vmem>>, vector<2x8xf32>,
    return
  }
  func.func @transform_0(%arg0: i32) -> (i32, i32) {
    %c0_i32 = arith.constant 0 : i32
    %c0_i32_0 = arith.constant 0 : i32
    return %arg0, %c0_i32 : i32, i32
  }
  func.func @transform_1(%arg0: i32) -> (i32, i32) {
    %c0_i32 = arith.constant 0 : i32
    %c0_i32_0 = arith.constant 0 : i32
    %c0_i32_1 = arith.constant 0 : i32
    return %c0_i32, %c0_i32_0 : i32, i32
  }
  func.func @transform_2(%arg0: i32) -> (i32, i32) {
    %c0_i32 = arith.constant 0 : i32
    %c0_i32_0 = arith.constant 0 : i32
    %c0_i32_1 = arith.constant 0 : i32
    return %c0_i32, %c0_i32_0 : i32, i32
  }
  func.func @transform_3(%arg0: i32) -> (i32, i32) {
    %c0_i32 = arith.constant 0 : i32
    %c0_i32_0 = arith.constant 0 : i32
    %c0_i32_1 = arith.constant 0 : i32
    return %c0_i32, %c0_i32_0 : i32, i32
  }
  func.func @transform_4(%arg0: i32) -> (i32, i32) {
    %c0_i32 = arith.constant 0 : i32
    %c0_i32_0 = arith.constant 0 : i32
    %c0_i32_1 = arith.constant 0 : i32
    return %c0_i32, %c0_i32_0 : i32, i32
  }
  func.func @transform_5(%arg0: i32) -> (i32, i32) {
    %c0_i32 = arith.constant 0 : i32
    %c0_i32_0 = arith.constant 0 : i32
    %c0_i32_1 = arith.constant 0 : i32
    return %c0_i32, %c0_i32_0 : i32, i32
  }
  func.func @transform_6(%arg0: i32) -> (i32, i32) {
    %c0_i32 = arith.constant 0 : i32
    %c0_i32_0 = arith.constant 0 : i32
    %c0_i32_1 = arith.constant 0 : i32
    return %c0_i32, %c0_i32_0 : i32, i32
  }
  func.func @transform_7(%arg0: i32) -> (i32, i32) {
    %c0_i32 = arith.constant 0 : i32
    %c0_i32_0 = arith.constant 0 : i32
    %c0_i32_1 = arith.constant 0 : i32
    return %c0_i32, %c0_i32_0 : i32, i32
  }
  func.func @transform_8(%arg0: i32) -> (i32, i32) {
    %c0_i32 = arith.constant 0 : i32
    %c0_i32_0 = arith.constant 0 : i32
    %c0_i32_1 = arith.constant 0 : i32
    return %c0_i32, %c0_i32_0 : i32, i32
  }
  func.func @transform_9(%arg0: i32) -> (i32, i32) {
    %c0_i32 = arith.constant 0 : i32
    %c0_i32_0 = arith.constant 0 : i32
    return %arg0, %c0_i32 : i32, i32
  }
}

</mosaic_0001>

<bundles_post_ra>
// kernel: gated_cnn_forward.1
= control target key start
LH: loop header
LB: loop body
LE: loop exit
PB: predicated region body
PF: predicated region fallthrough
CT: control target
= control target key end

     0   :  { %s5516_s0 = inlined_call_operand.vmem [shape: f32[2,256], index: 0, kind: input, shape index: {}]   ;;  %s5517_s1 = inlined_call_operand.vmem [shape: bf16[256,1444], index: 1, kind: input, shape index: {}]   ;;  %s5518_s2 = inlined_call_operand.vmem [shape: f32[1,1444], index: 2, kind: input, shape index: {}]   ;;  %s5519_s3 = inlined_call_operand.vmem [shape: bf16[676,400], index: 3, kind: input, shape index: {}]   ;;  %s5520_s4 = inlined_call_operand.vmem [shape: f32[1,400], index: 4, kind: input, shape index: {}]   ;;  %s5521_s5 = inlined_call_operand.vmem [shape: bf16[144,160], index: 5, kind: input, shape index: {}]   ;;  %s5522_s6 = inlined_call_operand.vmem [shape: f32[1,160], index: 6, kind: input, shape index: {}]   ;;  %s5523_s7 = inlined_call_operand.vmem [shape: bf16[32,136], index: 7, kind: input, shape index: {}]   ;;  %s5524_s8 = inlined_call_operand.vmem [shape: f32[1,136], index: 8, kind: input, shape index: {}]   ;;  %s5525_s9 = inlined_call_operand.hbm [shape: f32[2,8], index: 9, kind: output, shape index: {}]  }
   0x1   :  { %v3548_v0 = vld [vmem:[%s5517_s1 + $0x2a4] ss:$48 sps:$4 sm:$0xff]   ;;  %v3550_v1 = vld [vmem:[%s5517_s1 + $0x2ac] ss:$48 sps:$4 sm:$0xff]   ;;  %v3552_v2 = vld [vmem:[%s5517_s1 + $0x2a0] ss:$48 sps:$4 sm:$0xff]  }
   0x2   :  { %1264 = vmatprep.subr.bf16.mxu0 %v3548_v0  ;;  %v3553_v3 = vld [vmem:[%s5517_s1 + $0x2a8] ss:$48 sps:$4 sm:$0xff]   ;;  %1305 = vmatprep.subr.bf16.mxu1 %v3550_v1  ;;  %v3554_v4 = vld [vmem:[%s5517_s1 + $0x244] ss:$48 sps:$4 sm:$0xff]   ;;  %v3556_v5 = vld [vmem:[%s5517_s1 + $0x24c] ss:$48 sps:$4 sm:$0xff]  }
   0x3   :  { %1265 = vmatpush1.bf16.msra.mxu0 %v3552_v2  ;;  %1306 = vmatpush1.bf16.msra.mxu1 %v3553_v3  ;;  %v3558_v6 = vld [vmem:[%s5517_s1 + $0x240] ss:$48 sps:$4 sm:$0xff]   ;;  %v3559_v7 = vld [vmem:[%s5517_s1 + $0x248] ss:$48 sps:$4 sm:$0xff]   ;;  %v3560_v8 = vld [vmem:[%s5517_s1 + $0x1e4] ss:$48 sps:$4 sm:$0xff]  }
   0x4   :  { %1266 = vmatprep.subr.bf16.mxu0 %v3554_v4  ;;  %1307 = vmatprep.subr.bf16.mxu1 %v3556_v5  ;;  %v3562_v9 = vld [vmem:[%s5517_s1 + $0x1ec] ss:$48 sps:$4 sm:$0xff]   ;;  %v3564_v10 = vld [vmem:[%s5517_s1 + $0x1e0] ss:$48 sps:$4 sm:$0xff]   ;;  %v3565_v11 = vld [vmem:[%s5517_s1 + $0x1e8] ss:$48 sps:$4 sm:$0xff]  }
   0x5   :  { %v3566_v12 = vld [vmem:[%s5517_s1 + $0x184] ss:$48 sps:$4 sm:$0xff]   ;;  %v3568_v13 = vld [vmem:[%s5517_s1 + $0x18c] ss:$48 sps:$4 sm:$0xff]   ;;  %v3570_v14 = vld [vmem:[%s5517_s1 + $0x180] ss:$48 sps:$4 sm:$0xff]  }
   0x6   :  { %v3571_v15 = vld [vmem:[%s5517_s1 + $0x188] ss:$48 sps:$4 sm:$0xff]   ;;  %v3572_v16 = vld [vmem:[%s5517_s1 + $0x124] ss:$48 sps:$4 sm:$0xff]   ;;  %v3574_v17 = vld [vmem:[%s5517_s1 + $0x12c] ss:$48 sps:$4 sm:$0xff]  }
   0x7   :  { %1267 = vmatpush1.bf16.msra.mxu0 %v3558_v6  ;;  %1308 = vmatpush1.bf16.msra.mxu1 %v3559_v7  ;;  %v3576_v18 = vld [vmem:[%s5517_s1 + $0x120] ss:$48 sps:$4 sm:$0xff]   ;;  %v3577_v19 = vld [vmem:[%s5517_s1 + $0x128] ss:$48 sps:$4 sm:$0xff]   ;;  %v3578_v20 = vld [vmem:[%s5517_s1 + $0xc4] ss:$48 sps:$4 sm:$0xff]  }
   0x8   :  { %1268 = vmatprep.subr.bf16.mxu0 %v3560_v8  ;;  %1309 = vmatprep.subr.bf16.mxu1 %v3562_v9  ;;  %v3580_v21 = vld [vmem:[%s5517_s1 + $0xcc] ss:$48 sps:$4 sm:$0xff]   ;;  %v3582_v22 = vld [vmem:[%s5517_s1 + $0xc0] ss:$48 sps:$4 sm:$0xff]   ;;  %v3583_v23 = vld [vmem:[%s5517_s1 + $0xc8] ss:$48 sps:$4 sm:$0xff]  }
   0x9   :  { %v3584_v24 = vld [vmem:[%s5517_s1 + $0x64] ss:$48 sps:$4 sm:$0xff]   ;;  %v3586_v25 = vld [vmem:[%s5517_s1 + $0x6c] ss:$48 sps:$4 sm:$0xff]   ;;  %v3588_v26 = vld [vmem:[%s5517_s1 + $0x60] ss:$48 sps:$4 sm:$0xff]  }
   0xa   :  { %v3589_v27 = vld [vmem:[%s5517_s1 + $0x68] ss:$48 sps:$4 sm:$0xff]   ;;  %v3590_v28 = vld [vmem:[%s5517_s1 + $0x4] ss:$48 sps:$4 sm:$0xff]   ;;  %v3592_v29 = vld [vmem:[%s5517_s1 + $0xc] ss:$48 sps:$4 sm:$0xff]  }
   0xb   :  { %1269 = vmatpush1.bf16.msra.mxu0 %v3564_v10  ;;  %1310 = vmatpush1.bf16.msra.mxu1 %v3565_v11  ;;  %v3594_v30 = vld [vmem:[%s5517_s1] ss:$48 sps:$4 sm:$0xff]   ;;  %v3595_v31 = vld [vmem:[%s5517_s1 + $0x8] ss:$48 sps:$4 sm:$0xff]   ;;  %v3596_v32 = vld [vmem:[%s5517_s1 + $0x5a4] ss:$48 sps:$4 sm:$0xff]  }
   0xc   :  { %1270 = vmatprep.subr.bf16.mxu0 %v3566_v12  ;;  %1311 = vmatprep.subr.bf16.mxu1 %v3568_v13  ;;  %v3598_v33 = vld [vmem:[%s5517_s1 + $0x5ac] ss:$48 sps:$4 sm:$0xff]   ;;  %v3600_v34 = vld [vmem:[%s5517_s1 + $0x5a0] ss:$48 sps:$4 sm:$0xff]   ;;  %v3601_v35 = vld [vmem:[%s5517_s1 + $0x5a8] ss:$48 sps:$4 sm:$0xff]  }
   0xd   :  { %v3602_v36 = vld [vmem:[%s5517_s1 + $0x544] ss:$48 sps:$4 sm:$0xff]   ;;  %v3604_v37 = vld [vmem:[%s5517_s1 + $0x54c] ss:$48 sps:$4 sm:$0xff]   ;;  %v3606_v38 = vld [vmem:[%s5517_s1 + $0x540] ss:$48 sps:$4 sm:$0xff]  }
   0xe   :  { %v3607_v39 = vld [vmem:[%s5517_s1 + $0x548] ss:$48 sps:$4 sm:$0xff]   ;;  %v3608_v40 = vld [vmem:[%s5517_s1 + $0x4e4] ss:$48 sps:$4 sm:$0xff]   ;;  %v3610_v41 = vld [vmem:[%s5517_s1 + $0x4ec] ss:$48 sps:$4 sm:$0xff]  }
   0xf   :  { %1271 = vmatpush1.bf16.msra.mxu0 %v3570_v14  ;;  %1312 = vmatpush1.bf16.msra.mxu1 %v3571_v15  ;;  %v3612_v42 = vld [vmem:[%s5517_s1 + $0x4e0] ss:$48 sps:$4 sm:$0xff]   ;;  %v3613_v43 = vld [vmem:[%s5517_s1 + $0x4e8] ss:$48 sps:$4 sm:$0xff]   ;;  %v3614_v44 = vld [vmem:[%s5517_s1 + $0x484] ss:$48 sps:$4 sm:$0xff]  }
  0x10   :  { %1272 = vmatprep.subr.bf16.mxu0 %v3572_v16  ;;  %1313 = vmatprep.subr.bf16.mxu1 %v3574_v17  ;;  %v3616_v45 = vld [vmem:[%s5517_s1 + $0x48c] ss:$48 sps:$4 sm:$0xff]   ;;  %v3153_v46 = vld.sshfl [vmem:[%s5516_s0] sm:$0x33 pattern:$0x76325410] }
  0x11   :  { %v3618_v47 = vld [vmem:[%s5517_s1 + $0x480] ss:$48 sps:$4 sm:$0xff]   ;;  %v3619_v48 = vld [vmem:[%s5517_s1 + $0x488] ss:$48 sps:$4 sm:$0xff]   ;;  %v43_v49 = vcombine.high %v3153_v46, %v3153_v46  ;;  %v3620_v50 = vld [vmem:[%s5517_s1 + $0x424] ss:$48 sps:$4 sm:$0xff]   ;;  %v4444_v5 = vpack.c.bf16 %v3153_v46, %v3153_v46 }
  0x12   :  { %v3622_v51 = vld [vmem:[%s5517_s1 + $0x42c] ss:$48 sps:$4 sm:$0xff]   ;;  %v3624_v53 = vld [vmem:[%s5517_s1 + $0x420] ss:$48 sps:$4 sm:$0xff]   ;;  %v3625_v54 = vld [vmem:[%s5517_s1 + $0x428] ss:$48 sps:$4 sm:$0xff]  }
  0x13   :  { %1273 = vmatpush1.bf16.msra.mxu0 %v3576_v18  ;;  %1314 = vmatpush1.bf16.msra.mxu1 %v3577_v19  ;;  %v4392_v52 = vpack.c.bf16 %v43_v49, %v43_v49  ;;  %v3626_v55 = vld [vmem:[%s5517_s1 + $0x3c4] ss:$48 sps:$4 sm:$0xff]   ;;  %v3628_v56 = vld [vmem:[%s5517_s1 + $0x3cc] ss:$48 sps:$4 sm:$0xff]   ;;  %v3630_v57 = vld [vmem:[%s5517_s1 + $0x3c0] ss:$48 sps:$4 sm:$0xff]  }
  0x14   :  { %1274 = vmatprep.subr.bf16.mxu0 %v3578_v20  ;;  %1315 = vmatprep.subr.bf16.mxu1 %v3580_v21  ;;  %v3631_v58 = vld [vmem:[%s5517_s1 + $0x3c8] ss:$48 sps:$4 sm:$0xff]   ;;  %v3632_v59 = vld [vmem:[%s5517_s1 + $0x364] ss:$48 sps:$4 sm:$0xff]   ;;  %v3634_v60 = vld [vmem:[%s5517_s1 + $0x36c] ss:$48 sps:$4 sm:$0xff]  }
  0x15   :  { %1296 = vmatprep.mubr.bf16.mxu0 %v4392_v52  ;;  %1337 = vmatprep.mubr.bf16.mxu1 %v4392_v52  ;;  %v3636_v61 = vld [vmem:[%s5517_s1 + $0x360] ss:$48 sps:$4 sm:$0xff]   ;;  %v3637_v62 = vld [vmem:[%s5517_s1 + $0x368] ss:$48 sps:$4 sm:$0xff]   ;;  %v3638_v63 = vld [vmem:[%s5517_s1 + $0x304] ss:$48 sps:$4 sm:$0xff]  }
  0x16   :  { %v3640_v0 = vld [vmem:[%s5517_s1 + $0x30c] ss:$48 sps:$4 sm:$0xff]   ;;  %v3642_v1 = vld [vmem:[%s5517_s1 + $0x300] ss:$48 sps:$4 sm:$0xff]   ;;  %v3643_v2 = vld [vmem:[%s5517_s1 + $0x308] ss:$48 sps:$4 sm:$0xff]  }
  0x17   :  { %1275 = vmatpush1.bf16.msra.mxu0 %v3582_v22  ;;  %1316 = vmatpush1.bf16.msra.mxu1 %v3583_v23  ;;  %v3646_v3 = vld [vmem:[%s5517_s1 + $0x2b4] ss:$48 sps:$4 sm:$0xff]   ;;  %v3649_v4 = vld [vmem:[%s5517_s1 + $0x2bc] ss:$48 sps:$4 sm:$0xff]   ;;  %v3644_v6 = vld [vmem:[%s5517_s1 + $0x2b0] ss:$48 sps:$4 sm:$0xff]  }
  0x18   :  { %1276 = vmatprep.subr.bf16.mxu0 %v3584_v24  ;;  %1317 = vmatprep.subr.bf16.mxu1 %v3586_v25  ;;  %v3647_v7 = vld [vmem:[%s5517_s1 + $0x2b8] ss:$48 sps:$4 sm:$0xff]   ;;  %v3652_v8 = vld [vmem:[%s5517_s1 + $0x254] ss:$48 sps:$4 sm:$0xff]   ;;  %v3655_v9 = vld [vmem:[%s5517_s1 + $0x25c] ss:$48 sps:$4 sm:$0xff]  }
  0x19   :  { %v3650_v10 = vld [vmem:[%s5517_s1 + $0x250] ss:$48 sps:$4 sm:$0xff]   ;;  %v3653_v11 = vld [vmem:[%s5517_s1 + $0x258] ss:$48 sps:$4 sm:$0xff]   ;;  %v3658_v12 = vld [vmem:[%s5517_s1 + $0x1f4] ss:$48 sps:$4 sm:$0xff]  }
  0x1a   :  { %v3661_v13 = vld [vmem:[%s5517_s1 + $0x1fc] ss:$48 sps:$4 sm:$0xff]   ;;  %v3656_v14 = vld [vmem:[%s5517_s1 + $0x1f0] ss:$48 sps:$4 sm:$0xff]   ;;  %v3659_v15 = vld [vmem:[%s5517_s1 + $0x1f8] ss:$48 sps:$4 sm:$0xff]  }
  0x1b   :  { %1277 = vmatpush1.bf16.msra.mxu0 %v3588_v26  ;;  %1318 = vmatpush1.bf16.msra.mxu1 %v3589_v27  ;;  %v3664_v16 = vld [vmem:[%s5517_s1 + $0x194] ss:$48 sps:$4 sm:$0xff]   ;;  %v3667_v17 = vld [vmem:[%s5517_s1 + $0x19c] ss:$48 sps:$4 sm:$0xff]   ;;  %v3662_v18 = vld [vmem:[%s5517_s1 + $0x190] ss:$48 sps:$4 sm:$0xff]  }
  0x1c   :  { %1278 = vmatprep.subr.bf16.mxu0 %v3590_v28  ;;  %1319 = vmatprep.subr.bf16.mxu1 %v3592_v29  ;;  %v3665_v19 = vld [vmem:[%s5517_s1 + $0x198] ss:$48 sps:$4 sm:$0xff]   ;;  %v3670_v20 = vld [vmem:[%s5517_s1 + $0x134] ss:$48 sps:$4 sm:$0xff]   ;;  %v3673_v21 = vld [vmem:[%s5517_s1 + $0x13c] ss:$48 sps:$4 sm:$0xff]  }
  0x1d   :  { %v3668_v22 = vld [vmem:[%s5517_s1 + $0x130] ss:$48 sps:$4 sm:$0xff]   ;;  %v3671_v23 = vld [vmem:[%s5517_s1 + $0x138] ss:$48 sps:$4 sm:$0xff]   ;;  %v3676_v24 = vld [vmem:[%s5517_s1 + $0xd4] ss:$48 sps:$4 sm:$0xff]  }
  0x1e   :  { %v3679_v25 = vld [vmem:[%s5517_s1 + $0xdc] ss:$48 sps:$4 sm:$0xff]   ;;  %v3674_v26 = vld [vmem:[%s5517_s1 + $0xd0] ss:$48 sps:$4 sm:$0xff]   ;;  %v3677_v27 = vld [vmem:[%s5517_s1 + $0xd8] ss:$48 sps:$4 sm:$0xff]  }
  0x1f   :  { %1279 = vmatpush1.bf16.msra.mxu0 %v3594_v30  ;;  %1320 = vmatpush1.bf16.msra.mxu1 %v3595_v31  ;;  %v3682_v28 = vld [vmem:[%s5517_s1 + $0x74] ss:$48 sps:$4 sm:$0xff]   ;;  %v3685_v29 = vld [vmem:[%s5517_s1 + $0x7c] ss:$48 sps:$4 sm:$0xff]   ;;  %v3680_v30 = vld [vmem:[%s5517_s1 + $0x70] ss:$48 sps:$4 sm:$0xff]  }
  0x20   :  { %1280 = vmatprep.subr.bf16.mxu0 %v3596_v32  ;;  %1321 = vmatprep.subr.bf16.mxu1 %v3598_v33  ;;  %v3683_v31 = vld [vmem:[%s5517_s1 + $0x78] ss:$48 sps:$4 sm:$0xff]   ;;  %v3688_v32 = vld [vmem:[%s5517_s1 + $0x14] ss:$48 sps:$4 sm:$0xff]   ;;  %v3691_v33 = vld [vmem:[%s5517_s1 + $0x1c] ss:$48 sps:$4 sm:$0xff]  }
  0x21   :  { %v3704_v46 = vld [vmem:[%s5517_s1 + $0x4f0] ss:$48 sps:$4 sm:$0xff]   ;;  %v3715_v49 = vld [vmem:[%s5517_s1 + $0x49c] ss:$48 sps:$4 sm:$0xff]  }
  0x23   :  { %1281 = vmatpush2.bf16.msra.mxu0 %v3600_v34  ;;  %1322 = vmatpush2.bf16.msra.mxu1 %v3601_v35  ;;  %v3686_v34 = vld [vmem:[%s5517_s1 + $0x10] ss:$48 sps:$4 sm:$0xff]   ;;  %v3689_v35 = vld [vmem:[%s5517_s1 + $0x18] ss:$48 sps:$4 sm:$0xff]  }
  0x24   :  { %1282 = vmatprep.subr.bf16.mxu0 %v3602_v36  ;;  %1323 = vmatprep.subr.bf16.mxu1 %v3604_v37  ;;  %v3694_v36 = vld [vmem:[%s5517_s1 + $0x5b4] ss:$48 sps:$4 sm:$0xff]   ;;  %v3697_v37 = vld [vmem:[%s5517_s1 + $0x5bc] ss:$48 sps:$4 sm:$0xff]  }
  0x27   :  { %1283 = vmatpush2.bf16.msra.mxu0 %v3606_v38  ;;  %1324 = vmatpush2.bf16.msra.mxu1 %v3607_v39  ;;  %v3692_v38 = vld [vmem:[%s5517_s1 + $0x5b0] ss:$48 sps:$4 sm:$0xff]   ;;  %v3695_v39 = vld [vmem:[%s5517_s1 + $0x5b8] ss:$48 sps:$4 sm:$0xff]  }
  0x28   :  { %1284 = vmatprep.subr.bf16.mxu0 %v3608_v40  ;;  %1325 = vmatprep.subr.bf16.mxu1 %v3610_v41  ;;  %v3700_v40 = vld [vmem:[%s5517_s1 + $0x554] ss:$48 sps:$4 sm:$0xff]   ;;  %v3703_v41 = vld [vmem:[%s5517_s1 + $0x55c] ss:$48 sps:$4 sm:$0xff]  }
  0x2b   :  { %1285 = vmatpush2.bf16.msra.mxu0 %v3612_v42  ;;  %1326 = vmatpush2.bf16.msra.mxu1 %v3613_v43  ;;  %v3698_v42 = vld [vmem:[%s5517_s1 + $0x550] ss:$48 sps:$4 sm:$0xff]   ;;  %v3701_v43 = vld [vmem:[%s5517_s1 + $0x558] ss:$48 sps:$4 sm:$0xff]  }
  0x2c   :  { %1286 = vmatprep.subr.bf16.mxu0 %v3614_v44  ;;  %1327 = vmatprep.subr.bf16.mxu1 %v3616_v45  ;;  %v3706_v44 = vld [vmem:[%s5517_s1 + $0x4f4] ss:$48 sps:$4 sm:$0xff]   ;;  %v3709_v45 = vld [vmem:[%s5517_s1 + $0x4fc] ss:$48 sps:$4 sm:$0xff]  }
  0x2f   :  { %1287 = vmatpush2.bf16.msra.mxu0 %v3618_v47  ;;  %1328 = vmatpush2.bf16.msra.mxu1 %v3619_v48  ;;  %v3707_v47 = vld [vmem:[%s5517_s1 + $0x4f8] ss:$48 sps:$4 sm:$0xff]   ;;  %v3712_v48 = vld [vmem:[%s5517_s1 + $0x494] ss:$48 sps:$4 sm:$0xff]  }
  0x30   :  { %1288 = vmatprep.subr.bf16.mxu0 %v3620_v50  ;;  %1329 = vmatprep.subr.bf16.mxu1 %v3622_v51  ;;  %v3710_v50 = vld [vmem:[%s5517_s1 + $0x490] ss:$48 sps:$4 sm:$0xff]   ;;  %v3713_v51 = vld [vmem:[%s5517_s1 + $0x498] ss:$48 sps:$4 sm:$0xff]  }
  0x33   :  { %1289 = vmatpush2.bf16.msra.mxu0 %v3624_v53  ;;  %1330 = vmatpush2.bf16.msra.mxu1 %v3625_v54  ;;  %v3718_v53 = vld [vmem:[%s5517_s1 + $0x434] ss:$48 sps:$4 sm:$0xff]   ;;  %v3721_v54 = vld [vmem:[%s5517_s1 + $0x43c] ss:$48 sps:$4 sm:$0xff]  }
  0x34   :  { %1290 = vmatprep.subr.bf16.mxu0 %v3626_v55  ;;  %1331 = vmatprep.subr.bf16.mxu1 %v3628_v56  ;;  %v3716_v55 = vld [vmem:[%s5517_s1 + $0x430] ss:$48 sps:$4 sm:$0xff]   ;;  %v3719_v56 = vld [vmem:[%s5517_s1 + $0x438] ss:$48 sps:$4 sm:$0xff]  }
  0x37   :  { %1291 = vmatpush2.bf16.msra.mxu0 %v3630_v57  ;;  %1332 = vmatpush2.bf16.msra.mxu1 %v3631_v58  ;;  %v3724_v57 = vld [vmem:[%s5517_s1 + $0x3d4] ss:$48 sps:$4 sm:$0xff]   ;;  %v3727_v58 = vld [vmem:[%s5517_s1 + $0x3dc] ss:$48 sps:$4 sm:$0xff]  }
  0x38   :  { %1292 = vmatprep.subr.bf16.mxu0 %v3632_v59  ;;  %1333 = vmatprep.subr.bf16.mxu1 %v3634_v60  ;;  %v3722_v59 = vld [vmem:[%s5517_s1 + $0x3d0] ss:$48 sps:$4 sm:$0xff]   ;;  %v3725_v60 = vld [vmem:[%s5517_s1 + $0x3d8] ss:$48 sps:$4 sm:$0xff]  }
  0x3b   :  { %1293 = vmatpush2.bf16.msra.mxu0 %v3636_v61  ;;  %1334 = vmatpush2.bf16.msra.mxu1 %v3637_v62  ;;  %v3730_v61 = vld [vmem:[%s5517_s1 + $0x374] ss:$48 sps:$4 sm:$0xff]   ;;  %v3733_v62 = vld [vmem:[%s5517_s1 + $0x37c] ss:$48 sps:$4 sm:$0xff]  }
  0x3c   :  { %1294 = vmatprep.subr.bf16.mxu0 %v3638_v63  ;;  %1335 = vmatprep.subr.bf16.mxu1 %v3640_v0  ;;  %v3728_v63 = vld [vmem:[%s5517_s1 + $0x370] ss:$48 sps:$4 sm:$0xff]   ;;  %v3731_v0 = vld [vmem:[%s5517_s1 + $0x378] ss:$48 sps:$4 sm:$0xff]  }
  0x3f   :  { %1295 = vmatpush2.bf16.msra.mxu0 %v3642_v1  ;;  %1336 = vmatpush2.bf16.msra.mxu1 %v3643_v2  ;;  %v3736_v1 = vld [vmem:[%s5517_s1 + $0x314] ss:$48 sps:$4 sm:$0xff]   ;;  %v3739_v2 = vld [vmem:[%s5517_s1 + $0x31c] ss:$48 sps:$4 sm:$0xff]  }
  0x40   :  { %1346 = vmatprep.subr.bf16.mxu0 %v3646_v3  ;;  %1387 = vmatprep.subr.bf16.mxu1 %v3649_v4  ;;  %v3734_v3 = vld [vmem:[%s5517_s1 + $0x310] ss:$48 sps:$4 sm:$0xff]   ;;  %v3737_v4 = vld [vmem:[%s5517_s1 + $0x318] ss:$48 sps:$4 sm:$0xff]  }
  0x42   :  { %1297 = vmatmul.mubr.bf16.vlgmr.msra.gmra.mxu0 %v4444_v5  ;;  %1338 = vmatmul.mubr.bf16.vlgmr.msra.gmra.mxu1 %v4444_v5 }
  0x43   :  { %1347 = vmatpush1.bf16.msra.mxu0 %v3644_v6  ;;  %1388 = vmatpush1.bf16.msra.mxu1 %v3647_v7  ;;  %v3742_v6 = vld [vmem:[%s5517_s1 + $0x2c4] ss:$48 sps:$4 sm:$0xff]   ;;  %v3745_v7 = vld [vmem:[%s5517_s1 + $0x2cc] ss:$48 sps:$4 sm:$0xff]  }
  0x44   :  { %1348 = vmatprep.subr.bf16.mxu0 %v3652_v8  ;;  %1389 = vmatprep.subr.bf16.mxu1 %v3655_v9  ;;  %v3740_v8 = vld [vmem:[%s5517_s1 + $0x2c0] ss:$48 sps:$4 sm:$0xff]   ;;  %v3743_v9 = vld [vmem:[%s5517_s1 + $0x2c8] ss:$48 sps:$4 sm:$0xff]  }
  0x45   :  { %1378 = vmatprep.mubr.bf16.mxu0 %v4392_v52  ;;  %1419 = vmatprep.mubr.bf16.mxu1 %v4392_v52 }
  0x47   :  { %1349 = vmatpush1.bf16.msra.mxu0 %v3650_v10  ;;  %1390 = vmatpush1.bf16.msra.mxu1 %v3653_v11  ;;  %v3748_v10 = vld [vmem:[%s5517_s1 + $0x264] ss:$48 sps:$4 sm:$0xff]   ;;  %v3751_v11 = vld [vmem:[%s5517_s1 + $0x26c] ss:$48 sps:$4 sm:$0xff]  }
  0x48   :  { %1350 = vmatprep.subr.bf16.mxu0 %v3658_v12  ;;  %1391 = vmatprep.subr.bf16.mxu1 %v3661_v13  ;;  %v3746_v12 = vld [vmem:[%s5517_s1 + $0x260] ss:$48 sps:$4 sm:$0xff]   ;;  %v3749_v13 = vld [vmem:[%s5517_s1 + $0x268] ss:$48 sps:$4 sm:$0xff]  }
  0x4b   :  { %1351 = vmatpush1.bf16.msra.mxu0 %v3656_v14  ;;  %1392 = vmatpush1.bf16.msra.mxu1 %v3659_v15  ;;  %v3754_v14 = vld [vmem:[%s5517_s1 + $0x204] ss:$48 sps:$4 sm:$0xff]   ;;  %v3757_v15 = vld [vmem:[%s5517_s1 + $0x20c] ss:$48 sps:$4 sm:$0xff]  }
  0x4c   :  { %1352 = vmatprep.subr.bf16.mxu0 %v3664_v16  ;;  %1393 = vmatprep.subr.bf16.mxu1 %v3667_v17  ;;  %v3752_v16 = vld [vmem:[%s5517_s1 + $0x200] ss:$48 sps:$4 sm:$0xff]   ;;  %v3755_v17 = vld [vmem:[%s5517_s1 + $0x208] ss:$48 sps:$4 sm:$0xff]  }
  0x4f   :  { %1353 = vmatpush1.bf16.msra.mxu0 %v3662_v18  ;;  %1394 = vmatpush1.bf16.msra.mxu1 %v3665_v19  ;;  %v3760_v18 = vld [vmem:[%s5517_s1 + $0x1a4] ss:$48 sps:$4 sm:$0xff]   ;;  %v3763_v19 = vld [vmem:[%s5517_s1 + $0x1ac] ss:$48 sps:$4 sm:$0xff]  }
  0x50   :  { %1354 = vmatprep.subr.bf16.mxu0 %v3670_v20  ;;  %1395 = vmatprep.subr.bf16.mxu1 %v3673_v21  ;;  %v3758_v20 = vld [vmem:[%s5517_s1 + $0x1a0] ss:$48 sps:$4 sm:$0xff]   ;;  %v3766_v21 = vld [vmem:[%s5517_s1 + $0x144] ss:$48 sps:$4 sm:$0xff]  }
  0x53   :  { %1355 = vmatpush1.bf16.msra.mxu0 %v3668_v22  ;;  %1396 = vmatpush1.bf16.msra.mxu1 %v3671_v23  ;;  %v3769_v22 = vld [vmem:[%s5517_s1 + $0x14c] ss:$48 sps:$4 sm:$0xff]   ;;  %v3764_v23 = vld [vmem:[%s5517_s1 + $0x140] ss:$48 sps:$4 sm:$0xff]  }
  0x54   :  { %1356 = vmatprep.subr.bf16.mxu0 %v3676_v24  ;;  %1397 = vmatprep.subr.bf16.mxu1 %v3679_v25  ;;  %v3767_v24 = vld [vmem:[%s5517_s1 + $0x148] ss:$48 sps:$4 sm:$0xff]   ;;  %v3772_v25 = vld [vmem:[%s5517_s1 + $0xe4] ss:$48 sps:$4 sm:$0xff]  }
  0x57   :  { %1357 = vmatpush1.bf16.msra.mxu0 %v3674_v26  ;;  %1398 = vmatpush1.bf16.msra.mxu1 %v3677_v27  ;;  %v3775_v26 = vld [vmem:[%s5517_s1 + $0xec] ss:$48 sps:$4 sm:$0xff]   ;;  %v3770_v27 = vld [vmem:[%s5517_s1 + $0xe0] ss:$48 sps:$4 sm:$0xff]  }
  0x58   :  { %1358 = vmatprep.subr.bf16.mxu0 %v3682_v28  ;;  %1399 = vmatprep.subr.bf16.mxu1 %v3685_v29  ;;  %v3773_v28 = vld [vmem:[%s5517_s1 + $0xe8] ss:$48 sps:$4 sm:$0xff]   ;;  %v3778_v29 = vld [vmem:[%s5517_s1 + $0x84] ss:$48 sps:$4 sm:$0xff]  }
  0x5b   :  { %1359 = vmatpush1.bf16.msra.mxu0 %v3680_v30  ;;  %1400 = vmatpush1.bf16.msra.mxu1 %v3683_v31  ;;  %v3781_v30 = vld [vmem:[%s5517_s1 + $0x8c] ss:$48 sps:$4 sm:$0xff]   ;;  %v3776_v31 = vld [vmem:[%s5517_s1 + $0x80] ss:$48 sps:$4 sm:$0xff]  }
  0x5c   :  { %1360 = vmatprep.subr.bf16.mxu0 %v3688_v32  ;;  %1401 = vmatprep.subr.bf16.mxu1 %v3691_v33  ;;  %v3779_v32 = vld [vmem:[%s5517_s1 + $0x88] ss:$48 sps:$4 sm:$0xff]   ;;  %v3784_v33 = vld [vmem:[%s5517_s1 + $0x24] ss:$48 sps:$4 sm:$0xff]  }
  0x5f   :  { %1361 = vmatpush1.bf16.msra.mxu0 %v3686_v34  ;;  %1402 = vmatpush1.bf16.msra.mxu1 %v3689_v35  ;;  %v3787_v34 = vld [vmem:[%s5517_s1 + $0x2c] ss:$48 sps:$4 sm:$0xff]   ;;  %v3782_v35 = vld [vmem:[%s5517_s1 + $0x20] ss:$48 sps:$4 sm:$0xff]  }
  0x60   :  { %1362 = vmatprep.subr.bf16.mxu0 %v3694_v36  ;;  %1403 = vmatprep.subr.bf16.mxu1 %v3697_v37  ;;  %v3785_v36 = vld [vmem:[%s5517_s1 + $0x28] ss:$48 sps:$4 sm:$0xff]   ;;  %v3790_v37 = vld [vmem:[%s5517_s1 + $0x5c4] ss:$48 sps:$4 sm:$0xff]  }
  0x63   :  { %1363 = vmatpush2.bf16.msra.mxu0 %v3692_v38  ;;  %1404 = vmatpush2.bf16.msra.mxu1 %v3695_v39  ;;  %v3793_v38 = vld [vmem:[%s5517_s1 + $0x5cc] ss:$48 sps:$4 sm:$0xff]   ;;  %v3788_v39 = vld [vmem:[%s5517_s1 + $0x5c0] ss:$48 sps:$4 sm:$0xff]  }
  0x64   :  { %1364 = vmatprep.subr.bf16.mxu0 %v3700_v40  ;;  %1405 = vmatprep.subr.bf16.mxu1 %v3703_v41  ;;  %v3791_v40 = vld [vmem:[%s5517_s1 + $0x5c8] ss:$48 sps:$4 sm:$0xff]   ;;  %v3796_v41 = vld [vmem:[%s5517_s1 + $0x564] ss:$48 sps:$4 sm:$0xff]  }
  0x67   :  { %1365 = vmatpush2.bf16.msra.mxu0 %v3698_v42  ;;  %1406 = vmatpush2.bf16.msra.mxu1 %v3701_v43  ;;  %v3799_v42 = vld [vmem:[%s5517_s1 + $0x56c] ss:$48 sps:$4 sm:$0xff]   ;;  %v3794_v43 = vld [vmem:[%s5517_s1 + $0x560] ss:$48 sps:$4 sm:$0xff]  }
  0x68   :  { %1366 = vmatprep.subr.bf16.mxu0 %v3706_v44  ;;  %1407 = vmatprep.subr.bf16.mxu1 %v3709_v45  ;;  %v3797_v44 = vld [vmem:[%s5517_s1 + $0x568] ss:$48 sps:$4 sm:$0xff]   ;;  %v3802_v45 = vld [vmem:[%s5517_s1 + $0x504] ss:$48 sps:$4 sm:$0xff]  }
  0x6b   :  { %1367 = vmatpush2.bf16.msra.mxu0 %v3704_v46  ;;  %1408 = vmatpush2.bf16.msra.mxu1 %v3707_v47  ;;  %v3805_v46 = vld [vmem:[%s5517_s1 + $0x50c] ss:$48 sps:$4 sm:$0xff]   ;;  %v3800_v47 = vld [vmem:[%s5517_s1 + $0x500] ss:$48 sps:$4 sm:$0xff]  }
  0x6c   :  { %1368 = vmatprep.subr.bf16.mxu0 %v3712_v48  ;;  %1409 = vmatprep.subr.bf16.mxu1 %v3715_v49  ;;  %v3803_v48 = vld [vmem:[%s5517_s1 + $0x508] ss:$48 sps:$4 sm:$0xff]   ;;  %v3808_v49 = vld [vmem:[%s5517_s1 + $0x4a4] ss:$48 sps:$4 sm:$0xff]  }
  0x6f   :  { %1369 = vmatpush2.bf16.msra.mxu0 %v3710_v50  ;;  %1410 = vmatpush2.bf16.msra.mxu1 %v3713_v51  ;;  %v3811_v50 = vld [vmem:[%s5517_s1 + $0x4ac] ss:$48 sps:$4 sm:$0xff]   ;;  %v3806_v51 = vld [vmem:[%s5517_s1 + $0x4a0] ss:$48 sps:$4 sm:$0xff]  }
  0x70   :  { %1370 = vmatprep.subr.bf16.mxu0 %v3718_v53  ;;  %1411 = vmatprep.subr.bf16.mxu1 %v3721_v54  ;;  %v3809_v53 = vld [vmem:[%s5517_s1 + $0x4a8] ss:$48 sps:$4 sm:$0xff]   ;;  %v3814_v54 = vld [vmem:[%s5517_s1 + $0x444] ss:$48 sps:$4 sm:$0xff]  }
  0x73   :  { %1371 = vmatpush2.bf16.msra.mxu0 %v3716_v55  ;;  %1412 = vmatpush2.bf16.msra.mxu1 %v3719_v56  ;;  %v3817_v55 = vld [vmem:[%s5517_s1 + $0x44c] ss:$48 sps:$4 sm:$0xff]   ;;  %v3812_v56 = vld [vmem:[%s5517_s1 + $0x440] ss:$48 sps:$4 sm:$0xff]  }
  0x74   :  { %1372 = vmatprep.subr.bf16.mxu0 %v3724_v57  ;;  %1413 = vmatprep.subr.bf16.mxu1 %v3727_v58  ;;  %v3815_v57 = vld [vmem:[%s5517_s1 + $0x448] ss:$48 sps:$4 sm:$0xff]   ;;  %v3820_v58 = vld [vmem:[%s5517_s1 + $0x3e4] ss:$48 sps:$4 sm:$0xff]  }
  0x77   :  { %1373 = vmatpush2.bf16.msra.mxu0 %v3722_v59  ;;  %1414 = vmatpush2.bf16.msra.mxu1 %v3725_v60  ;;  %v3823_v59 = vld [vmem:[%s5517_s1 + $0x3ec] ss:$48 sps:$4 sm:$0xff]   ;;  %v3818_v60 = vld [vmem:[%s5517_s1 + $0x3e0] ss:$48 sps:$4 sm:$0xff]  }
  0x78   :  { %1374 = vmatprep.subr.bf16.mxu0 %v3730_v61  ;;  %1415 = vmatprep.subr.bf16.mxu1 %v3733_v62  ;;  %v3821_v61 = vld [vmem:[%s5517_s1 + $0x3e8] ss:$48 sps:$4 sm:$0xff]   ;;  %v3826_v62 = vld [vmem:[%s5517_s1 + $0x384] ss:$48 sps:$4 sm:$0xff]  }
  0x7b   :  { %1375 = vmatpush2.bf16.msra.mxu0 %v3728_v63  ;;  %1416 = vmatpush2.bf16.msra.mxu1 %v3731_v0  ;;  %v3829_v63 = vld [vmem:[%s5517_s1 + $0x38c] ss:$48 sps:$4 sm:$0xff]   ;;  %v3824_v0 = vld [vmem:[%s5517_s1 + $0x380] ss:$48 sps:$4 sm:$0xff]  }
  0x7c   :  { %1376 = vmatprep.subr.bf16.mxu0 %v3736_v1  ;;  %1417 = vmatprep.subr.bf16.mxu1 %v3739_v2  ;;  %v3827_v1 = vld [vmem:[%s5517_s1 + $0x388] ss:$48 sps:$4 sm:$0xff]   ;;  %v3832_v2 = vld [vmem:[%s5517_s1 + $0x324] ss:$48 sps:$4 sm:$0xff]  }
  0x7f   :  { %1377 = vmatpush2.bf16.msra.mxu0 %v3734_v3  ;;  %1418 = vmatpush2.bf16.msra.mxu1 %v3737_v4  ;;  %v3835_v3 = vld [vmem:[%s5517_s1 + $0x32c] ss:$48 sps:$4 sm:$0xff]   ;;  %v3830_v4 = vld [vmem:[%s5517_s1 + $0x320] ss:$48 sps:$4 sm:$0xff]  }
  0x80   :  { %1428 = vmatprep.subr.bf16.mxu0 %v3742_v6  ;;  %1469 = vmatprep.subr.bf16.mxu1 %v3745_v7  ;;  %v3833_v6 = vld [vmem:[%s5517_s1 + $0x328] ss:$48 sps:$4 sm:$0xff]   ;;  %v3838_v7 = vld [vmem:[%s5519_s3 + $0xe4] ss:$16 sps:$4 sm:$0xff]  }
  0x82   :  { %1379 = vmatmul.mubr.bf16.vlgmr.msra.gmra.mxu0 %v4444_v5  ;;  %1420 = vmatmul.mubr.bf16.vlgmr.msra.gmra.mxu1 %v4444_v5 }
  0x83   :  { %1429 = vmatpush1.bf16.msra.mxu0 %v3740_v8  ;;  %1470 = vmatpush1.bf16.msra.mxu1 %v3743_v9  ;;  %v3836_v8 = vld [vmem:[%s5519_s3 + $0xe0] ss:$16 sps:$4 sm:$0xff]   ;;  %v3841_v9 = vld [vmem:[%s5519_s3 + $0xc4] ss:$16 sps:$4 sm:$0xff]  }
  0x84   :  { %1430 = vmatprep.subr.bf16.mxu0 %v3748_v10  ;;  %1471 = vmatprep.subr.bf16.mxu1 %v3751_v11  ;;  %v3839_v10 = vld [vmem:[%s5519_s3 + $0xc0] ss:$16 sps:$4 sm:$0xff]  }
  0x85   :  { %1460 = vmatprep.mubr.bf16.mxu0 %v4392_v52  ;;  %1501 = vmatprep.mubr.bf16.mxu1 %v4392_v52  ;;  %v3761_v52 = vld [vmem:[%s5517_s1 + $0x1a8] ss:$48 sps:$4 sm:$0xff]  }
  0x87   :  { %1431 = vmatpush1.bf16.msra.mxu0 %v3746_v12  ;;  %1472 = vmatpush1.bf16.msra.mxu1 %v3749_v13 }
  0x88   :  { %1432 = vmatprep.subr.bf16.mxu0 %v3754_v14  ;;  %1473 = vmatprep.subr.bf16.mxu1 %v3757_v15 }
  0x8b   :  { %1433 = vmatpush1.bf16.msra.mxu0 %v3752_v16  ;;  %1474 = vmatpush1.bf16.msra.mxu1 %v3755_v17 }
  0x8c   :  { %1434 = vmatprep.subr.bf16.mxu0 %v3760_v18  ;;  %1475 = vmatprep.subr.bf16.mxu1 %v3763_v19 }
  0x8f   :  { %1435 = vmatpush1.bf16.msra.mxu0 %v3758_v20  ;;  %1476 = vmatpush1.bf16.msra.mxu1 %v3761_v52 }
  0x90   :  { %1436 = vmatprep.subr.bf16.mxu0 %v3766_v21  ;;  %1477 = vmatprep.subr.bf16.mxu1 %v3769_v22 }
  0x93   :  { %1437 = vmatpush1.bf16.msra.mxu0 %v3764_v23  ;;  %1478 = vmatpush1.bf16.msra.mxu1 %v3767_v24 }
  0x94   :  { %1438 = vmatprep.subr.bf16.mxu0 %v3772_v25  ;;  %1479 = vmatprep.subr.bf16.mxu1 %v3775_v26 }
  0x97   :  { %1439 = vmatpush1.bf16.msra.mxu0 %v3770_v27  ;;  %1480 = vmatpush1.bf16.msra.mxu1 %v3773_v28 }
  0x98   :  { %1440 = vmatprep.subr.bf16.mxu0 %v3778_v29  ;;  %1481 = vmatprep.subr.bf16.mxu1 %v3781_v30 }
  0x9b   :  { %1441 = vmatpush1.bf16.msra.mxu0 %v3776_v31  ;;  %1482 = vmatpush1.bf16.msra.mxu1 %v3779_v32 }
  0x9c   :  { %1442 = vmatprep.subr.bf16.mxu0 %v3784_v33  ;;  %1483 = vmatprep.subr.bf16.mxu1 %v3787_v34 }
  0x9f   :  { %1443 = vmatpush1.bf16.msra.mxu0 %v3782_v35  ;;  %1484 = vmatpush1.bf16.msra.mxu1 %v3785_v36 }
  0xa0   :  { %1444 = vmatprep.subr.bf16.mxu0 %v3790_v37  ;;  %1485 = vmatprep.subr.bf16.mxu1 %v3793_v38 }
  0xa3   :  { %1445 = vmatpush2.bf16.msra.mxu0 %v3788_v39  ;;  %1486 = vmatpush2.bf16.msra.mxu1 %v3791_v40 }
  0xa4   :  { %1446 = vmatprep.subr.bf16.mxu0 %v3796_v41  ;;  %1487 = vmatprep.subr.bf16.mxu1 %v3799_v42 }
  0xa7   :  { %1447 = vmatpush2.bf16.msra.mxu0 %v3794_v43  ;;  %1488 = vmatpush2.bf16.msra.mxu1 %v3797_v44 }
  0xa8   :  { %1448 = vmatprep.subr.bf16.mxu0 %v3802_v45  ;;  %1489 = vmatprep.subr.bf16.mxu1 %v3805_v46 }
  0xab   :  { %1449 = vmatpush2.bf16.msra.mxu0 %v3800_v47  ;;  %1490 = vmatpush2.bf16.msra.mxu1 %v3803_v48 }
  0xac   :  { %1450 = vmatprep.subr.bf16.mxu0 %v3808_v49  ;;  %1491 = vmatprep.subr.bf16.mxu1 %v3811_v50 }
  0xaf   :  { %1451 = vmatpush2.bf16.msra.mxu0 %v3806_v51  ;;  %1492 = vmatpush2.bf16.msra.mxu1 %v3809_v53 }
  0xb0   :  { %1452 = vmatprep.subr.bf16.mxu0 %v3814_v54  ;;  %1493 = vmatprep.subr.bf16.mxu1 %v3817_v55 }
  0xb3   :  { %1453 = vmatpush2.bf16.msra.mxu0 %v3812_v56  ;;  %1494 = vmatpush2.bf16.msra.mxu1 %v3815_v57 }
  0xb4   :  { %1454 = vmatprep.subr.bf16.mxu0 %v3820_v58  ;;  %1495 = vmatprep.subr.bf16.mxu1 %v3823_v59 }
  0xb7   :  { %1455 = vmatpush2.bf16.msra.mxu0 %v3818_v60  ;;  %1496 = vmatpush2.bf16.msra.mxu1 %v3821_v61 }
  0xb8   :  { %1456 = vmatprep.subr.bf16.mxu0 %v3826_v62  ;;  %1497 = vmatprep.subr.bf16.mxu1 %v3829_v63 }
  0xbb   :  { %1457 = vmatpush2.bf16.msra.mxu0 %v3824_v0  ;;  %1498 = vmatpush2.bf16.msra.mxu1 %v3827_v1 }
  0xbc   :  { %1458 = vmatprep.subr.bf16.mxu0 %v3832_v2  ;;  %1499 = vmatprep.subr.bf16.mxu1 %v3835_v3 }
  0xbf   :  { %1459 = vmatpush2.bf16.msra.mxu0 %v3830_v4  ;;  %1500 = vmatpush2.bf16.msra.mxu1 %v3833_v6 }
  0xc0   :  { %2617 = vmatprep.subr.bf16.mxu0 %v3838_v7 }
  0xc2   :  { %1461 = vmatmul.mubr.bf16.vlgmr.msra.gmra.mxu0 %v4444_v5  ;;  %1502 = vmatmul.mubr.bf16.vlgmr.msra.gmra.mxu1 %v4444_v5 }
  0xc3   :  { %2618 = vmatpush1.bf16.msra.mxu0 %v3836_v8 }
  0xc4   :  { %14 = vsyncpa [#allocation3], 0  ;;  %2619 = vmatprep.subr.bf16.mxu0 %v3841_v9  ;;  %v3844_v11 = vld [vmem:[%s5519_s3 + $0xa4] ss:$16 sps:$4 sm:$0xff]   ;;  %v3842_v12 = vld [vmem:[%s5519_s3 + $0xa0] ss:$16 sps:$4 sm:$0xff]  }
  0xc5   :  { %v3847_v5 = vld [vmem:[%s5519_s3 + $0x84] ss:$16 sps:$4 sm:$0xff]   ;;  %v3845_v13 = vld [vmem:[%s5519_s3 + $0x80] ss:$16 sps:$4 sm:$0xff]   ;;  %vm2604_vm0 = vcmask 1041408   ;;  %vm2600_vm1 = vcmask 293888  }
  0xc6   :  { %v3850_v14 = vld [vmem:[%s5519_s3 + $0x64] ss:$16 sps:$4 sm:$0xff]   ;;  %v3848_v15 = vld [vmem:[%s5519_s3 + $0x60] ss:$16 sps:$4 sm:$0xff]   ;;  %vm2997_vm2 = vcmask 130048   ;;  %vm3086_vm3 = vcmask 261120  }
  0xc7   :  { %2620 = vmatpush1.bf16.msra.mxu0 %v3839_v10  ;;  %v3853_v16 = vld [vmem:[%s5519_s3 + $0x44] ss:$16 sps:$4 sm:$0xff]   ;;  %v3851_v17 = vld [vmem:[%s5519_s3 + $0x40] ss:$16 sps:$4 sm:$0xff]   ;;  %s4188_s11 = smov [#allocation2]   ;;  %vm3137_vm4 = vcmask 58368  }
  0xc8   :  { %2621 = vmatprep.subr.bf16.mxu0 %v3844_v11  ;;  %v3856_v18 = vld [vmem:[%s5519_s3 + $0x24] ss:$16 sps:$4 sm:$0xff]   ;;  %v3854_v19 = vld [vmem:[%s5519_s3 + $0x20] ss:$16 sps:$4 sm:$0xff]   ;;  %s3145_s12 = sshll.u32 %s4188_s11, 4  ;;  %s3146_s12 = int_to_ptr.vmem [resolvable:$true] %s3145_s12 }
  0xc9   :  { %v3859_v20 = vld [vmem:[%s5519_s3 + $0x4] ss:$16 sps:$4 sm:$0xff]   ;;  %v3857_v52 = vld [vmem:[%s5519_s3] ss:$16 sps:$4 sm:$0xff]   ;;  %p4170_p1 = scmp.lt.s32.totalorder %s3146_s12, %s3146_s12 }
  0xca   :  { %v3862_v21 = vld [vmem:[%s5519_s3 + $0x1e4] ss:$16 sps:$4 sm:$0xff]   ;;  %v3860_v22 = vld [vmem:[%s5519_s3 + $0x1e0] ss:$16 sps:$4 sm:$0xff]  }
  0xcb   :  { %2622 = vmatpush1.bf16.msra.mxu0 %v3842_v12  ;;  %v3865_v23 = vld [vmem:[%s5519_s3 + $0x1c4] ss:$16 sps:$4 sm:$0xff]   ;;  %v3863_v24 = vld [vmem:[%s5519_s3 + $0x1c0] ss:$16 sps:$4 sm:$0xff]  }
  0xcc   :  { %2623 = vmatprep.subr.bf16.mxu0 %v3847_v5  ;;  %v3868_v25 = vld [vmem:[%s5519_s3 + $0x1a4] ss:$16 sps:$4 sm:$0xff]   ;;  %v3866_v26 = vld [vmem:[%s5519_s3 + $0x1a0] ss:$16 sps:$4 sm:$0xff]  }
  0xcd   :  { %v3871_v27 = vld [vmem:[%s5519_s3 + $0x184] ss:$16 sps:$4 sm:$0xff]   ;;  %v3869_v28 = vld [vmem:[%s5519_s3 + $0x180] ss:$16 sps:$4 sm:$0xff]  }
  0xce   :  { %v3874_v29 = vld [vmem:[%s5519_s3 + $0x164] ss:$16 sps:$4 sm:$0xff]   ;;  %v3884_v31 = vld [vmem:[%s5519_s3 + $0x2e0] ss:$16 sps:$4 sm:$0xff]  }
  0xcf   :  { %2624 = vmatpush1.bf16.msra.mxu0 %v3845_v13  ;;  %v3886_v30 = vld [vmem:[%s5519_s3 + $0x2e4] ss:$16 sps:$4 sm:$0xff]   ;;  %v3872_v32 = vld [vmem:[%s5519_s3 + $0x160] ss:$16 sps:$4 sm:$0xff]  }
  0xd0   :  { %2625 = vmatprep.subr.bf16.mxu0 %v3850_v14  ;;  %2658 = vmatprep.subr.bf16.mxu1 %v3886_v30  ;;  %v3877_v33 = vld [vmem:[%s5519_s3 + $0x144] ss:$16 sps:$4 sm:$0xff]   ;;  %v3887_v34 = vld [vmem:[%s5519_s3 + $0x2c0] ss:$16 sps:$4 sm:$0xff]  }
  0xd1   :  { %2659 = vmatpush1.bf16.msra.mxu1 %v3884_v31  ;;  %v3889_v35 = vld [vmem:[%s5519_s3 + $0x2c4] ss:$16 sps:$4 sm:$0xff]   ;;  %v3875_v37 = vld [vmem:[%s5519_s3 + $0x140] ss:$16 sps:$4 sm:$0xff]  }
  0xd2   :  { %v3892_v36 = vld [vmem:[%s5519_s3 + $0x2a4] ss:$16 sps:$4 sm:$0xff]   ;;  %2660 = vmatprep.subr.bf16.mxu1 %v3889_v35  ;;  %v3890_v39 = vld [vmem:[%s5519_s3 + $0x2a0] ss:$16 sps:$4 sm:$0xff]  }
  0xd3   :  { %2626 = vmatpush1.bf16.msra.mxu0 %v3848_v15  ;;  %v3880_v38 = vld [vmem:[%s5519_s3 + $0x124] ss:$16 sps:$4 sm:$0xff]   ;;  %v3878_v41 = vld [vmem:[%s5519_s3 + $0x120] ss:$16 sps:$4 sm:$0xff]   ;;  %v3966_v15 = vld [vmem:[%s5519_s3 + $0xec] ss:$16 sps:$4 sm:$0xff]  }
  0xd4   :  { %2627 = vmatprep.subr.bf16.mxu0 %v3853_v16  ;;  %v3895_v40 = vld [vmem:[%s5519_s3 + $0x284] ss:$16 sps:$4 sm:$0xff]   ;;  %v3893_v43 = vld [vmem:[%s5519_s3 + $0x280] ss:$16 sps:$4 sm:$0xff]   ;;  %v244_v16 = vlaneseq }
  0xd5   :  { %2661 = vmatpush1.bf16.msra.mxu1 %v3887_v34  ;;  %v3883_v42 = vld [vmem:[%s5519_s3 + $0x104] ss:$16 sps:$4 sm:$0xff]   ;;  %v3881_v45 = vld [vmem:[%s5519_s3 + $0x100] ss:$16 sps:$4 sm:$0xff]  }
  0xd6   :  { %2662 = vmatprep.subr.bf16.mxu1 %v3892_v36  ;;  %v3898_v44 = vld [vmem:[%s5519_s3 + $0x264] ss:$16 sps:$4 sm:$0xff]   ;;  %v3896_v46 = vld [vmem:[%s5519_s3 + $0x260] ss:$16 sps:$4 sm:$0xff]  }
  0xd7   :  { %2628 = vmatpush1.bf16.msra.mxu0 %v3851_v17  ;;  %v3901_v49 = vld [vmem:[%s5519_s3 + $0x244] ss:$16 sps:$4 sm:$0xff]   ;;  %v3899_v51 = vld [vmem:[%s5519_s3 + $0x240] ss:$16 sps:$4 sm:$0xff]   ;;  %v5040_v17 = vshrl.u32 %v244_v16, 7 }
  0xd8   :  { %2629 = vmatprep.subr.bf16.mxu0 %v3856_v18  ;;  %v3904_v50 = vld [vmem:[%s5519_s3 + $0x4e4] ss:$16 sps:$4 sm:$0xff]   ;;  %v3905_v58 = vld [vmem:[%s5519_s3 + $0x220] ss:$16 sps:$4 sm:$0xff]  }
  0xd9   :  { %2663 = vmatpush1.bf16.msra.mxu1 %v3890_v39  ;;  %v3907_v57 = vld [vmem:[%s5519_s3 + $0x224] ss:$16 sps:$4 sm:$0xff]   ;;  %v3911_v62 = vld [vmem:[%s5519_s3 + $0x200] ss:$16 sps:$4 sm:$0xff]   ;;  %v270_v18 = vsub.s32 6, %v5040_v17 }
  0xda   :  { %2664 = vmatprep.subr.bf16.mxu1 %v3895_v40  ;;  %v3913_v61 = vld [vmem:[%s5519_s3 + $0x204] ss:$16 sps:$4 sm:$0xff]   ;;  %v3917_v0 = vld [vmem:[%s5519_s3 + $0x3e0] ss:$16 sps:$4 sm:$0xff]   ;;  %v5056_v40 = vsub.s32 0, %v5040_v17 }
  0xdb   :  { %2630 = vmatpush1.bf16.msra.mxu0 %v3854_v19  ;;  %v3919_v63 = vld [vmem:[%s5519_s3 + $0x3e4] ss:$16 sps:$4 sm:$0xff]   ;;  %v3923_v2 = vld [vmem:[%s5519_s3 + $0x3c0] ss:$16 sps:$4 sm:$0xff]   ;;  %v274_v19 = vsub.s32 7, %v5040_v17 }
  0xdc   :  { %2631 = vmatprep.subr.bf16.mxu0 %v3859_v20  ;;  %v3925_v1 = vld [vmem:[%s5519_s3 + $0x3c4] ss:$16 sps:$4 sm:$0xff]   ;;  %v3929_v4 = vld [vmem:[%s5519_s3 + $0x3a0] ss:$16 sps:$4 sm:$0xff]  }
  0xdd   :  { %2665 = vmatpush1.bf16.msra.mxu1 %v3893_v43  ;;  %v3931_v3 = vld [vmem:[%s5519_s3 + $0x3a4] ss:$16 sps:$4 sm:$0xff]   ;;  %v3935_v7 = vld [vmem:[%s5519_s3 + $0x380] ss:$16 sps:$4 sm:$0xff]  }
  0xde   :  { %2666 = vmatprep.subr.bf16.mxu1 %v3898_v44  ;;  %v3937_v6 = vld [vmem:[%s5519_s3 + $0x384] ss:$16 sps:$4 sm:$0xff]   ;;  %v3941_v9 = vld [vmem:[%s5519_s3 + $0x360] ss:$16 sps:$4 sm:$0xff]  }
  0xdf   :  { %2632 = vmatpush1.bf16.msra.mxu0 %v3857_v52  ;;  %v3943_v8 = vld [vmem:[%s5519_s3 + $0x364] ss:$16 sps:$4 sm:$0xff]   ;;  %v3947_v11 = vld [vmem:[%s5519_s3 + $0x340] ss:$16 sps:$4 sm:$0xff]  }
  0xe0   :  { %2633 = vmatprep.subr.bf16.mxu0 %v3862_v21  ;;  %v3949_v10 = vld [vmem:[%s5519_s3 + $0x344] ss:$16 sps:$4 sm:$0xff]   ;;  %v3952_v5 = vld [vmem:[%s5519_s3 + $0x320] ss:$16 sps:$4 sm:$0xff]  }
  0xe1   :  { %2667 = vmatpush1.bf16.msra.mxu1 %v3896_v46  ;;  %v3954_v12 = vld [vmem:[%s5519_s3 + $0x324] ss:$16 sps:$4 sm:$0xff]   ;;  %v3958_v14 = vld [vmem:[%s5519_s3 + $0x300] ss:$16 sps:$4 sm:$0xff]  }
  0xe2   :  { %2668 = vmatprep.subr.bf16.mxu1 %v3901_v49  ;;  %v3960_v13 = vld [vmem:[%s5519_s3 + $0x304] ss:$16 sps:$4 sm:$0xff]  }
  0xe3   :  { %2634 = vmatpush2.bf16.msra.mxu0 %v3860_v22  ;;  %v5047_v20 = vld [vmem:[%s5518_s2] sm:$0xff] }
  0xe4   :  { %2635 = vmatprep.subr.bf16.mxu0 %v3865_v23  ;;  %v271_v52 = vrot.slane %v5047_v20, %v270_v18  ;;  %v275_v21 = vrot.slane %v5047_v20, %v274_v19 }
  0xe5   :  { %2669 = vmatpush1.bf16.msra.mxu1 %v3899_v51 }
  0xe6   :  { %2670 = vmatprep.subr.bf16.mxu1 %v3907_v57 }
  0xe7   :  { %2636 = vmatpush2.bf16.msra.mxu0 %v3863_v24 }
  0xe8   :  { %2637 = vmatprep.subr.bf16.mxu0 %v3868_v25 }
  0xe9   :  { %2671 = vmatpush1.bf16.msra.mxu1 %v3905_v58  ;;  %v3902_v58 = vld [vmem:[%s5519_s3 + $0x4e0] ss:$16 sps:$4 sm:$0xff]  }
  0xea   :  { %2672 = vmatprep.subr.bf16.mxu1 %v3913_v61  ;;  %v3914_v61 = vld [vmem:[%s5519_s3 + $0x4a0] ss:$16 sps:$4 sm:$0xff]  }
  0xeb   :  { %2638 = vmatpush2.bf16.msra.mxu0 %v3866_v26 }
  0xec   :  { %2639 = vmatprep.subr.bf16.mxu0 %v3871_v27 }
  0xed   :  { %2673 = vmatpush1.bf16.msra.mxu1 %v3911_v62  ;;  %v3922_v62 = vld [vmem:[%s5519_s3 + $0x484] ss:$16 sps:$4 sm:$0xff]  }
  0xee   :  { %2674 = vmatprep.subr.bf16.mxu1 %v3919_v63  ;;  %v3920_v63 = vld [vmem:[%s5519_s3 + $0x480] ss:$16 sps:$4 sm:$0xff]  }
  0xef   :  { %2640 = vmatpush2.bf16.msra.mxu0 %v3869_v28 }
  0xf0   :  { %2641 = vmatprep.subr.bf16.mxu0 %v3874_v29 }
  0xf1   :  { %2675 = vmatpush2.bf16.msra.mxu1 %v3917_v0  ;;  %v3928_v0 = vld [vmem:[%s5519_s3 + $0x464] ss:$16 sps:$4 sm:$0xff]  }
  0xf2   :  { %2676 = vmatprep.subr.bf16.mxu1 %v3925_v1  ;;  %v241_v1 = vld [vmem:[%s5518_s2 + $0x8] sm:$0xf] }
  0xf3   :  { %2642 = vmatpush2.bf16.msra.mxu0 %v3872_v32 }
  0xf4   :  { %2643 = vmatprep.subr.bf16.mxu0 %v3877_v33 }
  0xf5   :  { %2677 = vmatpush2.bf16.msra.mxu1 %v3923_v2  ;;  %v5101_v2 = vsub.s32 2, %v5040_v17 }
  0xf6   :  { %2678 = vmatprep.subr.bf16.mxu1 %v3931_v3  ;;  %v3926_v3 = vld [vmem:[%s5519_s3 + $0x460] ss:$16 sps:$4 sm:$0xff]  }
  0xf7   :  { %2644 = vmatpush2.bf16.msra.mxu0 %v3875_v37 }
  0xf8   :  { %2645 = vmatprep.subr.bf16.mxu0 %v3880_v38 }
  0xf9   :  { %2679 = vmatpush2.bf16.msra.mxu1 %v3929_v4  ;;  %v3934_v4 = vld [vmem:[%s5519_s3 + $0x444] ss:$16 sps:$4 sm:$0xff]  }
  0xfa   :  { %2680 = vmatprep.subr.bf16.mxu1 %v3937_v6  ;;  %v5110_v6 = vsub.s32 3, %v5040_v17 }
  0xfb   :  { %2646 = vmatpush2.bf16.msra.mxu0 %v3878_v41  ;;  %v5059_v41 = vsub.s32 1, %v5040_v17 }
  0xfc   :  { %2647 = vmatprep.subr.bf16.mxu0 %v3883_v42  ;;  %v247_v42 = vrot.slane %v5047_v20, %v5056_v40 }
  0xfd   :  { %2681 = vmatpush2.bf16.msra.mxu1 %v3935_v7  ;;  %v251_v43 = vrot.slane %v5047_v20, %v5059_v41  ;;  %v279_v7 = vrot.slane %v241_v1, %v5056_v40 }
  0xfe   :  { %2682 = vmatprep.subr.bf16.mxu1 %v3943_v8  ;;  %v287_v8 = vrot.slane %v241_v1, %v5101_v2 }
  0xff   :  { %2648 = vmatpush2.bf16.msra.mxu0 %v3881_v45 }
 0x100   :  { %2699 = vmatprep.subr.bf16.mxu0 %v3904_v50 }
 0x101   :  { %2683 = vmatpush2.bf16.msra.mxu1 %v3941_v9  ;;  %v283_v9 = vrot.slane %v241_v1, %v5059_v41 }
 0x102   :  { %v4960_v47 = vpop.f32.mrf.mxu0  ;;  %v4962_v48 = vpop.f32.mrf.mxu1  ;;  %2684 = vmatprep.subr.bf16.mxu1 %v3949_v10  ;;  %v291_v10 = vrot.slane %v241_v1, %v5110_v6 }
 0x103   :  { %v1299_v44 = vadd.f32 %v4960_v47, %v247_v42  ;;  %v3910_v47 = vld [vmem:[%s5519_s3 + $0x4c4] ss:$16 sps:$4 sm:$0xff]  }
 0x104   :  { %v4973_v53 = vpop.f32.mrf.mxu0  ;;  %v4975_v54 = vpop.f32.mrf.mxu1 }
 0x105   :  { %2685 = vmatpush2.bf16.msra.mxu1 %v3947_v11  ;;  %v1301_v46 = vadd.f32 %v4973_v53, %v251_v43  ;;  %v3908_v53 = vld [vmem:[%s5519_s3 + $0x4c0] ss:$16 sps:$4 sm:$0xff]  }
 0x106   :  { %v1302_v55 = vpop.f32.mrf.mxu0  ;;  %v1343_v56 = vpop.f32.mrf.mxu1  ;;  %2686 = vmatprep.subr.bf16.mxu1 %v3954_v12  ;;  %v3932_v11 = vld [vmem:[%s5519_s3 + $0x440] ss:$16 sps:$4 sm:$0xff]  }
 0x108   :  { %v1303_v59 = vpop.f32.mrf.mxu0  ;;  %v1344_v60 = vpop.f32.mrf.mxu1 }
 0x109   :  { %2687 = vmatpush2.bf16.msra.mxu1 %v3952_v5  ;;  %v3916_v60 = vld [vmem:[%s5519_s3 + $0x4a4] ss:$16 sps:$4 sm:$0xff]  }
 0x10a   :  { %2688 = vmatprep.subr.bf16.mxu1 %v3960_v13  ;;  %v3940_v13 = vld [vmem:[%s5519_s3 + $0x424] ss:$16 sps:$4 sm:$0xff]  }
 0x10d   :  { %2689 = vmatpush2.bf16.msra.mxu1 %v3958_v14 }
 0x10e   :  { %2740 = vmatprep.subr.bf16.mxu1 %v3966_v15 }
 0x142   :  { %v5051_v22 = vpop.f32.mrf.mxu0  ;;  %v1421_v23 = vpop.f32.mrf.mxu1 }
 0x143   :  { %v1422_v24 = vadd.f32 %v1421_v23, %v271_v52 }
 0x144   :  { %v5053_v25 = vpop.f32.mrf.mxu0  ;;  %v1423_v26 = vpop.f32.mrf.mxu1 }
 0x145   :  { %v1510_v27 = vsub.f32 0.0, %v1422_v24  ;;  %v1424_v28 = vadd.f32 %v1423_v26, %v275_v21  ;;  %v3938_v24 = vld [vmem:[%s5519_s3 + $0x420] ss:$16 sps:$4 sm:$0xff]  }
 0x146   :  { %v1384_v29 = vpop.f32.mrf.mxu0  ;;  %v1425_v30 = vpop.f32.mrf.mxu1 }
 0x147   :  { %v1516_v31 = vmul.f32 1.442695, %v1510_v27  ;;  %v1511_v32 = vsub.f32 0.0, %v1424_v28  ;;  %v3946_v27 = vld [vmem:[%s5519_s3 + $0x404] ss:$16 sps:$4 sm:$0xff]  }
 0x148   :  { %v1385_v33 = vpop.f32.mrf.mxu0  ;;  %v1426_v34 = vpop.f32.mrf.mxu1  ;;  %v1726_v28 = vld [vmem:[%s5519_s3 + $0x540] sm:$0x33] }
 0x149   :  { %4125 = vpow2.f32 %v1516_v31  ;;  %v1518_v35 = vmul.f32 1.442695, %v1511_v32  ;;  %v3514_v42 = vcombine.low %v1726_v28, %v1726_v28 }
 0x14b   :  { %4127 = vpow2.f32 %v1518_v35  ;;  %v2606_v43 = vsel %vm2604_vm0, %v3514_v42, 0  ;;  %v3996_v42 = vld [vmem:[%s5519_s3 + $0x4c] ss:$16 sps:$4 sm:$0xff]  }
 0x156   :  { %v4126_v36 = vpop.eup %4125 }
 0x157   :  { %v1528_v37 = vadd.f32 1.0, %v4126_v36 }
 0x158   :  { %v4128_v38 = vpop.eup %4127 }
 0x159   :  { %4129 = vrcp.f32 %v1528_v37  ;;  %v1529_v39 = vadd.f32 1.0, %v4128_v38  ;;  %v3944_v38 = vld [vmem:[%s5519_s3 + $0x400] ss:$16 sps:$4 sm:$0xff]  }
 0x15b   :  { %4131 = vrcp.f32 %v1529_v39  ;;  %v3515_v39 = vcombine.high %v1726_v28, %v1726_v28  ;;  %v3973_v28 = vld [vmem:[%s5519_s3 + $0x2c8] ss:$16 sps:$4 sm:$0xff]  }
 0x166   :  { %v4130_v45 = vpop.eup %4129 }
 0x167   :  { %v1540_v49 = vmul.f32 %v4130_v45, %v1299_v44  ;;  %v3957_v44 = vld [vmem:[%s5519_s3 + $0x524] ss:$16 sps:$4 sm:$0xff]   ;;  %v3955_v45 = vld [vmem:[%s5519_s3 + $0x520] ss:$16 sps:$4 sm:$0xff]  }
 0x168   :  { %v4132_v50 = vpop.eup %4131 }
 0x169   :  { %v1541_v51 = vmul.f32 %v4132_v50, %v1301_v46  ;;  %v1546_v55 = vmax.f32 %v1540_v49, 0.0  ;;  %v3963_v46 = vld [vmem:[%s5519_s3 + $0x504] ss:$16 sps:$4 sm:$0xff]   ;;  %v3961_v49 = vld [vmem:[%s5519_s3 + $0x500] ss:$16 sps:$4 sm:$0xff]  }
 0x16b   :  { %v1547_v56 = vmax.f32 %v1541_v51, 0.0  ;;  %v5072_v59 = vpack.c.bf16 %v1546_v55, %v1546_v55  ;;  %v3969_v51 = vld [vmem:[%s5519_s3 + $0x2ec] ss:$16 sps:$4 sm:$0xff]  }
 0x16d   :  { %v5067_v57 = vpack.c.bf16 %v1547_v56, %v1547_v56 }
 0x16f   :  { %2649 = vmatprep.mubr.bf16.mxu0 %v5067_v57 }
 0x170   :  { %2650 = vmatmul.mubr.bf16.vlgmr.msra.gmra.mxu0 %v5072_v59 }
 0x171   :  { %2700 = vmatpush1.bf16.msra.mxu0 %v3902_v58 }
 0x172   :  { %2701 = vmatprep.subr.bf16.mxu0 %v3910_v47 }
 0x175   :  { %2702 = vmatpush1.bf16.msra.mxu0 %v3908_v53 }
 0x176   :  { %2703 = vmatprep.subr.bf16.mxu0 %v3916_v60 }
 0x179   :  { %2704 = vmatpush1.bf16.msra.mxu0 %v3914_v61 }
 0x17a   :  { %2705 = vmatprep.subr.bf16.mxu0 %v3922_v62  ;;  %v262_v62 = vsub.s32 4, %v5040_v17 }
 0x17c   :  { %v263_v1 = vrot.slane %v5047_v20, %v262_v62  ;;  %v4015_v62 = vld [vmem:[%s5519_s3 + $0x3e8] ss:$16 sps:$4 sm:$0xff]  }
 0x17d   :  { %2706 = vmatpush1.bf16.msra.mxu0 %v3920_v63  ;;  %v266_v63 = vsub.s32 5, %v5040_v17 }
 0x17e   :  { %2707 = vmatprep.subr.bf16.mxu0 %v3928_v0  ;;  %v255_v0 = vrot.slane %v5047_v20, %v5101_v2 }
 0x181   :  { %2708 = vmatpush1.bf16.msra.mxu0 %v3926_v3  ;;  %v259_v3 = vrot.slane %v5047_v20, %v5110_v6 }
 0x182   :  { %v1462_v12 = vpop.f32.mrf.mxu0  ;;  %v1503_v5 = vpop.f32.mrf.mxu1  ;;  %2709 = vmatprep.subr.bf16.mxu0 %v3934_v4  ;;  %v267_v4 = vrot.slane %v5047_v20, %v266_v63  ;;  %v4020_v63 = vld [vmem:[%s5519_s3 + $0x1cc] ss:$16 sps:$4 sm:$0xff]  }
 0x183   :  { %v1463_v14 = vadd.f32 %v1462_v12, %v279_v7  ;;  %v1504_v15 = vadd.f32 %v1503_v5, %v287_v8  ;;  %v1340_v7 = vadd.f32 %v4962_v48, %v255_v0  ;;  %v3964_v48 = vld [vmem:[%s5519_s3 + $0xe8] ss:$16 sps:$4 sm:$0xff]   ;;  %v4023_v0 = vld [vmem:[%s5519_s3 + $0x3cc] ss:$16 sps:$4 sm:$0xff]  }
 0x184   :  { %v1464_v16 = vpop.f32.mrf.mxu0  ;;  %v1505_v18 = vpop.f32.mrf.mxu1  ;;  %v1383_v5 = vadd.f32 %v5053_v25, %v267_v4  ;;  %v4026_v4 = vld [vmem:[%s5519_s3 + $0x1ac] ss:$16 sps:$4 sm:$0xff]  }
 0x185   :  { %v1512_v19 = vsub.f32 0.0, %v1463_v14  ;;  %v1514_v52 = vsub.f32 0.0, %v1504_v15  ;;  %v1465_v21 = vadd.f32 %v1464_v16, %v283_v9  ;;  %v1506_v23 = vadd.f32 %v1505_v18, %v291_v10  ;;  %2710 = vmatpush1.bf16.msra.mxu0 %v3932_v11 }
 0x186   :  { %v1466_v26 = vpop.f32.mrf.mxu0  ;;  %2711 = vmatprep.subr.bf16.mxu0 %v3940_v13  ;;  %v1507_v29 = vpop.f32.mrf.mxu1  ;;  %v1381_v9 = vadd.f32 %v5051_v22, %v263_v1  ;;  %v1342_v11 = vadd.f32 %v4975_v54, %v259_v3  ;;  %v3967_v54 = vld [vmem:[%s5519_s3 + $0x2e8] ss:$16 sps:$4 sm:$0xff]  }
 0x187   :  { %v1520_v30 = vmul.f32 1.442695, %v1512_v19  ;;  %v1524_v31 = vmul.f32 1.442695, %v1514_v52  ;;  %v1513_v32 = vsub.f32 0.0, %v1465_v21  ;;  %v1515_v33 = vsub.f32 0.0, %v1506_v23 }
 0x188   :  { %v1467_v34 = vpop.f32.mrf.mxu0  ;;  %v1508_v35 = vpop.f32.mrf.mxu1  ;;  %v3975_v26 = vld [vmem:[%s5519_s3 + $0x2cc] ss:$16 sps:$4 sm:$0xff]   ;;  %v4018_v1 = vld [vmem:[%s5519_s3 + $0x1c8] ss:$16 sps:$4 sm:$0xff]  }
 0x189   :  { %4133 = vpow2.f32 %v1520_v30  ;;  %v1522_v36 = vmul.f32 1.442695, %v1513_v32  ;;  %v1526_v37 = vmul.f32 1.442695, %v1515_v33  ;;  %2712 = vmatpush1.bf16.msra.mxu0 %v3938_v24  ;;  %v3972_v24 = vld [vmem:[%s5519_s3 + $0xcc] ss:$16 sps:$4 sm:$0xff]  }
 0x18a   :  { %4135 = vpow2.f32 %v1524_v31  ;;  %2713 = vmatprep.subr.bf16.mxu0 %v3946_v27  ;;  %v3970_v27 = vld [vmem:[%s5519_s3 + $0xc8] ss:$16 sps:$4 sm:$0xff]   ;;  %v3978_v29 = vld [vmem:[%s5519_s3 + $0xac] ss:$16 sps:$4 sm:$0xff]  }
 0x18b   :  { %4137 = vpow2.f32 %v1522_v36  ;;  %v3981_v30 = vld [vmem:[%s5519_s3 + $0x2ac] ss:$16 sps:$4 sm:$0xff]   ;;  %v3979_v31 = vld [vmem:[%s5519_s3 + $0x2a8] ss:$16 sps:$4 sm:$0xff]  }
 0x18c   :  { %4139 = vpow2.f32 %v1526_v37  ;;  %v3984_v32 = vld [vmem:[%s5519_s3 + $0x8c] ss:$16 sps:$4 sm:$0xff]   ;;  %v3982_v34 = vld [vmem:[%s5519_s3 + $0x88] ss:$16 sps:$4 sm:$0xff]  }
 0x18d   :  { %2714 = vmatpush1.bf16.msra.mxu0 %v3944_v38  ;;  %v3987_v33 = vld [vmem:[%s5519_s3 + $0x28c] ss:$16 sps:$4 sm:$0xff]   ;;  %v3985_v35 = vld [vmem:[%s5519_s3 + $0x288] ss:$16 sps:$4 sm:$0xff]  }
 0x18e   :  { %3518 = vmatprep.subr.msk.bf16.mxu0 %vm2604_vm0, %v3515_v39  ;;  %v3990_v36 = vld [vmem:[%s5519_s3 + $0x6c] ss:$16 sps:$4 sm:$0xff]   ;;  %v3988_v38 = vld [vmem:[%s5519_s3 + $0x68] ss:$16 sps:$4 sm:$0xff]  }
 0x18f   :  { %v3993_v37 = vld [vmem:[%s5519_s3 + $0x26c] ss:$16 sps:$4 sm:$0xff]   ;;  %v3991_v39 = vld [vmem:[%s5519_s3 + $0x268] ss:$16 sps:$4 sm:$0xff]  }
 0x190   :  { %v4021_v3 = vld [vmem:[%s5519_s3 + $0x3c8] ss:$16 sps:$4 sm:$0xff]  }
 0x191   :  { %2726 = vmatpush2.bf16.msra.mxu0 %v2606_v43  ;;  %v3999_v43 = vld [vmem:[%s5519_s3 + $0x24c] ss:$16 sps:$4 sm:$0xff]  }
 0x192   :  { %2727 = vmatprep.subr.bf16.mxu0 %v3957_v44  ;;  %v3994_v44 = vld [vmem:[%s5519_s3 + $0x48] ss:$16 sps:$4 sm:$0xff]  }
 0x195   :  { %2728 = vmatpush2.bf16.msra.mxu0 %v3955_v45  ;;  %v3997_v45 = vld [vmem:[%s5519_s3 + $0x248] ss:$16 sps:$4 sm:$0xff]  }
 0x196   :  { %v4134_v50 = vpop.eup %4133  ;;  %2729 = vmatprep.subr.bf16.mxu0 %v3963_v46  ;;  %v4002_v46 = vld [vmem:[%s5519_s3 + $0x2c] ss:$16 sps:$4 sm:$0xff]  }
 0x197   :  { %v4136_v55 = vpop.eup %4135  ;;  %v1530_v56 = vadd.f32 1.0, %v4134_v50  ;;  %v4000_v50 = vld [vmem:[%s5519_s3 + $0x28] ss:$16 sps:$4 sm:$0xff]  }
 0x198   :  { %v4138_v58 = vpop.eup %4137  ;;  %v1532_v47 = vadd.f32 1.0, %v4136_v55  ;;  %v4008_v55 = vld [vmem:[%s5519_s3 + $0xc] ss:$16 sps:$4 sm:$0xff]  }
 0x199   :  { %v4140_v53 = vpop.eup %4139  ;;  %4141 = vrcp.f32 %v1530_v56  ;;  %v1531_v60 = vadd.f32 1.0, %v4138_v58  ;;  %2730 = vmatpush2.bf16.msra.mxu0 %v3961_v49  ;;  %v4005_v49 = vld [vmem:[%s5519_s3 + $0x22c] ss:$16 sps:$4 sm:$0xff]   ;;  %v4006_v58 = vld [vmem:[%s5519_s3 + $0x8] ss:$16 sps:$4 sm:$0xff]  }
 0x19a   :  { %4143 = vrcp.f32 %v1532_v47  ;;  %v1533_v61 = vadd.f32 1.0, %v4140_v53  ;;  %2781 = vmatprep.subr.bf16.mxu0 %v3969_v51  ;;  %v4003_v51 = vld [vmem:[%s5519_s3 + $0x228] ss:$16 sps:$4 sm:$0xff]   ;;  %v4011_v56 = vld [vmem:[%s5519_s3 + $0x20c] ss:$16 sps:$4 sm:$0xff]  }
 0x19b   :  { %4145 = vrcp.f32 %v1531_v60  ;;  %v4009_v47 = vld [vmem:[%s5519_s3 + $0x208] ss:$16 sps:$4 sm:$0xff]   ;;  %v4014_v53 = vld [vmem:[%s5519_s3 + $0x1ec] ss:$16 sps:$4 sm:$0xff]  }
 0x19c   :  { %4147 = vrcp.f32 %v1533_v61  ;;  %v4017_v60 = vld [vmem:[%s5519_s3 + $0x3ec] ss:$16 sps:$4 sm:$0xff]   ;;  %v4012_v61 = vld [vmem:[%s5519_s3 + $0x1e8] ss:$16 sps:$4 sm:$0xff]  }
 0x1a6   :  { %v4142_v8 = vpop.eup %4141 }
 0x1a7   :  { %v4144_v10 = vpop.eup %4143  ;;  %v1542_v12 = vmul.f32 %v4142_v8, %v1340_v7  ;;  %v4029_v7 = vld [vmem:[%s5519_s3 + $0x3ac] ss:$16 sps:$4 sm:$0xff]   ;;  %v4024_v8 = vld [vmem:[%s5519_s3 + $0x1a8] ss:$16 sps:$4 sm:$0xff]  }
 0x1a8   :  { %v4146_v17 = vpop.eup %4145  ;;  %v1544_v13 = vmul.f32 %v4144_v10, %v1381_v9  ;;  %v4027_v9 = vld [vmem:[%s5519_s3 + $0x3a8] ss:$16 sps:$4 sm:$0xff]   ;;  %v4032_v10 = vld [vmem:[%s5519_s3 + $0x18c] ss:$16 sps:$4 sm:$0xff]  }
 0x1a9   :  { %v4148_v14 = vpop.eup %4147  ;;  %v1543_v15 = vmul.f32 %v4146_v17, %v1342_v11  ;;  %v1548_v18 = vmax.f32 %v1542_v12, 0.0  ;;  %v4035_v11 = vld [vmem:[%s5519_s3 + $0x38c] ss:$16 sps:$4 sm:$0xff]   ;;  %v4030_v12 = vld [vmem:[%s5519_s3 + $0x188] ss:$16 sps:$4 sm:$0xff]  }
 0x1aa   :  { %v1545_v16 = vmul.f32 %v4148_v14, %v1383_v5  ;;  %v1550_v52 = vmax.f32 %v1544_v13, 0.0  ;;  %v4033_v17 = vld [vmem:[%s5519_s3 + $0x388] ss:$16 sps:$4 sm:$0xff]   ;;  %v4038_v5 = vld [vmem:[%s5519_s3 + $0x16c] ss:$16 sps:$4 sm:$0xff]  }
 0x1ab   :  { %v1549_v19 = vmax.f32 %v1543_v15, 0.0  ;;  %v5171_v25 = vpack.c.bf16 %v1548_v18, %v1548_v18  ;;  %v4041_v13 = vld [vmem:[%s5519_s3 + $0x36c] ss:$16 sps:$4 sm:$0xff]   ;;  %v4036_v14 = vld [vmem:[%s5519_s3 + $0x168] ss:$16 sps:$4 sm:$0xff]  }
 0x1ac   :  { %v1551_v20 = vmax.f32 %v1545_v16, 0.0  ;;  %v5173_v23 = vpack.c.bf16 %v1550_v52, %v1550_v52  ;;  %v4039_v15 = vld [vmem:[%s5519_s3 + $0x368] ss:$16 sps:$4 sm:$0xff]   ;;  %v4044_v16 = vld [vmem:[%s5519_s3 + $0x14c] ss:$16 sps:$4 sm:$0xff]  }
 0x1ad   :  { %v1555_v21 = vpack.c.bf16 %v1549_v19, %v1549_v19  ;;  %v4047_v18 = vld [vmem:[%s5519_s3 + $0x34c] ss:$16 sps:$4 sm:$0xff]   ;;  %v4042_v19 = vld [vmem:[%s5519_s3 + $0x148] ss:$16 sps:$4 sm:$0xff]  }
 0x1ae   :  { %v5166_v22 = vpack.c.bf16 %v1551_v20, %v1551_v20  ;;  %v4045_v52 = vld [vmem:[%s5519_s3 + $0x348] ss:$16 sps:$4 sm:$0xff]   ;;  %v4050_v20 = vld [vmem:[%s5519_s3 + $0x12c] ss:$16 sps:$4 sm:$0xff]  }
 0x1af   :  { %2690 = vmatprep.mubr.bf16.mxu1 %v1555_v21 }
 0x1b0   :  { %3519 = vmatprep.mubr.msk.bf16.mxu0 %vm2600_vm1, %v5166_v22  ;;  %2691 = vmatmul.mubr.bf16.vlgmr.msra.gmra.mxu1 %v5171_v25 }
 0x1b1   :  { %2732 = vmatmul.mubr.bf16.vlgmr.msra.gmra.mxu0 %v5173_v23  ;;  %2741 = vmatpush1.bf16.msra.mxu1 %v3964_v48  ;;  %v4048_v48 = vld [vmem:[%s5519_s3 + $0x128] ss:$16 sps:$4 sm:$0xff]  }
 0x1b2   :  { %2782 = vmatpush1.bf16.msra.mxu0 %v3967_v54  ;;  %2772 = vmatprep.mubr.bf16.mxu1 %v5067_v57  ;;  %v3976_v57 = vld [vmem:[%s5519_s3 + $0xa8] ss:$16 sps:$4 sm:$0xff]  }
 0x1b3   :  { %2813 = vmatprep.mubr.bf16.mxu0 %v1555_v21  ;;  %2742 = vmatprep.subr.bf16.mxu1 %v3972_v24  ;;  %v4053_v21 = vld [vmem:[%s5519_s3 + $0x32c] ss:$16 sps:$4 sm:$0xff]   ;;  %v4051_v54 = vld [vmem:[%s5519_s3 + $0x328] ss:$16 sps:$4 sm:$0xff]  }
 0x1b4   :  { %2783 = vmatprep.subr.bf16.mxu0 %v3975_v26  ;;  %v4056_v24 = vld [vmem:[%s5519_s3 + $0x10c] ss:$16 sps:$4 sm:$0xff]  }
 0x1b5   :  { %2743 = vmatpush1.bf16.msra.mxu1 %v3970_v27  ;;  %v4059_v26 = vld [vmem:[%s5519_s3 + $0x30c] ss:$16 sps:$4 sm:$0xff]   ;;  %v4054_v27 = vld [vmem:[%s5519_s3 + $0x108] ss:$16 sps:$4 sm:$0xff]  }
 0x1b6   :  { %2784 = vmatpush1.bf16.msra.mxu0 %v3973_v28  ;;  %2744 = vmatprep.subr.bf16.mxu1 %v3978_v29  ;;  %v4057_v28 = vld [vmem:[%s5519_s3 + $0x308] ss:$16 sps:$4 sm:$0xff]   ;;  %v4062_v29 = vld [vmem:[%s5519_s3 + $0x4ec] ss:$16 sps:$4 sm:$0xff]  }
 0x1b7   :  { %2785 = vmatprep.subr.bf16.mxu0 %v3981_v30  ;;  %v4060_v30 = vld [vmem:[%s5519_s3 + $0x4e8] ss:$16 sps:$4 sm:$0xff]  }
 0x1b9   :  { %2745 = vmatpush1.bf16.msra.mxu1 %v3976_v57  ;;  %v4065_v57 = vld [vmem:[%s5519_s3 + $0x4cc] ss:$16 sps:$4 sm:$0xff]  }
 0x1ba   :  { %2786 = vmatpush1.bf16.msra.mxu0 %v3979_v31  ;;  %2746 = vmatprep.subr.bf16.mxu1 %v3984_v32  ;;  %v4063_v31 = vld [vmem:[%s5519_s3 + $0x4c8] ss:$16 sps:$4 sm:$0xff]   ;;  %v4068_v32 = vld [vmem:[%s5519_s3 + $0x4ac] ss:$16 sps:$4 sm:$0xff]  }
 0x1bb   :  { %2787 = vmatprep.subr.bf16.mxu0 %v3987_v33  ;;  %v4074_v33 = vld [vmem:[%s5519_s3 + $0x46c] ss:$16 sps:$4 sm:$0xff]  }
 0x1bd   :  { %2747 = vmatpush1.bf16.msra.mxu1 %v3982_v34  ;;  %v4072_v34 = vld [vmem:[%s5519_s3 + $0x468] ss:$16 sps:$4 sm:$0xff]  }
 0x1be   :  { %2788 = vmatpush1.bf16.msra.mxu0 %v3985_v35  ;;  %2748 = vmatprep.subr.bf16.mxu1 %v3990_v36  ;;  %v4077_v35 = vld [vmem:[%s5519_s3 + $0x44c] ss:$16 sps:$4 sm:$0xff]   ;;  %v4075_v36 = vld [vmem:[%s5519_s3 + $0x448] ss:$16 sps:$4 sm:$0xff]  }
 0x1bf   :  { %2789 = vmatprep.subr.bf16.mxu0 %v3993_v37  ;;  %v4080_v37 = vld [vmem:[%s5519_s3 + $0x42c] ss:$16 sps:$4 sm:$0xff]  }
 0x1c1   :  { %2749 = vmatpush1.bf16.msra.mxu1 %v3988_v38  ;;  %v4078_v38 = vld [vmem:[%s5519_s3 + $0x428] ss:$16 sps:$4 sm:$0xff]  }
 0x1c2   :  { %2790 = vmatpush1.bf16.msra.mxu0 %v3991_v39  ;;  %2750 = vmatprep.subr.bf16.mxu1 %v3996_v42  ;;  %v4083_v39 = vld [vmem:[%s5519_s3 + $0x40c] ss:$16 sps:$4 sm:$0xff]  }
 0x1c3   :  { %2791 = vmatprep.subr.bf16.mxu0 %v3999_v43  ;;  %v1727_v42 = vld [vmem:[%s5519_s3 + $0x548] sm:$0x33] }
 0x1c4   :  { %v4081_v43 = vld [vmem:[%s5519_s3 + $0x408] ss:$16 sps:$4 sm:$0xff]  }
 0x1c5   :  { %2751 = vmatpush1.bf16.msra.mxu1 %v3994_v44  ;;  %v3517_v44 = vcombine.high %v1727_v42, %v1727_v42 }
 0x1c6   :  { %2792 = vmatpush1.bf16.msra.mxu0 %v3997_v45  ;;  %2752 = vmatprep.subr.bf16.mxu1 %v4002_v46  ;;  %v3516_v45 = vcombine.low %v1727_v42, %v1727_v42 }
 0x1c7   :  { %2793 = vmatprep.subr.bf16.mxu0 %v4005_v49  ;;  %v4088_v49 = vld [vmem:[%s5519_s3 + $0x52c] ss:$16 sps:$4 sm:$0xff]  }
 0x1c8   :  { %v2612_v46 = vsel %vm2604_vm0, %v3516_v45, 0 }
 0x1c9   :  { %2753 = vmatpush1.bf16.msra.mxu1 %v4000_v50  ;;  %v4086_v50 = vld [vmem:[%s5519_s3 + $0x528] ss:$16 sps:$4 sm:$0xff]  }
 0x1ca   :  { %2794 = vmatpush1.bf16.msra.mxu0 %v4003_v51  ;;  %2754 = vmatprep.subr.bf16.mxu1 %v4008_v55  ;;  %v4091_v51 = vld [vmem:[%s5519_s3 + $0x50c] ss:$16 sps:$4 sm:$0xff]   ;;  %v4089_v55 = vld [vmem:[%s5519_s3 + $0x508] ss:$16 sps:$4 sm:$0xff]  }
 0x1cb   :  { %2795 = vmatprep.subr.bf16.mxu0 %v4011_v56 }
 0x1cd   :  { %2755 = vmatpush1.bf16.msra.mxu1 %v4006_v58 }
 0x1ce   :  { %2796 = vmatpush1.bf16.msra.mxu0 %v4009_v47  ;;  %2756 = vmatprep.subr.bf16.mxu1 %v4014_v53 }
 0x1cf   :  { %2797 = vmatprep.subr.bf16.mxu0 %v4017_v60  ;;  %v4094_v60 = vld [vmem:[%s5521_s5 + $0x74] ss:$8 sps:$4 sm:$0xff]  }
 0x1d1   :  { %2757 = vmatpush2.bf16.msra.mxu1 %v4012_v61  ;;  %v4092_v61 = vld [vmem:[%s5521_s5 + $0x70] ss:$8 sps:$4 sm:$0xff]  }
 0x1d2   :  { %2798 = vmatpush2.bf16.msra.mxu0 %v4015_v62  ;;  %2758 = vmatprep.subr.bf16.mxu1 %v4020_v63  ;;  %v4097_v62 = vld [vmem:[%s5521_s5 + $0x64] ss:$8 sps:$4 sm:$0xff]   ;;  %v4095_v63 = vld [vmem:[%s5521_s5 + $0x60] ss:$8 sps:$4 sm:$0xff]  }
 0x1d3   :  { %2799 = vmatprep.subr.bf16.mxu0 %v4023_v0 }
 0x1d5   :  { %2759 = vmatpush2.bf16.msra.mxu1 %v4018_v1  ;;  %v4100_v1 = vld [vmem:[%s5521_s5 + $0x54] ss:$8 sps:$4 sm:$0xff]  }
 0x1d6   :  { %2800 = vmatpush2.bf16.msra.mxu0 %v4021_v3  ;;  %2760 = vmatprep.subr.bf16.mxu1 %v4026_v4  ;;  %v4098_v3 = vld [vmem:[%s5521_s5 + $0x50] ss:$8 sps:$4 sm:$0xff]  }
 0x1d7   :  { %2801 = vmatprep.subr.bf16.mxu0 %v4029_v7 }
 0x1d9   :  { %2761 = vmatpush2.bf16.msra.mxu1 %v4024_v8  ;;  %v4103_v8 = vld [vmem:[%s5521_s5 + $0x44] ss:$8 sps:$4 sm:$0xff]  }
 0x1da   :  { %2802 = vmatpush2.bf16.msra.mxu0 %v4027_v9  ;;  %2762 = vmatprep.subr.bf16.mxu1 %v4032_v10  ;;  %v4101_v10 = vld [vmem:[%s5521_s5 + $0x40] ss:$8 sps:$4 sm:$0xff]  }
 0x1db   :  { %2803 = vmatprep.subr.bf16.mxu0 %v4035_v11 }
 0x1dd   :  { %2763 = vmatpush2.bf16.msra.mxu1 %v4030_v12 }
 0x1de   :  { %2804 = vmatpush2.bf16.msra.mxu0 %v4033_v17  ;;  %2764 = vmatprep.subr.bf16.mxu1 %v4038_v5 }
 0x1df   :  { %2805 = vmatprep.subr.bf16.mxu0 %v4041_v13 }
 0x1e1   :  { %2765 = vmatpush2.bf16.msra.mxu1 %v4036_v14 }
 0x1e2   :  { %2806 = vmatpush2.bf16.msra.mxu0 %v4039_v15  ;;  %2766 = vmatprep.subr.bf16.mxu1 %v4044_v16  ;;  %v4106_v16 = vld [vmem:[%s5521_s5 + $0x34] ss:$8 sps:$4 sm:$0xff]  }
 0x1e3   :  { %2807 = vmatprep.subr.bf16.mxu0 %v4047_v18 }
 0x1e5   :  { %2767 = vmatpush2.bf16.msra.mxu1 %v4042_v19  ;;  %v4104_v19 = vld [vmem:[%s5521_s5 + $0x30] ss:$8 sps:$4 sm:$0xff]  }
 0x1e6   :  { %2808 = vmatpush2.bf16.msra.mxu0 %v4045_v52  ;;  %2768 = vmatprep.subr.bf16.mxu1 %v4050_v20 }
 0x1e7   :  { %2809 = vmatprep.subr.bf16.mxu0 %v4053_v21  ;;  %v4109_v21 = vld [vmem:[%s5521_s5 + $0x24] ss:$8 sps:$4 sm:$0xff]  }
 0x1e9   :  { %2769 = vmatpush2.bf16.msra.mxu1 %v4048_v48 }
 0x1ea   :  { %2810 = vmatpush2.bf16.msra.mxu0 %v4051_v54  ;;  %2770 = vmatprep.subr.bf16.mxu1 %v4056_v24  ;;  %v4107_v54 = vld [vmem:[%s5521_s5 + $0x20] ss:$8 sps:$4 sm:$0xff]  }
 0x1eb   :  { %2811 = vmatprep.subr.bf16.mxu0 %v4059_v26  ;;  %v4112_v26 = vld [vmem:[%s5521_s5 + $0x14] ss:$8 sps:$4 sm:$0xff]  }
 0x1ed   :  { %2771 = vmatpush2.bf16.msra.mxu1 %v4054_v27  ;;  %v4110_v27 = vld [vmem:[%s5521_s5 + $0x10] ss:$8 sps:$4 sm:$0xff]  }
 0x1ee   :  { %2812 = vmatpush2.bf16.msra.mxu0 %v4057_v28  ;;  %2822 = vmatprep.subr.bf16.mxu1 %v4062_v29  ;;  %v4115_v28 = vld [vmem:[%s5521_s5 + $0x4] ss:$8 sps:$4 sm:$0xff]   ;;  %v4113_v29 = vld [vmem:[%s5521_s5] ss:$8 sps:$4 sm:$0xff]  }
 0x1ef   :  { %3001 = vmatprep.subr.bf16.mxu0 %v4094_v60 }
 0x1f0   :  { %2773 = vmatmul.mubr.bf16.vlgmr.msra.gmra.mxu1 %v5072_v59  ;;  %v4066_v59 = vld [vmem:[%s5519_s3 + $0x4a8] ss:$16 sps:$4 sm:$0xff]  }
 0x1f1   :  { %2814 = vmatmul.mubr.bf16.vlgmr.msra.gmra.mxu0 %v5171_v25  ;;  %2823 = vmatpush1.bf16.msra.mxu1 %v4060_v30  ;;  %v4071_v25 = vld [vmem:[%s5519_s3 + $0x48c] ss:$16 sps:$4 sm:$0xff]  }
 0x1f2   :  { %3521 = vmatprep.mubr.msk.bf16.mxu1 %vm2600_vm1, %v5166_v22  ;;  %2824 = vmatprep.subr.bf16.mxu1 %v4065_v57  ;;  %v4069_v22 = vld [vmem:[%s5519_s3 + $0x488] ss:$16 sps:$4 sm:$0xff]   ;;  %v4118_v30 = vld [vmem:[%s5521_s5 + $0x84] ss:$8 sps:$4 sm:$0xff]  }
 0x1f3   :  { %3002 = vmatpush1.bf16.msra.mxu0 %v4092_v61  ;;  %v4116_v57 = vld [vmem:[%s5521_s5 + $0x80] ss:$8 sps:$4 sm:$0xff]  }
 0x1f4   :  { %3003 = vmatprep.subr.bf16.mxu0 %v4097_v62 }
 0x1f5   :  { %2825 = vmatpush1.bf16.msra.mxu1 %v4063_v31 }
 0x1f6   :  { %2826 = vmatprep.subr.bf16.mxu1 %v4068_v32 }
 0x1f7   :  { %3004 = vmatpush1.bf16.msra.mxu0 %v4095_v63 }
 0x1f8   :  { %3005 = vmatprep.subr.bf16.mxu0 %v4100_v1 }
 0x1f9   :  { %2827 = vmatpush1.bf16.msra.mxu1 %v4066_v59 }
 0x1fa   :  { %2828 = vmatprep.subr.bf16.mxu1 %v4071_v25 }
 0x1fb   :  { %3006 = vmatpush1.bf16.msra.mxu0 %v4098_v3  ;;  %v4119_v3 = vld [vmem:[%s5523_s7 + $0x10] ss:$8 sps:$4 sm:$0xff]  }
 0x1fc   :  { %3007 = vmatprep.subr.bf16.mxu0 %v4103_v8  ;;  %v4187_v8 = vmov 0  }
 0x1fd   :  { %2829 = vmatpush1.bf16.msra.mxu1 %v4069_v22 }
 0x1fe   :  { %2830 = vmatprep.subr.bf16.mxu1 %v4074_v33 }
 0x1ff   :  { %3008 = vmatpush1.bf16.msra.mxu0 %v4101_v10  ;;  %v2895_v10 = vld [vmem:[%s5522_s6] sm:$0x3] }
 0x200   :  { %3009 = vmatprep.subr.bf16.mxu0 %v4106_v16 }
 0x201   :  { %2831 = vmatpush1.bf16.msra.mxu1 %v4072_v34 }
 0x202   :  { %2832 = vmatprep.subr.bf16.mxu1 %v4077_v35 }
 0x203   :  { %3010 = vmatpush1.bf16.msra.mxu0 %v4104_v19 }
 0x204   :  { %3011 = vmatprep.subr.bf16.mxu0 %v4109_v21 }
 0x205   :  { %2833 = vmatpush1.bf16.msra.mxu1 %v4075_v36 }
 0x206   :  { %2834 = vmatprep.subr.bf16.mxu1 %v4080_v37 }
 0x207   :  { %3012 = vmatpush1.bf16.msra.mxu0 %v4107_v54 }
 0x208   :  { %3013 = vmatprep.subr.bf16.mxu0 %v4112_v26  ;;  %v3054_v26 = vld [vmem:[%s5524_s8] sm:$0x3]  ;;  %s4165_s8 = scalar_lea.vmem %s3146_s12, 32 }
 0x209   :  { %2835 = vmatpush1.bf16.msra.mxu1 %v4078_v38  ;;  %p4166_p0 = scmp.ne.s32.totalorder %s3146_s12, %s4165_s8  ;;  %p4171_p2 = scmp.lt.s32.totalorder %s4165_s8, %s4165_s8 }
 0x20a   :  { %2836 = vmatprep.subr.bf16.mxu1 %v4083_v39 }
 0x20b   :  { %3014 = vmatpush1.bf16.msra.mxu0 %v4110_v27  ;;  %v3063_v27 = vrot.slane %v3054_v26, %v5059_v41  ;;  %p4172_p3 = por %p4171_p2, %p4170_p1 }
 0x20c   :  { %3015 = vmatprep.subr.bf16.mxu0 %v4115_v28 }
 0x20d   :  { %2837 = vmatpush1.bf16.msra.mxu1 %v4081_v43  ;;  %p4173_p4 = pnand %p4172_p3, %p4166_p0 }
 0x20e   :  { %3520 = vmatprep.subr.msk.bf16.mxu1 %vm2604_vm0, %v3517_v44 }
 0x20f   :  { %3016 = vmatpush1.bf16.msra.mxu0 %v4113_v29 }
 0x210   :  { %3031 = vmatprep.subr.bf16.mxu0 %v4118_v30 }
 0x211   :  { %2849 = vmatpush2.bf16.msra.mxu1 %v2612_v46 }
 0x212   :  { %2850 = vmatprep.subr.bf16.mxu1 %v4088_v49 }
 0x213   :  { %3032 = vmatpush2.bf16.msra.mxu0 %v4116_v57 }
 0x215   :  { %2851 = vmatpush2.bf16.msra.mxu1 %v4086_v50 }
 0x216   :  { %2852 = vmatprep.subr.bf16.mxu1 %v4091_v51 }
 0x219   :  { %2853 = vmatpush2.bf16.msra.mxu1 %v4089_v55 }
 0x21c   :  { %2855 = vmatmul.mubr.bf16.vlgmr.msra.gmra.mxu1 %v5173_v23  ;;  %v1728_v23 = vld [vmem:[%s5520_s4] sm:$0xf] }
 0x21d   :  { %v1733_v0 = vrot.slane %v1728_v23, %v5056_v40  ;;  %v1737_v4 = vrot.slane %v1728_v23, %v5059_v41  ;;  %v1741_v36 = vrot.slane %v1728_v23, %v5101_v2  ;;  %v1745_v37 = vrot.slane %v1728_v23, %v5110_v6  ;;  %3122 = vmatprep.mubr.bf16.mxu1 %v4187_v8 }
 0x230   :  { %v2651_v56 = vpop.f32.mrf.mxu0 }
 0x231   :  { %v2652_v7 = vadd.f32 %v2651_v56, %v1733_v0 }
 0x232   :  { %v2653_v58 = vpop.f32.mrf.mxu0 }
 0x233   :  { %v2654_v11 = vadd.f32 %v2653_v58, %v1737_v4  ;;  %v4121_v4 = vld [vmem:[%s5523_s7 + $0x14] ss:$8 sps:$4 sm:$0xff]  }
 0x234   :  { %v2655_v47 = vpop.f32.mrf.mxu0  ;;  %3102 = vmatprep.subr.bf16.mxu1 %v4121_v4 }
 0x235   :  { %3103 = vmatpush1.bf16.msra.mxu1 %v4119_v3 }
 0x236   :  { %v2656_v53 = vpop.f32.mrf.mxu0 }
 0x270   :  { %v2692_v9 = vpop.f32.mrf.mxu1 }
 0x271   :  { %v2693_v12 = vadd.f32 %v2692_v9, %v2652_v7  ;;  %v2733_v17 = vpop.f32.mrf.mxu0  ;;  %v4124_v7 = vld [vmem:[%s5523_s7 + $0x4] ss:$8 sps:$4 sm:$0xff]   ;;  %v4122_v9 = vld [vmem:[%s5523_s7] ss:$8 sps:$4 sm:$0xff]  }
 0x272   :  { %v2694_v5 = vpop.f32.mrf.mxu1  ;;  %3104 = vmatprep.subr.bf16.mxu1 %v4124_v7 }
 0x273   :  { %v2734_v13 = vadd.f32 %v2733_v17, %v2693_v12  ;;  %v2695_v14 = vadd.f32 %v2694_v5, %v2654_v11  ;;  %v2735_v15 = vpop.f32.mrf.mxu0  ;;  %3105 = vmatpush1.bf16.msra.mxu1 %v4122_v9  ;;  %v2904_v11 = vrot.slane %v2895_v10, %v5059_v41 }
 0x274   :  { %v2696_v18 = vpop.f32.mrf.mxu1 }
 0x275   :  { %v2736_v52 = vadd.f32 %v2735_v15, %v2695_v14  ;;  %v2737_v20 = vpop.f32.mrf.mxu0 }
 0x276   :  { %v2697_v48 = vpop.f32.mrf.mxu1 }
 0x277   :  { %v2738_v24 = vpop.f32.mrf.mxu0 }
 0x2b0   :  { %v2774_v31 = vpop.f32.mrf.mxu1 }
 0x2b1   :  { %v2815_v32 = vpop.f32.mrf.mxu0  ;;  %v2775_v38 = vadd.f32 %v2774_v31, %v1741_v36 }
 0x2b2   :  { %v2776_v59 = vpop.f32.mrf.mxu1 }
 0x2b3   :  { %v2817_v25 = vpop.f32.mrf.mxu0  ;;  %v2777_v39 = vadd.f32 %v2776_v59, %v1745_v37  ;;  %v2816_v42 = vadd.f32 %v2815_v32, %v2775_v38 }
 0x2b4   :  { %v2778_v22 = vpop.f32.mrf.mxu1 }
 0x2b5   :  { %v2819_v33 = vpop.f32.mrf.mxu0  ;;  %v2818_v44 = vadd.f32 %v2817_v25, %v2777_v39 }
 0x2b6   :  { %v2779_v34 = vpop.f32.mrf.mxu1  ;;  %v3059_v33 = vrot.slane %v3054_v26, %v5056_v40 }
 0x2b7   :  { %v2820_v35 = vpop.f32.mrf.mxu0 }
 0x2dc   :  { %v2856_v43 = vpop.f32.mrf.mxu1 }
 0x2dd   :  { %v2857_v45 = vadd.f32 %v2856_v43, %v2816_v42 }
 0x2de   :  { %v2858_v46 = vpop.f32.mrf.mxu1 }
 0x2df   :  { %v2863_v49 = vsub.f32 0.0, %v2857_v45  ;;  %v2859_v50 = vadd.f32 %v2858_v46, %v2818_v44 }
 0x2e0   :  { %v2860_v51 = vpop.f32.mrf.mxu1 }
 0x2e1   :  { %v2865_v55 = vmul.f32 1.442695, %v2863_v49  ;;  %v2864_v56 = vsub.f32 0.0, %v2859_v50 }
 0x2e2   :  { %v2861_v58 = vpop.f32.mrf.mxu1 }
 0x2e3   :  { %4149 = vpow2.f32 %v2865_v55  ;;  %v2867_v47 = vmul.f32 1.442695, %v2864_v56 }
 0x2e5   :  { %4151 = vpow2.f32 %v2867_v47 }
 0x2f0   :  { %v4150_v53 = vpop.eup %4149 }
 0x2f1   :  { %v2869_v2 = vadd.f32 1.0, %v4150_v53 }
 0x2f2   :  { %v4152_v60 = vpop.eup %4151 }
 0x2f3   :  { %4153 = vrcp.f32 %v2869_v2  ;;  %v2870_v6 = vadd.f32 1.0, %v4152_v60 }
 0x2f5   :  { %4155 = vrcp.f32 %v2870_v6 }
 0x300   :  { %v4154_v61 = vpop.eup %4153 }
 0x301   :  { %v2873_v23 = vmul.f32 %v4154_v61, %v2734_v13 }
 0x302   :  { %v4156_v62 = vpop.eup %4155 }
 0x303   :  { %v2874_v63 = vmul.f32 %v4156_v62, %v2736_v52  ;;  %v2875_v1 = vpack.c.bf16 %v2873_v23, %v2873_v23  ;;  %v2900_v52 = vrot.slane %v2895_v10, %v5056_v40 }
 0x305   :  { %v2876_v0 = vpack.c.bf16 %v2874_v63, %v2874_v63 }
 0x307   :  { %3540 = vmatprep.mubr.msk.bf16.mxu0 %vm2997_vm2, %v2876_v0 }
 0x308   :  { %3034 = vmatmul.mubr.bf16.vlgmr.msra.gmra.mxu0 %v2875_v1 }
 0x3c8   :  { %v3035_v12 = vpop.f32.mrf.mxu0 }
 0x3c9   :  { %v3036_v20 = vadd.f32 %v3035_v12, %v2900_v52 }
 0x3ca   :  { %v3037_v17 = vpop.f32.mrf.mxu0 }
 0x3cb   :  { %v3038_v5 = vadd.f32 %v3037_v17, %v2904_v11 }
 0x3cc   :  { %v3039_v13 = vpop.f32.mrf.mxu0 }
 0x3cd   :  { %v3042_v14 = vsub.f32 0.0, %v3038_v5 }
 0x3ce   :  { %v3040_v15 = vpop.f32.mrf.mxu0 }
 0x3cf   :  { %v3043_v16 = vmul.f32 1.442695, %v3042_v14 }
 0x3d1   :  { %4157 = vpow2.f32 %v3043_v16 }
 0x3de   :  { %v4158_v18 = vpop.eup %4157 }
 0x3df   :  { %v3045_v19 = vadd.f32 1.0, %v4158_v18 }
 0x3e1   :  { %4159 = vrcp.f32 %v3045_v19 }
 0x3ee   :  { %v4160_v21 = vpop.eup %4159 }
 0x3ef   :  { %v3047_v48 = vmul.f32 %v4160_v21, %v3036_v20 }
 0x3f1   :  { %v3048_v54 = vmax.f32 %v3047_v48, 0.0 }
 0x3f3   :  { %v3049_v24 = vpack.c.bf16 %v3048_v54, %v3048_v54 }
 0x3f5   :  { %3545 = vmatmul.mubr.msk.bf16.vlgmr.msra.gmra.mxu1 %vm3086_vm3, %v3049_v24 }
 0x4b5   :  { %v3124_v28 = vpop.f32.mrf.mxu1 }
 0x4b6   :  { %v3125_v34 = vadd.f32 %v3124_v28, %v3059_v33 }
 0x4b7   :  { %v3126_v29 = vpop.f32.mrf.mxu1 }
 0x4b8   :  { %v3127_v30 = vadd.f32 %v3126_v29, %v3063_v27 }
 0x4b9   :  { %v3128_v57 = vpop.f32.mrf.mxu1 }
 0x4ba   :  { %v3131_v31 = vsub.f32 0.0, %v3127_v30 }
 0x4bb   :  { %v3129_v32 = vpop.f32.mrf.mxu1 }
 0x4bc   :  { %v3132_v59 = vmul.f32 1.442695, %v3131_v31 }
 0x4be   :  { %4161 = vpow2.f32 %v3132_v59 }
 0x4cb   :  { %v4162_v25 = vpop.eup %4161 }
 0x4cc   :  { %v3134_v22 = vadd.f32 1.0, %v4162_v25 }
 0x4ce   :  { %4163 = vrcp.f32 %v3134_v22 }
 0x4db   :  { %v4164_v35 = vpop.eup %4163 }
 0x4dc   :  { %v3136_v36 = vmul.f32 %v4164_v35, %v3125_v34 }
 0x4de   :  { %3138 = vst.msk [vmem:[#allocation2] sm:$0x3] %vm3137_vm4, %v3136_v36 }
 0x4df   :  { %4176 = shalt.err (!%p4173_p4)
}
 0x4e0   :  { %3148 = dma.vmem_to_hbm [thread:$0]  %s3146_s12, 32, %s5525_s9, [#allocation3]  }
 0x4e1   :  { %4185 = dma.done.wait [#allocation3], 32  }
 0x4e2   :  { %4186 = vsyncadd [#allocation3], 4294967264 }
 0x4e3   :  { %3152 = vsyncpa [#allocation3], 1 }

// kernel: gated_cnn_forward.1
= control target key start
LH: loop header
LB: loop body
LE: loop exit
PB: predicated region body
PF: predicated region fallthrough
CT: control target
= control target key end

     0   :  { %s5516_s0 = inlined_call_operand.vmem [shape: f32[2,256], index: 0, kind: input, shape index: {}]   ;;  %s5517_s1 = inlined_call_operand.vmem [shape: bf16[256,1444], index: 1, kind: input, shape index: {}]   ;;  %s5518_s2 = inlined_call_operand.vmem [shape: f32[1,1444], index: 2, kind: input, shape index: {}]   ;;  %s5519_s3 = inlined_call_operand.vmem [shape: bf16[676,400], index: 3, kind: input, shape index: {}]   ;;  %s5520_s4 = inlined_call_operand.vmem [shape: f32[1,400], index: 4, kind: input, shape index: {}]   ;;  %s5521_s5 = inlined_call_operand.vmem [shape: bf16[144,160], index: 5, kind: input, shape index: {}]   ;;  %s5522_s6 = inlined_call_operand.vmem [shape: f32[1,160], index: 6, kind: input, shape index: {}]   ;;  %s5523_s7 = inlined_call_operand.vmem [shape: bf16[32,136], index: 7, kind: input, shape index: {}]   ;;  %s5524_s8 = inlined_call_operand.vmem [shape: f32[1,136], index: 8, kind: input, shape index: {}]   ;;  %s5525_s9 = inlined_call_operand.hbm [shape: f32[2,8], index: 9, kind: output, shape index: {}]  }
   0x1   :  { %v3548_v0 = vld [vmem:[%s5517_s1 + $0x2a4] ss:$48 sps:$4 sm:$0xff]   ;;  %v3550_v1 = vld [vmem:[%s5517_s1 + $0x2ac] ss:$48 sps:$4 sm:$0xff]   ;;  %v3552_v2 = vld [vmem:[%s5517_s1 + $0x2a0] ss:$48 sps:$4 sm:$0xff]  }
   0x2   :  { %1264 = vmatprep.subr.bf16.mxu0 %v3548_v0  ;;  %v3553_v3 = vld [vmem:[%s5517_s1 + $0x2a8] ss:$48 sps:$4 sm:$0xff]   ;;  %1305 = vmatprep.subr.bf16.mxu1 %v3550_v1  ;;  %v3554_v4 = vld [vmem:[%s5517_s1 + $0x244] ss:$48 sps:$4 sm:$0xff]   ;;  %v3556_v5 = vld [vmem:[%s5517_s1 + $0x24c] ss:$48 sps:$4 sm:$0xff]  }
   0x3   :  { %1265 = vmatpush1.bf16.msra.mxu0 %v3552_v2  ;;  %1306 = vmatpush1.bf16.msra.mxu1 %v3553_v3  ;;  %v3558_v6 = vld [vmem:[%s5517_s1 + $0x240] ss:$48 sps:$4 sm:$0xff]   ;;  %v3559_v7 = vld [vmem:[%s5517_s1 + $0x248] ss:$48 sps:$4 sm:$0xff]   ;;  %v3560_v8 = vld [vmem:[%s5517_s1 + $0x1e4] ss:$48 sps:$4 sm:$0xff]  }
   0x4   :  { %1266 = vmatprep.subr.bf16.mxu0 %v3554_v4  ;;  %1307 = vmatprep.subr.bf16.mxu1 %v3556_v5  ;;  %v3562_v9 = vld [vmem:[%s5517_s1 + $0x1ec] ss:$48 sps:$4 sm:$0xff]   ;;  %v3564_v10 = vld [vmem:[%s5517_s1 + $0x1e0] ss:$48 sps:$4 sm:$0xff]   ;;  %v3565_v11 = vld [vmem:[%s5517_s1 + $0x1e8] ss:$48 sps:$4 sm:$0xff]  }
   0x5   :  { %v3566_v12 = vld [vmem:[%s5517_s1 + $0x184] ss:$48 sps:$4 sm:$0xff]   ;;  %v3568_v13 = vld [vmem:[%s5517_s1 + $0x18c] ss:$48 sps:$4 sm:$0xff]   ;;  %v3570_v14 = vld [vmem:[%s5517_s1 + $0x180] ss:$48 sps:$4 sm:$0xff]  }
   0x6   :  { %v3571_v15 = vld [vmem:[%s5517_s1 + $0x188] ss:$48 sps:$4 sm:$0xff]   ;;  %v3572_v16 = vld [vmem:[%s5517_s1 + $0x124] ss:$48 sps:$4 sm:$0xff]   ;;  %v3574_v17 = vld [vmem:[%s5517_s1 + $0x12c] ss:$48 sps:$4 sm:$0xff]  }
   0x7   :  { %1267 = vmatpush1.bf16.msra.mxu0 %v3558_v6  ;;  %1308 = vmatpush1.bf16.msra.mxu1 %v3559_v7  ;;  %v3576_v18 = vld [vmem:[%s5517_s1 + $0x120] ss:$48 sps:$4 sm:$0xff]   ;;  %v3577_v19 = vld [vmem:[%s5517_s1 + $0x128] ss:$48 sps:$4 sm:$0xff]   ;;  %v3578_v20 = vld [vmem:[%s5517_s1 + $0xc4] ss:$48 sps:$4 sm:$0xff]  }
   0x8   :  { %1268 = vmatprep.subr.bf16.mxu0 %v3560_v8  ;;  %1309 = vmatprep.subr.bf16.mxu1 %v3562_v9  ;;  %v3580_v21 = vld [vmem:[%s5517_s1 + $0xcc] ss:$48 sps:$4 sm:$0xff]   ;;  %v3582_v22 = vld [vmem:[%s5517_s1 + $0xc0] ss:$48 sps:$4 sm:$0xff]   ;;  %v3583_v23 = vld [vmem:[%s5517_s1 + $0xc8] ss:$48 sps:$4 sm:$0xff]  }
   0x9   :  { %v3584_v24 = vld [vmem:[%s5517_s1 + $0x64] ss:$48 sps:$4 sm:$0xff]   ;;  %v3586_v25 = vld [vmem:[%s5517_s1 + $0x6c] ss:$48 sps:$4 sm:$0xff]   ;;  %v3588_v26 = vld [vmem:[%s5517_s1 + $0x60] ss:$48 sps:$4 sm:$0xff]  }
   0xa   :  { %v3589_v27 = vld [vmem:[%s5517_s1 + $0x68] ss:$48 sps:$4 sm:$0xff]   ;;  %v3590_v28 = vld [vmem:[%s5517_s1 + $0x4] ss:$48 sps:$4 sm:$0xff]   ;;  %v3592_v29 = vld [vmem:[%s5517_s1 + $0xc] ss:$48 sps:$4 sm:$0xff]  }
   0xb   :  { %1269 = vmatpush1.bf16.msra.mxu0 %v3564_v10  ;;  %1310 = vmatpush1.bf16.msra.mxu1 %v3565_v11  ;;  %v3594_v30 = vld [vmem:[%s5517_s1] ss:$48 sps:$4 sm:$0xff]   ;;  %v3595_v31 = vld [vmem:[%s5517_s1 + $0x8] ss:$48 sps:$4 sm:$0xff]   ;;  %v3596_v32 = vld [vmem:[%s5517_s1 + $0x5a4] ss:$48 sps:$4 sm:$0xff]  }
   0xc   :  { %1270 = vmatprep.subr.bf16.mxu0 %v3566_v12  ;;  %1311 = vmatprep.subr.bf16.mxu1 %v3568_v13  ;;  %v3598_v33 = vld [vmem:[%s5517_s1 + $0x5ac] ss:$48 sps:$4 sm:$0xff]   ;;  %v3600_v34 = vld [vmem:[%s5517_s1 + $0x5a0] ss:$48 sps:$4 sm:$0xff]   ;;  %v3601_v35 = vld [vmem:[%s5517_s1 + $0x5a8] ss:$48 sps:$4 sm:$0xff]  }
   0xd   :  { %v3602_v36 = vld [vmem:[%s5517_s1 + $0x544] ss:$48 sps:$4 sm:$0xff]   ;;  %v3604_v37 = vld [vmem:[%s5517_s1 + $0x54c] ss:$48 sps:$4 sm:$0xff]   ;;  %v3606_v38 = vld [vmem:[%s5517_s1 + $0x540] ss:$48 sps:$4 sm:$0xff]  }
   0xe   :  { %v3607_v39 = vld [vmem:[%s5517_s1 + $0x548] ss:$48 sps:$4 sm:$0xff]   ;;  %v3608_v40 = vld [vmem:[%s5517_s1 + $0x4e4] ss:$48 sps:$4 sm:$0xff]   ;;  %v3610_v41 = vld [vmem:[%s5517_s1 + $0x4ec] ss:$48 sps:$4 sm:$0xff]  }
   0xf   :  { %1271 = vmatpush1.bf16.msra.mxu0 %v3570_v14  ;;  %1312 = vmatpush1.bf16.msra.mxu1 %v3571_v15  ;;  %v3612_v42 = vld [vmem:[%s5517_s1 + $0x4e0] ss:$48 sps:$4 sm:$0xff]   ;;  %v3613_v43 = vld [vmem:[%s5517_s1 + $0x4e8] ss:$48 sps:$4 sm:$0xff]   ;;  %v3614_v44 = vld [vmem:[%s5517_s1 + $0x484] ss:$48 sps:$4 sm:$0xff]  }
  0x10   :  { %1272 = vmatprep.subr.bf16.mxu0 %v3572_v16  ;;  %1313 = vmatprep.subr.bf16.mxu1 %v3574_v17  ;;  %v3616_v45 = vld [vmem:[%s5517_s1 + $0x48c] ss:$48 sps:$4 sm:$0xff]   ;;  %v3153_v46 = vld.sshfl [vmem:[%s5516_s0] sm:$0x33 pattern:$0x76325410] }
  0x11   :  { %v3618_v47 = vld [vmem:[%s5517_s1 + $0x480] ss:$48 sps:$4 sm:$0xff]   ;;  %v3619_v48 = vld [vmem:[%s5517_s1 + $0x488] ss:$48 sps:$4 sm:$0xff]   ;;  %v43_v49 = vcombine.high %v3153_v46, %v3153_v46  ;;  %v3620_v50 = vld [vmem:[%s5517_s1 + $0x424] ss:$48 sps:$4 sm:$0xff]   ;;  %v4444_v5 = vpack.c.bf16 %v3153_v46, %v3153_v46 }
  0x12   :  { %v3622_v51 = vld [vmem:[%s5517_s1 + $0x42c] ss:$48 sps:$4 sm:$0xff]   ;;  %v3624_v53 = vld [vmem:[%s5517_s1 + $0x420] ss:$48 sps:$4 sm:$0xff]   ;;  %v3625_v54 = vld [vmem:[%s5517_s1 + $0x428] ss:$48 sps:$4 sm:$0xff]  }
  0x13   :  { %1273 = vmatpush1.bf16.msra.mxu0 %v3576_v18  ;;  %1314 = vmatpush1.bf16.msra.mxu1 %v3577_v19  ;;  %v4392_v52 = vpack.c.bf16 %v43_v49, %v43_v49  ;;  %v3626_v55 = vld [vmem:[%s5517_s1 + $0x3c4] ss:$48 sps:$4 sm:$0xff]   ;;  %v3628_v56 = vld [vmem:[%s5517_s1 + $0x3cc] ss:$48 sps:$4 sm:$0xff]   ;;  %v3630_v57 = vld [vmem:[%s5517_s1 + $0x3c0] ss:$48 sps:$4 sm:$0xff]  }
  0x14   :  { %1274 = vmatprep.subr.bf16.mxu0 %v3578_v20  ;;  %1315 = vmatprep.subr.bf16.mxu1 %v3580_v21  ;;  %v3631_v58 = vld [vmem:[%s5517_s1 + $0x3c8] ss:$48 sps:$4 sm:$0xff]   ;;  %v3632_v59 = vld [vmem:[%s5517_s1 + $0x364] ss:$48 sps:$4 sm:$0xff]   ;;  %v3634_v60 = vld [vmem:[%s5517_s1 + $0x36c] ss:$48 sps:$4 sm:$0xff]  }
  0x15   :  { %1296 = vmatprep.mubr.bf16.mxu0 %v4392_v52  ;;  %1337 = vmatprep.mubr.bf16.mxu1 %v4392_v52  ;;  %v3636_v61 = vld [vmem:[%s5517_s1 + $0x360] ss:$48 sps:$4 sm:$0xff]   ;;  %v3637_v62 = vld [vmem:[%s5517_s1 + $0x368] ss:$48 sps:$4 sm:$0xff]   ;;  %v3638_v63 = vld [vmem:[%s5517_s1 + $0x304] ss:$48 sps:$4 sm:$0xff]  }
  0x16   :  { %v3640_v0 = vld [vmem:[%s5517_s1 + $0x30c] ss:$48 sps:$4 sm:$0xff]   ;;  %v3642_v1 = vld [vmem:[%s5517_s1 + $0x300] ss:$48 sps:$4 sm:$0xff]   ;;  %v3643_v2 = vld [vmem:[%s5517_s1 + $0x308] ss:$48 sps:$4 sm:$0xff]  }
  0x17   :  { %1275 = vmatpush1.bf16.msra.mxu0 %v3582_v22  ;;  %1316 = vmatpush1.bf16.msra.mxu1 %v3583_v23  ;;  %v3646_v3 = vld [vmem:[%s5517_s1 + $0x2b4] ss:$48 sps:$4 sm:$0xff]   ;;  %v3649_v4 = vld [vmem:[%s5517_s1 + $0x2bc] ss:$48 sps:$4 sm:$0xff]   ;;  %v3644_v6 = vld [vmem:[%s5517_s1 + $0x2b0] ss:$48 sps:$4 sm:$0xff]  }
  0x18   :  { %1276 = vmatprep.subr.bf16.mxu0 %v3584_v24  ;;  %1317 = vmatprep.subr.bf16.mxu1 %v3586_v25  ;;  %v3647_v7 = vld [vmem:[%s5517_s1 + $0x2b8] ss:$48 sps:$4 sm:$0xff]   ;;  %v3652_v8 = vld [vmem:[%s5517_s1 + $0x254] ss:$48 sps:$4 sm:$0xff]   ;;  %v3655_v9 = vld [vmem:[%s5517_s1 + $0x25c] ss:$48 sps:$4 sm:$0xff]  }
  0x19   :  { %v3650_v10 = vld [vmem:[%s5517_s1 + $0x250] ss:$48 sps:$4 sm:$0xff]   ;;  %v3653_v11 = vld [vmem:[%s5517_s1 + $0x258] ss:$48 sps:$4 sm:$0xff]   ;;  %v3658_v12 = vld [vmem:[%s5517_s1 + $0x1f4] ss:$48 sps:$4 sm:$0xff]  }
  0x1a   :  { %v3661_v13 = vld [vmem:[%s5517_s1 + $0x1fc] ss:$48 sps:$4 sm:$0xff]   ;;  %v3656_v14 = vld [vmem:[%s5517_s1 + $0x1f0] ss:$48 sps:$4 sm:$0xff]   ;;  %v3659_v15 = vld [vmem:[%s5517_s1 + $0x1f8] ss:$48 sps:$4 sm:$0xff]  }
  0x1b   :  { %1277 = vmatpush1.bf16.msra.mxu0 %v3588_v26  ;;  %1318 = vmatpush1.bf16.msra.mxu1 %v3589_v27  ;;  %v3664_v16 = vld [vmem:[%s5517_s1 + $0x194] ss:$48 sps:$4 sm:$0xff]   ;;  %v3667_v17 = vld [vmem:[%s5517_s1 + $0x19c] ss:$48 sps:$4 sm:$0xff]   ;;  %v3662_v18 = vld [vmem:[%s5517_s1 + $0x190] ss:$48 sps:$4 sm:$0xff]  }
  0x1c   :  { %1278 = vmatprep.subr.bf16.mxu0 %v3590_v28  ;;  %1319 = vmatprep.subr.bf16.mxu1 %v3592_v29  ;;  %v3665_v19 = vld [vmem:[%s5517_s1 + $0x198] ss:$48 sps:$4 sm:$0xff]   ;;  %v3670_v20 = vld [vmem:[%s5517_s1 + $0x134] ss:$48 sps:$4 sm:$0xff]   ;;  %v3673_v21 = vld [vmem:[%s5517_s1 + $0x13c] ss:$48 sps:$4 sm:$0xff]  }
  0x1d   :  { %v3668_v22 = vld [vmem:[%s5517_s1 + $0x130] ss:$48 sps:$4 sm:$0xff]   ;;  %v3671_v23 = vld [vmem:[%s5517_s1 + $0x138] ss:$48 sps:$4 sm:$0xff]   ;;  %v3676_v24 = vld [vmem:[%s5517_s1 + $0xd4] ss:$48 sps:$4 sm:$0xff]  }
  0x1e   :  { %v3679_v25 = vld [vmem:[%s5517_s1 + $0xdc] ss:$48 sps:$4 sm:$0xff]   ;;  %v3674_v26 = vld [vmem:[%s5517_s1 + $0xd0] ss:$48 sps:$4 sm:$0xff]   ;;  %v3677_v27 = vld [vmem:[%s5517_s1 + $0xd8] ss:$48 sps:$4 sm:$0xff]  }
  0x1f   :  { %1279 = vmatpush1.bf16.msra.mxu0 %v3594_v30  ;;  %1320 = vmatpush1.bf16.msra.mxu1 %v3595_v31  ;;  %v3682_v28 = vld [vmem:[%s5517_s1 + $0x74] ss:$48 sps:$4 sm:$0xff]   ;;  %v3685_v29 = vld [vmem:[%s5517_s1 + $0x7c] ss:$48 sps:$4 sm:$0xff]   ;;  %v3680_v30 = vld [vmem:[%s5517_s1 + $0x70] ss:$48 sps:$4 sm:$0xff]  }
  0x20   :  { %1280 = vmatprep.subr.bf16.mxu0 %v3596_v32  ;;  %1321 = vmatprep.subr.bf16.mxu1 %v3598_v33  ;;  %v3683_v31 = vld [vmem:[%s5517_s1 + $0x78] ss:$48 sps:$4 sm:$0xff]   ;;  %v3688_v32 = vld [vmem:[%s5517_s1 + $0x14] ss:$48 sps:$4 sm:$0xff]   ;;  %v3691_v33 = vld [vmem:[%s5517_s1 + $0x1c] ss:$48 sps:$4 sm:$0xff]  }
  0x21   :  { %v3704_v46 = vld [vmem:[%s5517_s1 + $0x4f0] ss:$48 sps:$4 sm:$0xff]   ;;  %v3715_v49 = vld [vmem:[%s5517_s1 + $0x49c] ss:$48 sps:$4 sm:$0xff]  }
  0x23   :  { %1281 = vmatpush2.bf16.msra.mxu0 %v3600_v34  ;;  %1322 = vmatpush2.bf16.msra.mxu1 %v3601_v35  ;;  %v3686_v34 = vld [vmem:[%s5517_s1 + $0x10] ss:$48 sps:$4 sm:$0xff]   ;;  %v3689_v35 = vld [vmem:[%s5517_s1 + $0x18] ss:$48 sps:$4 sm:$0xff]  }
  0x24   :  { %1282 = vmatprep.subr.bf16.mxu0 %v3602_v36  ;;  %1323 = vmatprep.subr.bf16.mxu1 %v3604_v37  ;;  %v3694_v36 = vld [vmem:[%s5517_s1 + $0x5b4] ss:$48 sps:$4 sm:$0xff]   ;;  %v3697_v37 = vld [vmem:[%s5517_s1 + $0x5bc] ss:$48 sps:$4 sm:$0xff]  }
  0x27   :  { %1283 = vmatpush2.bf16.msra.mxu0 %v3606_v38  ;;  %1324 = vmatpush2.bf16.msra.mxu1 %v3607_v39  ;;  %v3692_v38 = vld [vmem:[%s5517_s1 + $0x5b0] ss:$48 sps:$4 sm:$0xff]   ;;  %v3695_v39 = vld [vmem:[%s5517_s1 + $0x5b8] ss:$48 sps:$4 sm:$0xff]  }
  0x28   :  { %1284 = vmatprep.subr.bf16.mxu0 %v3608_v40  ;;  %1325 = vmatprep.subr.bf16.mxu1 %v3610_v41  ;;  %v3700_v40 = vld [vmem:[%s5517_s1 + $0x554] ss:$48 sps:$4 sm:$0xff]   ;;  %v3703_v41 = vld [vmem:[%s5517_s1 + $0x55c] ss:$48 sps:$4 sm:$0xff]  }
  0x2b   :  { %1285 = vmatpush2.bf16.msra.mxu0 %v3612_v42  ;;  %1326 = vmatpush2.bf16.msra.mxu1 %v3613_v43  ;;  %v3698_v42 = vld [vmem:[%s5517_s1 + $0x550] ss:$48 sps:$4 sm:$0xff]   ;;  %v3701_v43 = vld [vmem:[%s5517_s1 + $0x558] ss:$48 sps:$4 sm:$0xff]  }
  0x2c   :  { %1286 = vmatprep.subr.bf16.mxu0 %v3614_v44  ;;  %1327 = vmatprep.subr.bf16.mxu1 %v3616_v45  ;;  %v3706_v44 = vld [vmem:[%s5517_s1 + $0x4f4] ss:$48 sps:$4 sm:$0xff]   ;;  %v3709_v45 = vld [vmem:[%s5517_s1 + $0x4fc] ss:$48 sps:$4 sm:$0xff]  }
  0x2f   :  { %1287 = vmatpush2.bf16.msra.mxu0 %v3618_v47  ;;  %1328 = vmatpush2.bf16.msra.mxu1 %v3619_v48  ;;  %v3707_v47 = vld [vmem:[%s5517_s1 + $0x4f8] ss:$48 sps:$4 sm:$0xff]   ;;  %v3712_v48 = vld [vmem:[%s5517_s1 + $0x494] ss:$48 sps:$4 sm:$0xff]  }
  0x30   :  { %1288 = vmatprep.subr.bf16.mxu0 %v3620_v50  ;;  %1329 = vmatprep.subr.bf16.mxu1 %v3622_v51  ;;  %v3710_v50 = vld [vmem:[%s5517_s1 + $0x490] ss:$48 sps:$4 sm:$0xff]   ;;  %v3713_v51 = vld [vmem:[%s5517_s1 + $0x498] ss:$48 sps:$4 sm:$0xff]  }
  0x33   :  { %1289 = vmatpush2.bf16.msra.mxu0 %v3624_v53  ;;  %1330 = vmatpush2.bf16.msra.mxu1 %v3625_v54  ;;  %v3718_v53 = vld [vmem:[%s5517_s1 + $0x434] ss:$48 sps:$4 sm:$0xff]   ;;  %v3721_v54 = vld [vmem:[%s5517_s1 + $0x43c] ss:$48 sps:$4 sm:$0xff]  }
  0x34   :  { %1290 = vmatprep.subr.bf16.mxu0 %v3626_v55  ;;  %1331 = vmatprep.subr.bf16.mxu1 %v3628_v56  ;;  %v3716_v55 = vld [vmem:[%s5517_s1 + $0x430] ss:$48 sps:$4 sm:$0xff]   ;;  %v3719_v56 = vld [vmem:[%s5517_s1 + $0x438] ss:$48 sps:$4 sm:$0xff]  }
  0x37   :  { %1291 = vmatpush2.bf16.msra.mxu0 %v3630_v57  ;;  %1332 = vmatpush2.bf16.msra.mxu1 %v3631_v58  ;;  %v3724_v57 = vld [vmem:[%s5517_s1 + $0x3d4] ss:$48 sps:$4 sm:$0xff]   ;;  %v3727_v58 = vld [vmem:[%s5517_s1 + $0x3dc] ss:$48 sps:$4 sm:$0xff]  }
  0x38   :  { %1292 = vmatprep.subr.bf16.mxu0 %v3632_v59  ;;  %1333 = vmatprep.subr.bf16.mxu1 %v3634_v60  ;;  %v3722_v59 = vld [vmem:[%s5517_s1 + $0x3d0] ss:$48 sps:$4 sm:$0xff]   ;;  %v3725_v60 = vld [vmem:[%s5517_s1 + $0x3d8] ss:$48 sps:$4 sm:$0xff]  }
  0x3b   :  { %1293 = vmatpush2.bf16.msra.mxu0 %v3636_v61  ;;  %1334 = vmatpush2.bf16.msra.mxu1 %v3637_v62  ;;  %v3730_v61 = vld [vmem:[%s5517_s1 + $0x374] ss:$48 sps:$4 sm:$0xff]   ;;  %v3733_v62 = vld [vmem:[%s5517_s1 + $0x37c] ss:$48 sps:$4 sm:$0xff]  }
  0x3c   :  { %1294 = vmatprep.subr.bf16.mxu0 %v3638_v63  ;;  %1335 = vmatprep.subr.bf16.mxu1 %v3640_v0  ;;  %v3728_v63 = vld [vmem:[%s5517_s1 + $0x370] ss:$48 sps:$4 sm:$0xff]   ;;  %v3731_v0 = vld [vmem:[%s5517_s1 + $0x378] ss:$48 sps:$4 sm:$0xff]  }
  0x3f   :  { %1295 = vmatpush2.bf16.msra.mxu0 %v3642_v1  ;;  %1336 = vmatpush2.bf16.msra.mxu1 %v3643_v2  ;;  %v3736_v1 = vld [vmem:[%s5517_s1 + $0x314] ss:$48 sps:$4 sm:$0xff]   ;;  %v3739_v2 = vld [vmem:[%s5517_s1 + $0x31c] ss:$48 sps:$4 sm:$0xff]  }
  0x40   :  { %1346 = vmatprep.subr.bf16.mxu0 %v3646_v3  ;;  %1387 = vmatprep.subr.bf16.mxu1 %v3649_v4  ;;  %v3734_v3 = vld [vmem:[%s5517_s1 + $0x310] ss:$48 sps:$4 sm:$0xff]   ;;  %v3737_v4 = vld [vmem:[%s5517_s1 + $0x318] ss:$48 sps:$4 sm:$0xff]  }
  0x42   :  { %1297 = vmatmul.mubr.bf16.vlgmr.msra.gmra.mxu0 %v4444_v5  ;;  %1338 = vmatmul.mubr.bf16.vlgmr.msra.gmra.mxu1 %v4444_v5 }
  0x43   :  { %1347 = vmatpush1.bf16.msra.mxu0 %v3644_v6  ;;  %1388 = vmatpush1.bf16.msra.mxu1 %v3647_v7  ;;  %v3742_v6 = vld [vmem:[%s5517_s1 + $0x2c4] ss:$48 sps:$4 sm:$0xff]   ;;  %v3745_v7 = vld [vmem:[%s5517_s1 + $0x2cc] ss:$48 sps:$4 sm:$0xff]  }
  0x44   :  { %1348 = vmatprep.subr.bf16.mxu0 %v3652_v8  ;;  %1389 = vmatprep.subr.bf16.mxu1 %v3655_v9  ;;  %v3740_v8 = vld [vmem:[%s5517_s1 + $0x2c0] ss:$48 sps:$4 sm:$0xff]   ;;  %v3743_v9 = vld [vmem:[%s5517_s1 + $0x2c8] ss:$48 sps:$4 sm:$0xff]  }
  0x45   :  { %1378 = vmatprep.mubr.bf16.mxu0 %v4392_v52  ;;  %1419 = vmatprep.mubr.bf16.mxu1 %v4392_v52 }
  0x47   :  { %1349 = vmatpush1.bf16.msra.mxu0 %v3650_v10  ;;  %1390 = vmatpush1.bf16.msra.mxu1 %v3653_v11  ;;  %v3748_v10 = vld [vmem:[%s5517_s1 + $0x264] ss:$48 sps:$4 sm:$0xff]   ;;  %v3751_v11 = vld [vmem:[%s5517_s1 + $0x26c] ss:$48 sps:$4 sm:$0xff]  }
  0x48   :  { %1350 = vmatprep.subr.bf16.mxu0 %v3658_v12  ;;  %1391 = vmatprep.subr.bf16.mxu1 %v3661_v13  ;;  %v3746_v12 = vld [vmem:[%s5517_s1 + $0x260] ss:$48 sps:$4 sm:$0xff]   ;;  %v3749_v13 = vld [vmem:[%s5517_s1 + $0x268] ss:$48 sps:$4 sm:$0xff]  }
  0x4b   :  { %1351 = vmatpush1.bf16.msra.mxu0 %v3656_v14  ;;  %1392 = vmatpush1.bf16.msra.mxu1 %v3659_v15  ;;  %v3754_v14 = vld [vmem:[%s5517_s1 + $0x204] ss:$48 sps:$4 sm:$0xff]   ;;  %v3757_v15 = vld [vmem:[%s5517_s1 + $0x20c] ss:$48 sps:$4 sm:$0xff]  }
  0x4c   :  { %1352 = vmatprep.subr.bf16.mxu0 %v3664_v16  ;;  %1393 = vmatprep.subr.bf16.mxu1 %v3667_v17  ;;  %v3752_v16 = vld [vmem:[%s5517_s1 + $0x200] ss:$48 sps:$4 sm:$0xff]   ;;  %v3755_v17 = vld [vmem:[%s5517_s1 + $0x208] ss:$48 sps:$4 sm:$0xff]  }
  0x4f   :  { %1353 = vmatpush1.bf16.msra.mxu0 %v3662_v18  ;;  %1394 = vmatpush1.bf16.msra.mxu1 %v3665_v19  ;;  %v3760_v18 = vld [vmem:[%s5517_s1 + $0x1a4] ss:$48 sps:$4 sm:$0xff]   ;;  %v3763_v19 = vld [vmem:[%s5517_s1 + $0x1ac] ss:$48 sps:$4 sm:$0xff]  }
  0x50   :  { %1354 = vmatprep.subr.bf16.mxu0 %v3670_v20  ;;  %1395 = vmatprep.subr.bf16.mxu1 %v3673_v21  ;;  %v3758_v20 = vld [vmem:[%s5517_s1 + $0x1a0] ss:$48 sps:$4 sm:$0xff]   ;;  %v3766_v21 = vld [vmem:[%s5517_s1 + $0x144] ss:$48 sps:$4 sm:$0xff]  }
  0x53   :  { %1355 = vmatpush1.bf16.msra.mxu0 %v3668_v22  ;;  %1396 = vmatpush1.bf16.msra.mxu1 %v3671_v23  ;;  %v3769_v22 = vld [vmem:[%s5517_s1 + $0x14c] ss:$48 sps:$4 sm:$0xff]   ;;  %v3764_v23 = vld [vmem:[%s5517_s1 + $0x140] ss:$48 sps:$4 sm:$0xff]  }
  0x54   :  { %1356 = vmatprep.subr.bf16.mxu0 %v3676_v24  ;;  %1397 = vmatprep.subr.bf16.mxu1 %v3679_v25  ;;  %v3767_v24 = vld [vmem:[%s5517_s1 + $0x148] ss:$48 sps:$4 sm:$0xff]   ;;  %v3772_v25 = vld [vmem:[%s5517_s1 + $0xe4] ss:$48 sps:$4 sm:$0xff]  }
  0x57   :  { %1357 = vmatpush1.bf16.msra.mxu0 %v3674_v26  ;;  %1398 = vmatpush1.bf16.msra.mxu1 %v3677_v27  ;;  %v3775_v26 = vld [vmem:[%s5517_s1 + $0xec] ss:$48 sps:$4 sm:$0xff]   ;;  %v3770_v27 = vld [vmem:[%s5517_s1 + $0xe0] ss:$48 sps:$4 sm:$0xff]  }
  0x58   :  { %1358 = vmatprep.subr.bf16.mxu0 %v3682_v28  ;;  %1399 = vmatprep.subr.bf16.mxu1 %v3685_v29  ;;  %v3773_v28 = vld [vmem:[%s5517_s1 + $0xe8] ss:$48 sps:$4 sm:$0xff]   ;;  %v3778_v29 = vld [vmem:[%s5517_s1 + $0x84] ss:$48 sps:$4 sm:$0xff]  }
  0x5b   :  { %1359 = vmatpush1.bf16.msra.mxu0 %v3680_v30  ;;  %1400 = vmatpush1.bf16.msra.mxu1 %v3683_v31  ;;  %v3781_v30 = vld [vmem:[%s5517_s1 + $0x8c] ss:$48 sps:$4 sm:$0xff]   ;;  %v3776_v31 = vld [vmem:[%s5517_s1 + $0x80] ss:$48 sps:$4 sm:$0xff]  }
  0x5c   :  { %1360 = vmatprep.subr.bf16.mxu0 %v3688_v32  ;;  %1401 = vmatprep.subr.bf16.mxu1 %v3691_v33  ;;  %v3779_v32 = vld [vmem:[%s5517_s1 + $0x88] ss:$48 sps:$4 sm:$0xff]   ;;  %v3784_v33 = vld [vmem:[%s5517_s1 + $0x24] ss:$48 sps:$4 sm:$0xff]  }
  0x5f   :  { %1361 = vmatpush1.bf16.msra.mxu0 %v3686_v34  ;;  %1402 = vmatpush1.bf16.msra.mxu1 %v3689_v35  ;;  %v3787_v34 = vld [vmem:[%s5517_s1 + $0x2c] ss:$48 sps:$4 sm:$0xff]   ;;  %v3782_v35 = vld [vmem:[%s5517_s1 + $0x20] ss:$48 sps:$4 sm:$0xff]  }
  0x60   :  { %1362 = vmatprep.subr.bf16.mxu0 %v3694_v36  ;;  %1403 = vmatprep.subr.bf16.mxu1 %v3697_v37  ;;  %v3785_v36 = vld [vmem:[%s5517_s1 + $0x28] ss:$48 sps:$4 sm:$0xff]   ;;  %v3790_v37 = vld [vmem:[%s5517_s1 + $0x5c4] ss:$48 sps:$4 sm:$0xff]  }
  0x63   :  { %1363 = vmatpush2.bf16.msra.mxu0 %v3692_v38  ;;  %1404 = vmatpush2.bf16.msra.mxu1 %v3695_v39  ;;  %v3793_v38 = vld [vmem:[%s5517_s1 + $0x5cc] ss:$48 sps:$4 sm:$0xff]   ;;  %v3788_v39 = vld [vmem:[%s5517_s1 + $0x5c0] ss:$48 sps:$4 sm:$0xff]  }
  0x64   :  { %1364 = vmatprep.subr.bf16.mxu0 %v3700_v40  ;;  %1405 = vmatprep.subr.bf16.mxu1 %v3703_v41  ;;  %v3791_v40 = vld [vmem:[%s5517_s1 + $0x5c8] ss:$48 sps:$4 sm:$0xff]   ;;  %v3796_v41 = vld [vmem:[%s5517_s1 + $0x564] ss:$48 sps:$4 sm:$0xff]  }
  0x67   :  { %1365 = vmatpush2.bf16.msra.mxu0 %v3698_v42  ;;  %1406 = vmatpush2.bf16.msra.mxu1 %v3701_v43  ;;  %v3799_v42 = vld [vmem:[%s5517_s1 + $0x56c] ss:$48 sps:$4 sm:$0xff]   ;;  %v3794_v43 = vld [vmem:[%s5517_s1 + $0x560] ss:$48 sps:$4 sm:$0xff]  }
  0x68   :  { %1366 = vmatprep.subr.bf16.mxu0 %v3706_v44  ;;  %1407 = vmatprep.subr.bf16.mxu1 %v3709_v45  ;;  %v3797_v44 = vld [vmem:[%s5517_s1 + $0x568] ss:$48 sps:$4 sm:$0xff]   ;;  %v3802_v45 = vld [vmem:[%s5517_s1 + $0x504] ss:$48 sps:$4 sm:$0xff]  }
  0x6b   :  { %1367 = vmatpush2.bf16.msra.mxu0 %v3704_v46  ;;  %1408 = vmatpush2.bf16.msra.mxu1 %v3707_v47  ;;  %v3805_v46 = vld [vmem:[%s5517_s1 + $0x50c] ss:$48 sps:$4 sm:$0xff]   ;;  %v3800_v47 = vld [vmem:[%s5517_s1 + $0x500] ss:$48 sps:$4 sm:$0xff]  }
  0x6c   :  { %1368 = vmatprep.subr.bf16.mxu0 %v3712_v48  ;;  %1409 = vmatprep.subr.bf16.mxu1 %v3715_v49  ;;  %v3803_v48 = vld [vmem:[%s5517_s1 + $0x508] ss:$48 sps:$4 sm:$0xff]   ;;  %v3808_v49 = vld [vmem:[%s5517_s1 + $0x4a4] ss:$48 sps:$4 sm:$0xff]  }
  0x6f   :  { %1369 = vmatpush2.bf16.msra.mxu0 %v3710_v50  ;;  %1410 = vmatpush2.bf16.msra.mxu1 %v3713_v51  ;;  %v3811_v50 = vld [vmem:[%s5517_s1 + $0x4ac] ss:$48 sps:$4 sm:$0xff]   ;;  %v3806_v51 = vld [vmem:[%s5517_s1 + $0x4a0] ss:$48 sps:$4 sm:$0xff]  }
  0x70   :  { %1370 = vmatprep.subr.bf16.mxu0 %v3718_v53  ;;  %1411 = vmatprep.subr.bf16.mxu1 %v3721_v54  ;;  %v3809_v53 = vld [vmem:[%s5517_s1 + $0x4a8] ss:$48 sps:$4 sm:$0xff]   ;;  %v3814_v54 = vld [vmem:[%s5517_s1 + $0x444] ss:$48 sps:$4 sm:$0xff]  }
  0x73   :  { %1371 = vmatpush2.bf16.msra.mxu0 %v3716_v55  ;;  %1412 = vmatpush2.bf16.msra.mxu1 %v3719_v56  ;;  %v3817_v55 = vld [vmem:[%s5517_s1 + $0x44c] ss:$48 sps:$4 sm:$0xff]   ;;  %v3812_v56 = vld [vmem:[%s5517_s1 + $0x440] ss:$48 sps:$4 sm:$0xff]  }
  0x74   :  { %1372 = vmatprep.subr.bf16.mxu0 %v3724_v57  ;;  %1413 = vmatprep.subr.bf16.mxu1 %v3727_v58  ;;  %v3815_v57 = vld [vmem:[%s5517_s1 + $0x448] ss:$48 sps:$4 sm:$0xff]   ;;  %v3820_v58 = vld [vmem:[%s5517_s1 + $0x3e4] ss:$48 sps:$4 sm:$0xff]  }
  0x77   :  { %1373 = vmatpush2.bf16.msra.mxu0 %v3722_v59  ;;  %1414 = vmatpush2.bf16.msra.mxu1 %v3725_v60  ;;  %v3823_v59 = vld [vmem:[%s5517_s1 + $0x3ec] ss:$48 sps:$4 sm:$0xff]   ;;  %v3818_v60 = vld [vmem:[%s5517_s1 + $0x3e0] ss:$48 sps:$4 sm:$0xff]  }
  0x78   :  { %1374 = vmatprep.subr.bf16.mxu0 %v3730_v61  ;;  %1415 = vmatprep.subr.bf16.mxu1 %v3733_v62  ;;  %v3821_v61 = vld [vmem:[%s5517_s1 + $0x3e8] ss:$48 sps:$4 sm:$0xff]   ;;  %v3826_v62 = vld [vmem:[%s5517_s1 + $0x384] ss:$48 sps:$4 sm:$0xff]  }
  0x7b   :  { %1375 = vmatpush2.bf16.msra.mxu0 %v3728_v63  ;;  %1416 = vmatpush2.bf16.msra.mxu1 %v3731_v0  ;;  %v3829_v63 = vld [vmem:[%s5517_s1 + $0x38c] ss:$48 sps:$4 sm:$0xff]   ;;  %v3824_v0 = vld [vmem:[%s5517_s1 + $0x380] ss:$48 sps:$4 sm:$0xff]  }
  0x7c   :  { %1376 = vmatprep.subr.bf16.mxu0 %v3736_v1  ;;  %1417 = vmatprep.subr.bf16.mxu1 %v3739_v2  ;;  %v3827_v1 = vld [vmem:[%s5517_s1 + $0x388] ss:$48 sps:$4 sm:$0xff]   ;;  %v3832_v2 = vld [vmem:[%s5517_s1 + $0x324] ss:$48 sps:$4 sm:$0xff]  }
  0x7f   :  { %1377 = vmatpush2.bf16.msra.mxu0 %v3734_v3  ;;  %1418 = vmatpush2.bf16.msra.mxu1 %v3737_v4  ;;  %v3835_v3 = vld [vmem:[%s5517_s1 + $0x32c] ss:$48 sps:$4 sm:$0xff]   ;;  %v3830_v4 = vld [vmem:[%s5517_s1 + $0x320] ss:$48 sps:$4 sm:$0xff]  }
  0x80   :  { %1428 = vmatprep.subr.bf16.mxu0 %v3742_v6  ;;  %1469 = vmatprep.subr.bf16.mxu1 %v3745_v7  ;;  %v3833_v6 = vld [vmem:[%s5517_s1 + $0x328] ss:$48 sps:$4 sm:$0xff]   ;;  %v3838_v7 = vld [vmem:[%s5519_s3 + $0xe4] ss:$16 sps:$4 sm:$0xff]  }
  0x82   :  { %1379 = vmatmul.mubr.bf16.vlgmr.msra.gmra.mxu0 %v4444_v5  ;;  %1420 = vmatmul.mubr.bf16.vlgmr.msra.gmra.mxu1 %v4444_v5 }
  0x83   :  { %1429 = vmatpush1.bf16.msra.mxu0 %v3740_v8  ;;  %1470 = vmatpush1.bf16.msra.mxu1 %v3743_v9  ;;  %v3836_v8 = vld [vmem:[%s5519_s3 + $0xe0] ss:$16 sps:$4 sm:$0xff]   ;;  %v3841_v9 = vld [vmem:[%s5519_s3 + $0xc4] ss:$16 sps:$4 sm:$0xff]  }
  0x84   :  { %1430 = vmatprep.subr.bf16.mxu0 %v3748_v10  ;;  %1471 = vmatprep.subr.bf16.mxu1 %v3751_v11  ;;  %v3839_v10 = vld [vmem:[%s5519_s3 + $0xc0] ss:$16 sps:$4 sm:$0xff]  }
  0x85   :  { %1460 = vmatprep.mubr.bf16.mxu0 %v4392_v52  ;;  %1501 = vmatprep.mubr.bf16.mxu1 %v4392_v52  ;;  %v3761_v52 = vld [vmem:[%s5517_s1 + $0x1a8] ss:$48 sps:$4 sm:$0xff]  }
  0x87   :  { %1431 = vmatpush1.bf16.msra.mxu0 %v3746_v12  ;;  %1472 = vmatpush1.bf16.msra.mxu1 %v3749_v13 }
  0x88   :  { %1432 = vmatprep.subr.bf16.mxu0 %v3754_v14  ;;  %1473 = vmatprep.subr.bf16.mxu1 %v3757_v15 }
  0x8b   :  { %1433 = vmatpush1.bf16.msra.mxu0 %v3752_v16  ;;  %1474 = vmatpush1.bf16.msra.mxu1 %v3755_v17 }
  0x8c   :  { %1434 = vmatprep.subr.bf16.mxu0 %v3760_v18  ;;  %1475 = vmatprep.subr.bf16.mxu1 %v3763_v19 }
  0x8f   :  { %1435 = vmatpush1.bf16.msra.mxu0 %v3758_v20  ;;  %1476 = vmatpush1.bf16.msra.mxu1 %v3761_v52 }
  0x90   :  { %1436 = vmatprep.subr.bf16.mxu0 %v3766_v21  ;;  %1477 = vmatprep.subr.bf16.mxu1 %v3769_v22 }
  0x93   :  { %1437 = vmatpush1.bf16.msra.mxu0 %v3764_v23  ;;  %1478 = vmatpush1.bf16.msra.mxu1 %v3767_v24 }
  0x94   :  { %1438 = vmatprep.subr.bf16.mxu0 %v3772_v25  ;;  %1479 = vmatprep.subr.bf16.mxu1 %v3775_v26 }
  0x97   :  { %1439 = vmatpush1.bf16.msra.mxu0 %v3770_v27  ;;  %1480 = vmatpush1.bf16.msra.mxu1 %v3773_v28 }
  0x98   :  { %1440 = vmatprep.subr.bf16.mxu0 %v3778_v29  ;;  %1481 = vmatprep.subr.bf16.mxu1 %v3781_v30 }
  0x9b   :  { %1441 = vmatpush1.bf16.msra.mxu0 %v3776_v31  ;;  %1482 = vmatpush1.bf16.msra.mxu1 %v3779_v32 }
  0x9c   :  { %1442 = vmatprep.subr.bf16.mxu0 %v3784_v33  ;;  %1483 = vmatprep.subr.bf16.mxu1 %v3787_v34 }
  0x9f   :  { %1443 = vmatpush1.bf16.msra.mxu0 %v3782_v35  ;;  %1484 = vmatpush1.bf16.msra.mxu1 %v3785_v36 }
  0xa0   :  { %1444 = vmatprep.subr.bf16.mxu0 %v3790_v37  ;;  %1485 = vmatprep.subr.bf16.mxu1 %v3793_v38 }
  0xa3   :  { %1445 = vmatpush2.bf16.msra.mxu0 %v3788_v39  ;;  %1486 = vmatpush2.bf16.msra.mxu1 %v3791_v40 }
  0xa4   :  { %1446 = vmatprep.subr.bf16.mxu0 %v3796_v41  ;;  %1487 = vmatprep.subr.bf16.mxu1 %v3799_v42 }
  0xa7   :  { %1447 = vmatpush2.bf16.msra.mxu0 %v3794_v43  ;;  %1488 = vmatpush2.bf16.msra.mxu1 %v3797_v44 }
  0xa8   :  { %1448 = vmatprep.subr.bf16.mxu0 %v3802_v45  ;;  %1489 = vmatprep.subr.bf16.mxu1 %v3805_v46 }
  0xab   :  { %1449 = vmatpush2.bf16.msra.mxu0 %v3800_v47  ;;  %1490 = vmatpush2.bf16.msra.mxu1 %v3803_v48 }
  0xac   :  { %1450 = vmatprep.subr.bf16.mxu0 %v3808_v49  ;;  %1491 = vmatprep.subr.bf16.mxu1 %v3811_v50 }
  0xaf   :  { %1451 = vmatpush2.bf16.msra.mxu0 %v3806_v51  ;;  %1492 = vmatpush2.bf16.msra.mxu1 %v3809_v53 }
  0xb0   :  { %1452 = vmatprep.subr.bf16.mxu0 %v3814_v54  ;;  %1493 = vmatprep.subr.bf16.mxu1 %v3817_v55 }
  0xb3   :  { %1453 = vmatpush2.bf16.msra.mxu0 %v3812_v56  ;;  %1494 = vmatpush2.bf16.msra.mxu1 %v3815_v57 }
  0xb4   :  { %1454 = vmatprep.subr.bf16.mxu0 %v3820_v58  ;;  %1495 = vmatprep.subr.bf16.mxu1 %v3823_v59 }
  0xb7   :  { %1455 = vmatpush2.bf16.msra.mxu0 %v3818_v60  ;;  %1496 = vmatpush2.bf16.msra.mxu1 %v3821_v61 }
  0xb8   :  { %1456 = vmatprep.subr.bf16.mxu0 %v3826_v62  ;;  %1497 = vmatprep.subr.bf16.mxu1 %v3829_v63 }
  0xbb   :  { %1457 = vmatpush2.bf16.msra.mxu0 %v3824_v0  ;;  %1498 = vmatpush2.bf16.msra.mxu1 %v3827_v1 }
  0xbc   :  { %1458 = vmatprep.subr.bf16.mxu0 %v3832_v2  ;;  %1499 = vmatprep.subr.bf16.mxu1 %v3835_v3 }
  0xbf   :  { %1459 = vmatpush2.bf16.msra.mxu0 %v3830_v4  ;;  %1500 = vmatpush2.bf16.msra.mxu1 %v3833_v6 }
  0xc0   :  { %2617 = vmatprep.subr.bf16.mxu0 %v3838_v7 }
  0xc2   :  { %1461 = vmatmul.mubr.bf16.vlgmr.msra.gmra.mxu0 %v4444_v5  ;;  %1502 = vmatmul.mubr.bf16.vlgmr.msra.gmra.mxu1 %v4444_v5 }
  0xc3   :  { %2618 = vmatpush1.bf16.msra.mxu0 %v3836_v8 }
  0xc4   :  { %14 = vsyncpa [#allocation3], 0  ;;  %2619 = vmatprep.subr.bf16.mxu0 %v3841_v9  ;;  %v3844_v11 = vld [vmem:[%s5519_s3 + $0xa4] ss:$16 sps:$4 sm:$0xff]   ;;  %v3842_v12 = vld [vmem:[%s5519_s3 + $0xa0] ss:$16 sps:$4 sm:$0xff]  }
  0xc5   :  { %v3847_v5 = vld [vmem:[%s5519_s3 + $0x84] ss:$16 sps:$4 sm:$0xff]   ;;  %v3845_v13 = vld [vmem:[%s5519_s3 + $0x80] ss:$16 sps:$4 sm:$0xff]   ;;  %vm2604_vm0 = vcmask 1041408   ;;  %vm2600_vm1 = vcmask 293888  }
  0xc6   :  { %v3850_v14 = vld [vmem:[%s5519_s3 + $0x64] ss:$16 sps:$4 sm:$0xff]   ;;  %v3848_v15 = vld [vmem:[%s5519_s3 + $0x60] ss:$16 sps:$4 sm:$0xff]   ;;  %vm2997_vm2 = vcmask 130048   ;;  %vm3086_vm3 = vcmask 261120  }
  0xc7   :  { %2620 = vmatpush1.bf16.msra.mxu0 %v3839_v10  ;;  %v3853_v16 = vld [vmem:[%s5519_s3 + $0x44] ss:$16 sps:$4 sm:$0xff]   ;;  %v3851_v17 = vld [vmem:[%s5519_s3 + $0x40] ss:$16 sps:$4 sm:$0xff]   ;;  %s4188_s11 = smov [#allocation2]   ;;  %vm3137_vm4 = vcmask 58368  }
  0xc8   :  { %2621 = vmatprep.subr.bf16.mxu0 %v3844_v11  ;;  %v3856_v18 = vld [vmem:[%s5519_s3 + $0x24] ss:$16 sps:$4 sm:$0xff]   ;;  %v3854_v19 = vld [vmem:[%s5519_s3 + $0x20] ss:$16 sps:$4 sm:$0xff]   ;;  %s3145_s12 = sshll.u32 %s4188_s11, 4  ;;  %s3146_s12 = int_to_ptr.vmem [resolvable:$true] %s3145_s12 }
  0xc9   :  { %v3859_v20 = vld [vmem:[%s5519_s3 + $0x4] ss:$16 sps:$4 sm:$0xff]   ;;  %v3857_v52 = vld [vmem:[%s5519_s3] ss:$16 sps:$4 sm:$0xff]   ;;  %p4170_p1 = scmp.lt.s32.totalorder %s3146_s12, %s3146_s12 }
  0xca   :  { %v3862_v21 = vld [vmem:[%s5519_s3 + $0x1e4] ss:$16 sps:$4 sm:$0xff]   ;;  %v3860_v22 = vld [vmem:[%s5519_s3 + $0x1e0] ss:$16 sps:$4 sm:$0xff]  }
  0xcb   :  { %2622 = vmatpush1.bf16.msra.mxu0 %v3842_v12  ;;  %v3865_v23 = vld [vmem:[%s5519_s3 + $0x1c4] ss:$16 sps:$4 sm:$0xff]   ;;  %v3863_v24 = vld [vmem:[%s5519_s3 + $0x1c0] ss:$16 sps:$4 sm:$0xff]  }
  0xcc   :  { %2623 = vmatprep.subr.bf16.mxu0 %v3847_v5  ;;  %v3868_v25 = vld [vmem:[%s5519_s3 + $0x1a4] ss:$16 sps:$4 sm:$0xff]   ;;  %v3866_v26 = vld [vmem:[%s5519_s3 + $0x1a0] ss:$16 sps:$4 sm:$0xff]  }
  0xcd   :  { %v3871_v27 = vld [vmem:[%s5519_s3 + $0x184] ss:$16 sps:$4 sm:$0xff]   ;;  %v3869_v28 = vld [vmem:[%s5519_s3 + $0x180] ss:$16 sps:$4 sm:$0xff]  }
  0xce   :  { %v3874_v29 = vld [vmem:[%s5519_s3 + $0x164] ss:$16 sps:$4 sm:$0xff]   ;;  %v3884_v31 = vld [vmem:[%s5519_s3 + $0x2e0] ss:$16 sps:$4 sm:$0xff]  }
  0xcf   :  { %2624 = vmatpush1.bf16.msra.mxu0 %v3845_v13  ;;  %v3886_v30 = vld [vmem:[%s5519_s3 + $0x2e4] ss:$16 sps:$4 sm:$0xff]   ;;  %v3872_v32 = vld [vmem:[%s5519_s3 + $0x160] ss:$16 sps:$4 sm:$0xff]  }
  0xd0   :  { %2625 = vmatprep.subr.bf16.mxu0 %v3850_v14  ;;  %2658 = vmatprep.subr.bf16.mxu1 %v3886_v30  ;;  %v3877_v33 = vld [vmem:[%s5519_s3 + $0x144] ss:$16 sps:$4 sm:$0xff]   ;;  %v3887_v34 = vld [vmem:[%s5519_s3 + $0x2c0] ss:$16 sps:$4 sm:$0xff]  }
  0xd1   :  { %2659 = vmatpush1.bf16.msra.mxu1 %v3884_v31  ;;  %v3889_v35 = vld [vmem:[%s5519_s3 + $0x2c4] ss:$16 sps:$4 sm:$0xff]   ;;  %v3875_v37 = vld [vmem:[%s5519_s3 + $0x140] ss:$16 sps:$4 sm:$0xff]  }
  0xd2   :  { %v3892_v36 = vld [vmem:[%s5519_s3 + $0x2a4] ss:$16 sps:$4 sm:$0xff]   ;;  %2660 = vmatprep.subr.bf16.mxu1 %v3889_v35  ;;  %v3890_v39 = vld [vmem:[%s5519_s3 + $0x2a0] ss:$16 sps:$4 sm:$0xff]  }
  0xd3   :  { %2626 = vmatpush1.bf16.msra.mxu0 %v3848_v15  ;;  %v3880_v38 = vld [vmem:[%s5519_s3 + $0x124] ss:$16 sps:$4 sm:$0xff]   ;;  %v3878_v41 = vld [vmem:[%s5519_s3 + $0x120] ss:$16 sps:$4 sm:$0xff]   ;;  %v3966_v15 = vld [vmem:[%s5519_s3 + $0xec] ss:$16 sps:$4 sm:$0xff]  }
  0xd4   :  { %2627 = vmatprep.subr.bf16.mxu0 %v3853_v16  ;;  %v3895_v40 = vld [vmem:[%s5519_s3 + $0x284] ss:$16 sps:$4 sm:$0xff]   ;;  %v3893_v43 = vld [vmem:[%s5519_s3 + $0x280] ss:$16 sps:$4 sm:$0xff]   ;;  %v244_v16 = vlaneseq }
  0xd5   :  { %2661 = vmatpush1.bf16.msra.mxu1 %v3887_v34  ;;  %v3883_v42 = vld [vmem:[%s5519_s3 + $0x104] ss:$16 sps:$4 sm:$0xff]   ;;  %v3881_v45 = vld [vmem:[%s5519_s3 + $0x100] ss:$16 sps:$4 sm:$0xff]  }
  0xd6   :  { %2662 = vmatprep.subr.bf16.mxu1 %v3892_v36  ;;  %v3898_v44 = vld [vmem:[%s5519_s3 + $0x264] ss:$16 sps:$4 sm:$0xff]   ;;  %v3896_v46 = vld [vmem:[%s5519_s3 + $0x260] ss:$16 sps:$4 sm:$0xff]  }
  0xd7   :  { %2628 = vmatpush1.bf16.msra.mxu0 %v3851_v17  ;;  %v3901_v49 = vld [vmem:[%s5519_s3 + $0x244] ss:$16 sps:$4 sm:$0xff]   ;;  %v3899_v51 = vld [vmem:[%s5519_s3 + $0x240] ss:$16 sps:$4 sm:$0xff]   ;;  %v5040_v17 = vshrl.u32 %v244_v16, 7 }
  0xd8   :  { %2629 = vmatprep.subr.bf16.mxu0 %v3856_v18  ;;  %v3904_v50 = vld [vmem:[%s5519_s3 + $0x4e4] ss:$16 sps:$4 sm:$0xff]   ;;  %v3905_v58 = vld [vmem:[%s5519_s3 + $0x220] ss:$16 sps:$4 sm:$0xff]  }
  0xd9   :  { %2663 = vmatpush1.bf16.msra.mxu1 %v3890_v39  ;;  %v3907_v57 = vld [vmem:[%s5519_s3 + $0x224] ss:$16 sps:$4 sm:$0xff]   ;;  %v3911_v62 = vld [vmem:[%s5519_s3 + $0x200] ss:$16 sps:$4 sm:$0xff]   ;;  %v270_v18 = vsub.s32 6, %v5040_v17 }
  0xda   :  { %2664 = vmatprep.subr.bf16.mxu1 %v3895_v40  ;;  %v3913_v61 = vld [vmem:[%s5519_s3 + $0x204] ss:$16 sps:$4 sm:$0xff]   ;;  %v3917_v0 = vld [vmem:[%s5519_s3 + $0x3e0] ss:$16 sps:$4 sm:$0xff]   ;;  %v5056_v40 = vsub.s32 0, %v5040_v17 }
  0xdb   :  { %2630 = vmatpush1.bf16.msra.mxu0 %v3854_v19  ;;  %v3919_v63 = vld [vmem:[%s5519_s3 + $0x3e4] ss:$16 sps:$4 sm:$0xff]   ;;  %v3923_v2 = vld [vmem:[%s5519_s3 + $0x3c0] ss:$16 sps:$4 sm:$0xff]   ;;  %v274_v19 = vsub.s32 7, %v5040_v17 }
  0xdc   :  { %2631 = vmatprep.subr.bf16.mxu0 %v3859_v20  ;;  %v3925_v1 = vld [vmem:[%s5519_s3 + $0x3c4] ss:$16 sps:$4 sm:$0xff]   ;;  %v3929_v4 = vld [vmem:[%s5519_s3 + $0x3a0] ss:$16 sps:$4 sm:$0xff]  }
  0xdd   :  { %2665 = vmatpush1.bf16.msra.mxu1 %v3893_v43  ;;  %v3931_v3 = vld [vmem:[%s5519_s3 + $0x3a4] ss:$16 sps:$4 sm:$0xff]   ;;  %v3935_v7 = vld [vmem:[%s5519_s3 + $0x380] ss:$16 sps:$4 sm:$0xff]  }
  0xde   :  { %2666 = vmatprep.subr.bf16.mxu1 %v3898_v44  ;;  %v3937_v6 = vld [vmem:[%s5519_s3 + $0x384] ss:$16 sps:$4 sm:$0xff]   ;;  %v3941_v9 = vld [vmem:[%s5519_s3 + $0x360] ss:$16 sps:$4 sm:$0xff]  }
  0xdf   :  { %2632 = vmatpush1.bf16.msra.mxu0 %v3857_v52  ;;  %v3943_v8 = vld [vmem:[%s5519_s3 + $0x364] ss:$16 sps:$4 sm:$0xff]   ;;  %v3947_v11 = vld [vmem:[%s5519_s3 + $0x340] ss:$16 sps:$4 sm:$0xff]  }
  0xe0   :  { %2633 = vmatprep.subr.bf16.mxu0 %v3862_v21  ;;  %v3949_v10 = vld [vmem:[%s5519_s3 + $0x344] ss:$16 sps:$4 sm:$0xff]   ;;  %v3952_v5 = vld [vmem:[%s5519_s3 + $0x320] ss:$16 sps:$4 sm:$0xff]  }
  0xe1   :  { %2667 = vmatpush1.bf16.msra.mxu1 %v3896_v46  ;;  %v3954_v12 = vld [vmem:[%s5519_s3 + $0x324] ss:$16 sps:$4 sm:$0xff]   ;;  %v3958_v14 = vld [vmem:[%s5519_s3 + $0x300] ss:$16 sps:$4 sm:$0xff]  }
  0xe2   :  { %2668 = vmatprep.subr.bf16.mxu1 %v3901_v49  ;;  %v3960_v13 = vld [vmem:[%s5519_s3 + $0x304] ss:$16 sps:$4 sm:$0xff]  }
  0xe3   :  { %2634 = vmatpush2.bf16.msra.mxu0 %v3860_v22  ;;  %v5047_v20 = vld [vmem:[%s5518_s2] sm:$0xff] }
  0xe4   :  { %2635 = vmatprep.subr.bf16.mxu0 %v3865_v23  ;;  %v271_v52 = vrot.slane %v5047_v20, %v270_v18  ;;  %v275_v21 = vrot.slane %v5047_v20, %v274_v19 }
  0xe5   :  { %2669 = vmatpush1.bf16.msra.mxu1 %v3899_v51 }
  0xe6   :  { %2670 = vmatprep.subr.bf16.mxu1 %v3907_v57 }
  0xe7   :  { %2636 = vmatpush2.bf16.msra.mxu0 %v3863_v24 }
  0xe8   :  { %2637 = vmatprep.subr.bf16.mxu0 %v3868_v25 }
  0xe9   :  { %2671 = vmatpush1.bf16.msra.mxu1 %v3905_v58  ;;  %v3902_v58 = vld [vmem:[%s5519_s3 + $0x4e0] ss:$16 sps:$4 sm:$0xff]  }
  0xea   :  { %2672 = vmatprep.subr.bf16.mxu1 %v3913_v61  ;;  %v3914_v61 = vld [vmem:[%s5519_s3 + $0x4a0] ss:$16 sps:$4 sm:$0xff]  }
  0xeb   :  { %2638 = vmatpush2.bf16.msra.mxu0 %v3866_v26 }
  0xec   :  { %2639 = vmatprep.subr.bf16.mxu0 %v3871_v27 }
  0xed   :  { %2673 = vmatpush1.bf16.msra.mxu1 %v3911_v62  ;;  %v3922_v62 = vld [vmem:[%s5519_s3 + $0x484] ss:$16 sps:$4 sm:$0xff]  }
  0xee   :  { %2674 = vmatprep.subr.bf16.mxu1 %v3919_v63  ;;  %v3920_v63 = vld [vmem:[%s5519_s3 + $0x480] ss:$16 sps:$4 sm:$0xff]  }
  0xef   :  { %2640 = vmatpush2.bf16.msra.mxu0 %v3869_v28 }
  0xf0   :  { %2641 = vmatprep.subr.bf16.mxu0 %v3874_v29 }
  0xf1   :  { %2675 = vmatpush2.bf16.msra.mxu1 %v3917_v0  ;;  %v3928_v0 = vld [vmem:[%s5519_s3 + $0x464] ss:$16 sps:$4 sm:$0xff]  }
  0xf2   :  { %2676 = vmatprep.subr.bf16.mxu1 %v3925_v1  ;;  %v241_v1 = vld [vmem:[%s5518_s2 + $0x8] sm:$0xf] }
  0xf3   :  { %2642 = vmatpush2.bf16.msra.mxu0 %v3872_v32 }
  0xf4   :  { %2643 = vmatprep.subr.bf16.mxu0 %v3877_v33 }
  0xf5   :  { %2677 = vmatpush2.bf16.msra.mxu1 %v3923_v2  ;;  %v5101_v2 = vsub.s32 2, %v5040_v17 }
  0xf6   :  { %2678 = vmatprep.subr.bf16.mxu1 %v3931_v3  ;;  %v3926_v3 = vld [vmem:[%s5519_s3 + $0x460] ss:$16 sps:$4 sm:$0xff]  }
  0xf7   :  { %2644 = vmatpush2.bf16.msra.mxu0 %v3875_v37 }
  0xf8   :  { %2645 = vmatprep.subr.bf16.mxu0 %v3880_v38 }
  0xf9   :  { %2679 = vmatpush2.bf16.msra.mxu1 %v3929_v4  ;;  %v3934_v4 = vld [vmem:[%s5519_s3 + $0x444] ss:$16 sps:$4 sm:$0xff]  }
  0xfa   :  { %2680 = vmatprep.subr.bf16.mxu1 %v3937_v6  ;;  %v5110_v6 = vsub.s32 3, %v5040_v17 }
  0xfb   :  { %2646 = vmatpush2.bf16.msra.mxu0 %v3878_v41  ;;  %v5059_v41 = vsub.s32 1, %v5040_v17 }
  0xfc   :  { %2647 = vmatprep.subr.bf16.mxu0 %v3883_v42  ;;  %v247_v42 = vrot.slane %v5047_v20, %v5056_v40 }
  0xfd   :  { %2681 = vmatpush2.bf16.msra.mxu1 %v3935_v7  ;;  %v251_v43 = vrot.slane %v5047_v20, %v5059_v41  ;;  %v279_v7 = vrot.slane %v241_v1, %v5056_v40 }
  0xfe   :  { %2682 = vmatprep.subr.bf16.mxu1 %v3943_v8  ;;  %v287_v8 = vrot.slane %v241_v1, %v5101_v2 }
  0xff   :  { %2648 = vmatpush2.bf16.msra.mxu0 %v3881_v45 }
 0x100   :  { %2699 = vmatprep.subr.bf16.mxu0 %v3904_v50 }
 0x101   :  { %2683 = vmatpush2.bf16.msra.mxu1 %v3941_v9  ;;  %v283_v9 = vrot.slane %v241_v1, %v5059_v41 }
 0x102   :  { %v4960_v47 = vpop.f32.mrf.mxu0  ;;  %v4962_v48 = vpop.f32.mrf.mxu1  ;;  %2684 = vmatprep.subr.bf16.mxu1 %v3949_v10  ;;  %v291_v10 = vrot.slane %v241_v1, %v5110_v6 }
 0x103   :  { %v1299_v44 = vadd.f32 %v4960_v47, %v247_v42  ;;  %v3910_v47 = vld [vmem:[%s5519_s3 + $0x4c4] ss:$16 sps:$4 sm:$0xff]  }
 0x104   :  { %v4973_v53 = vpop.f32.mrf.mxu0  ;;  %v4975_v54 = vpop.f32.mrf.mxu1 }
 0x105   :  { %2685 = vmatpush2.bf16.msra.mxu1 %v3947_v11  ;;  %v1301_v46 = vadd.f32 %v4973_v53, %v251_v43  ;;  %v3908_v53 = vld [vmem:[%s5519_s3 + $0x4c0] ss:$16 sps:$4 sm:$0xff]  }
 0x106   :  { %v1302_v55 = vpop.f32.mrf.mxu0  ;;  %v1343_v56 = vpop.f32.mrf.mxu1  ;;  %2686 = vmatprep.subr.bf16.mxu1 %v3954_v12  ;;  %v3932_v11 = vld [vmem:[%s5519_s3 + $0x440] ss:$16 sps:$4 sm:$0xff]  }
 0x108   :  { %v1303_v59 = vpop.f32.mrf.mxu0  ;;  %v1344_v60 = vpop.f32.mrf.mxu1 }
 0x109   :  { %2687 = vmatpush2.bf16.msra.mxu1 %v3952_v5  ;;  %v3916_v60 = vld [vmem:[%s5519_s3 + $0x4a4] ss:$16 sps:$4 sm:$0xff]  }
 0x10a   :  { %2688 = vmatprep.subr.bf16.mxu1 %v3960_v13  ;;  %v3940_v13 = vld [vmem:[%s5519_s3 + $0x424] ss:$16 sps:$4 sm:$0xff]  }
 0x10d   :  { %2689 = vmatpush2.bf16.msra.mxu1 %v3958_v14 }
 0x10e   :  { %2740 = vmatprep.subr.bf16.mxu1 %v3966_v15 }
 0x142   :  { %v5051_v22 = vpop.f32.mrf.mxu0  ;;  %v1421_v23 = vpop.f32.mrf.mxu1 }
 0x143   :  { %v1422_v24 = vadd.f32 %v1421_v23, %v271_v52 }
 0x144   :  { %v5053_v25 = vpop.f32.mrf.mxu0  ;;  %v1423_v26 = vpop.f32.mrf.mxu1 }
 0x145   :  { %v1510_v27 = vsub.f32 0.0, %v1422_v24  ;;  %v1424_v28 = vadd.f32 %v1423_v26, %v275_v21  ;;  %v3938_v24 = vld [vmem:[%s5519_s3 + $0x420] ss:$16 sps:$4 sm:$0xff]  }
 0x146   :  { %v1384_v29 = vpop.f32.mrf.mxu0  ;;  %v1425_v30 = vpop.f32.mrf.mxu1 }
 0x147   :  { %v1516_v31 = vmul.f32 1.442695, %v1510_v27  ;;  %v1511_v32 = vsub.f32 0.0, %v1424_v28  ;;  %v3946_v27 = vld [vmem:[%s5519_s3 + $0x404] ss:$16 sps:$4 sm:$0xff]  }
 0x148   :  { %v1385_v33 = vpop.f32.mrf.mxu0  ;;  %v1426_v34 = vpop.f32.mrf.mxu1  ;;  %v1726_v28 = vld [vmem:[%s5519_s3 + $0x540] sm:$0x33] }
 0x149   :  { %4125 = vpow2.f32 %v1516_v31  ;;  %v1518_v35 = vmul.f32 1.442695, %v1511_v32  ;;  %v3514_v42 = vcombine.low %v1726_v28, %v1726_v28 }
 0x14b   :  { %4127 = vpow2.f32 %v1518_v35  ;;  %v2606_v43 = vsel %vm2604_vm0, %v3514_v42, 0  ;;  %v3996_v42 = vld [vmem:[%s5519_s3 + $0x4c] ss:$16 sps:$4 sm:$0xff]  }
 0x156   :  { %v4126_v36 = vpop.eup %4125 }
 0x157   :  { %v1528_v37 = vadd.f32 1.0, %v4126_v36 }
 0x158   :  { %v4128_v38 = vpop.eup %4127 }
 0x159   :  { %4129 = vrcp.f32 %v1528_v37  ;;  %v1529_v39 = vadd.f32 1.0, %v4128_v38  ;;  %v3944_v38 = vld [vmem:[%s5519_s3 + $0x400] ss:$16 sps:$4 sm:$0xff]  }
 0x15b   :  { %4131 = vrcp.f32 %v1529_v39  ;;  %v3515_v39 = vcombine.high %v1726_v28, %v1726_v28  ;;  %v3973_v28 = vld [vmem:[%s5519_s3 + $0x2c8] ss:$16 sps:$4 sm:$0xff]  }
 0x166   :  { %v4130_v45 = vpop.eup %4129 }
 0x167   :  { %v1540_v49 = vmul.f32 %v4130_v45, %v1299_v44  ;;  %v3957_v44 = vld [vmem:[%s5519_s3 + $0x524] ss:$16 sps:$4 sm:$0xff]   ;;  %v3955_v45 = vld [vmem:[%s5519_s3 + $0x520] ss:$16 sps:$4 sm:$0xff]  }
 0x168   :  { %v4132_v50 = vpop.eup %4131 }
 0x169   :  { %v1541_v51 = vmul.f32 %v4132_v50, %v1301_v46  ;;  %v1546_v55 = vmax.f32 %v1540_v49, 0.0  ;;  %v3963_v46 = vld [vmem:[%s5519_s3 + $0x504] ss:$16 sps:$4 sm:$0xff]   ;;  %v3961_v49 = vld [vmem:[%s5519_s3 + $0x500] ss:$16 sps:$4 sm:$0xff]  }
 0x16b   :  { %v1547_v56 = vmax.f32 %v1541_v51, 0.0  ;;  %v5072_v59 = vpack.c.bf16 %v1546_v55, %v1546_v55  ;;  %v3969_v51 = vld [vmem:[%s5519_s3 + $0x2ec] ss:$16 sps:$4 sm:$0xff]  }
 0x16d   :  { %v5067_v57 = vpack.c.bf16 %v1547_v56, %v1547_v56 }
 0x16f   :  { %2649 = vmatprep.mubr.bf16.mxu0 %v5067_v57 }
 0x170   :  { %2650 = vmatmul.mubr.bf16.vlgmr.msra.gmra.mxu0 %v5072_v59 }
 0x171   :  { %2700 = vmatpush1.bf16.msra.mxu0 %v3902_v58 }
 0x172   :  { %2701 = vmatprep.subr.bf16.mxu0 %v3910_v47 }
 0x175   :  { %2702 = vmatpush1.bf16.msra.mxu0 %v3908_v53 }
 0x176   :  { %2703 = vmatprep.subr.bf16.mxu0 %v3916_v60 }
 0x179   :  { %2704 = vmatpush1.bf16.msra.mxu0 %v3914_v61 }
 0x17a   :  { %2705 = vmatprep.subr.bf16.mxu0 %v3922_v62  ;;  %v262_v62 = vsub.s32 4, %v5040_v17 }
 0x17c   :  { %v263_v1 = vrot.slane %v5047_v20, %v262_v62  ;;  %v4015_v62 = vld [vmem:[%s5519_s3 + $0x3e8] ss:$16 sps:$4 sm:$0xff]  }
 0x17d   :  { %2706 = vmatpush1.bf16.msra.mxu0 %v3920_v63  ;;  %v266_v63 = vsub.s32 5, %v5040_v17 }
 0x17e   :  { %2707 = vmatprep.subr.bf16.mxu0 %v3928_v0  ;;  %v255_v0 = vrot.slane %v5047_v20, %v5101_v2 }
 0x181   :  { %2708 = vmatpush1.bf16.msra.mxu0 %v3926_v3  ;;  %v259_v3 = vrot.slane %v5047_v20, %v5110_v6 }
 0x182   :  { %v1462_v12 = vpop.f32.mrf.mxu0  ;;  %v1503_v5 = vpop.f32.mrf.mxu1  ;;  %2709 = vmatprep.subr.bf16.mxu0 %v3934_v4  ;;  %v267_v4 = vrot.slane %v5047_v20, %v266_v63  ;;  %v4020_v63 = vld [vmem:[%s5519_s3 + $0x1cc] ss:$16 sps:$4 sm:$0xff]  }
 0x183   :  { %v1463_v14 = vadd.f32 %v1462_v12, %v279_v7  ;;  %v1504_v15 = vadd.f32 %v1503_v5, %v287_v8  ;;  %v1340_v7 = vadd.f32 %v4962_v48, %v255_v0  ;;  %v3964_v48 = vld [vmem:[%s5519_s3 + $0xe8] ss:$16 sps:$4 sm:$0xff]   ;;  %v4023_v0 = vld [vmem:[%s5519_s3 + $0x3cc] ss:$16 sps:$4 sm:$0xff]  }
 0x184   :  { %v1464_v16 = vpop.f32.mrf.mxu0  ;;  %v1505_v18 = vpop.f32.mrf.mxu1  ;;  %v1383_v5 = vadd.f32 %v5053_v25, %v267_v4  ;;  %v4026_v4 = vld [vmem:[%s5519_s3 + $0x1ac] ss:$16 sps:$4 sm:$0xff]  }
 0x185   :  { %v1512_v19 = vsub.f32 0.0, %v1463_v14  ;;  %v1514_v52 = vsub.f32 0.0, %v1504_v15  ;;  %v1465_v21 = vadd.f32 %v1464_v16, %v283_v9  ;;  %v1506_v23 = vadd.f32 %v1505_v18, %v291_v10  ;;  %2710 = vmatpush1.bf16.msra.mxu0 %v3932_v11 }
 0x186   :  { %v1466_v26 = vpop.f32.mrf.mxu0  ;;  %2711 = vmatprep.subr.bf16.mxu0 %v3940_v13  ;;  %v1507_v29 = vpop.f32.mrf.mxu1  ;;  %v1381_v9 = vadd.f32 %v5051_v22, %v263_v1  ;;  %v1342_v11 = vadd.f32 %v4975_v54, %v259_v3  ;;  %v3967_v54 = vld [vmem:[%s5519_s3 + $0x2e8] ss:$16 sps:$4 sm:$0xff]  }
 0x187   :  { %v1520_v30 = vmul.f32 1.442695, %v1512_v19  ;;  %v1524_v31 = vmul.f32 1.442695, %v1514_v52  ;;  %v1513_v32 = vsub.f32 0.0, %v1465_v21  ;;  %v1515_v33 = vsub.f32 0.0, %v1506_v23 }
 0x188   :  { %v1467_v34 = vpop.f32.mrf.mxu0  ;;  %v1508_v35 = vpop.f32.mrf.mxu1  ;;  %v3975_v26 = vld [vmem:[%s5519_s3 + $0x2cc] ss:$16 sps:$4 sm:$0xff]   ;;  %v4018_v1 = vld [vmem:[%s5519_s3 + $0x1c8] ss:$16 sps:$4 sm:$0xff]  }
 0x189   :  { %4133 = vpow2.f32 %v1520_v30  ;;  %v1522_v36 = vmul.f32 1.442695, %v1513_v32  ;;  %v1526_v37 = vmul.f32 1.442695, %v1515_v33  ;;  %2712 = vmatpush1.bf16.msra.mxu0 %v3938_v24  ;;  %v3972_v24 = vld [vmem:[%s5519_s3 + $0xcc] ss:$16 sps:$4 sm:$0xff]  }
 0x18a   :  { %4135 = vpow2.f32 %v1524_v31  ;;  %2713 = vmatprep.subr.bf16.mxu0 %v3946_v27  ;;  %v3970_v27 = vld [vmem:[%s5519_s3 + $0xc8] ss:$16 sps:$4 sm:$0xff]   ;;  %v3978_v29 = vld [vmem:[%s5519_s3 + $0xac] ss:$16 sps:$4 sm:$0xff]  }
 0x18b   :  { %4137 = vpow2.f32 %v1522_v36  ;;  %v3981_v30 = vld [vmem:[%s5519_s3 + $0x2ac] ss:$16 sps:$4 sm:$0xff]   ;;  %v3979_v31 = vld [vmem:[%s5519_s3 + $0x2a8] ss:$16 sps:$4 sm:$0xff]  }
 0x18c   :  { %4139 = vpow2.f32 %v1526_v37  ;;  %v3984_v32 = vld [vmem:[%s5519_s3 + $0x8c] ss:$16 sps:$4 sm:$0xff]   ;;  %v3982_v34 = vld [vmem:[%s5519_s3 + $0x88] ss:$16 sps:$4 sm:$0xff]  }
 0x18d   :  { %2714 = vmatpush1.bf16.msra.mxu0 %v3944_v38  ;;  %v3987_v33 = vld [vmem:[%s5519_s3 + $0x28c] ss:$16 sps:$4 sm:$0xff]   ;;  %v3985_v35 = vld [vmem:[%s5519_s3 + $0x288] ss:$16 sps:$4 sm:$0xff]  }
 0x18e   :  { %3518 = vmatprep.subr.msk.bf16.mxu0 %vm2604_vm0, %v3515_v39  ;;  %v3990_v36 = vld [vmem:[%s5519_s3 + $0x6c] ss:$16 sps:$4 sm:$0xff]   ;;  %v3988_v38 = vld [vmem:[%s5519_s3 + $0x68] ss:$16 sps:$4 sm:$0xff]  }
 0x18f   :  { %v3993_v37 = vld [vmem:[%s5519_s3 + $0x26c] ss:$16 sps:$4 sm:$0xff]   ;;  %v3991_v39 = vld [vmem:[%s5519_s3 + $0x268] ss:$16 sps:$4 sm:$0xff]  }
 0x190   :  { %v4021_v3 = vld [vmem:[%s5519_s3 + $0x3c8] ss:$16 sps:$4 sm:$0xff]  }
 0x191   :  { %2726 = vmatpush2.bf16.msra.mxu0 %v2606_v43  ;;  %v3999_v43 = vld [vmem:[%s5519_s3 + $0x24c] ss:$16 sps:$4 sm:$0xff]  }
 0x192   :  { %2727 = vmatprep.subr.bf16.mxu0 %v3957_v44  ;;  %v3994_v44 = vld [vmem:[%s5519_s3 + $0x48] ss:$16 sps:$4 sm:$0xff]  }
 0x195   :  { %2728 = vmatpush2.bf16.msra.mxu0 %v3955_v45  ;;  %v3997_v45 = vld [vmem:[%s5519_s3 + $0x248] ss:$16 sps:$4 sm:$0xff]  }
 0x196   :  { %v4134_v50 = vpop.eup %4133  ;;  %2729 = vmatprep.subr.bf16.mxu0 %v3963_v46  ;;  %v4002_v46 = vld [vmem:[%s5519_s3 + $0x2c] ss:$16 sps:$4 sm:$0xff]  }
 0x197   :  { %v4136_v55 = vpop.eup %4135  ;;  %v1530_v56 = vadd.f32 1.0, %v4134_v50  ;;  %v4000_v50 = vld [vmem:[%s5519_s3 + $0x28] ss:$16 sps:$4 sm:$0xff]  }
 0x198   :  { %v4138_v58 = vpop.eup %4137  ;;  %v1532_v47 = vadd.f32 1.0, %v4136_v55  ;;  %v4008_v55 = vld [vmem:[%s5519_s3 + $0xc] ss:$16 sps:$4 sm:$0xff]  }
 0x199   :  { %v4140_v53 = vpop.eup %4139  ;;  %4141 = vrcp.f32 %v1530_v56  ;;  %v1531_v60 = vadd.f32 1.0, %v4138_v58  ;;  %2730 = vmatpush2.bf16.msra.mxu0 %v3961_v49  ;;  %v4005_v49 = vld [vmem:[%s5519_s3 + $0x22c] ss:$16 sps:$4 sm:$0xff]   ;;  %v4006_v58 = vld [vmem:[%s5519_s3 + $0x8] ss:$16 sps:$4 sm:$0xff]  }
 0x19a   :  { %4143 = vrcp.f32 %v1532_v47  ;;  %v1533_v61 = vadd.f32 1.0, %v4140_v53  ;;  %2781 = vmatprep.subr.bf16.mxu0 %v3969_v51  ;;  %v4003_v51 = vld [vmem:[%s5519_s3 + $0x228] ss:$16 sps:$4 sm:$0xff]   ;;  %v4011_v56 = vld [vmem:[%s5519_s3 + $0x20c] ss:$16 sps:$4 sm:$0xff]  }
 0x19b   :  { %4145 = vrcp.f32 %v1531_v60  ;;  %v4009_v47 = vld [vmem:[%s5519_s3 + $0x208] ss:$16 sps:$4 sm:$0xff]   ;;  %v4014_v53 = vld [vmem:[%s5519_s3 + $0x1ec] ss:$16 sps:$4 sm:$0xff]  }
 0x19c   :  { %4147 = vrcp.f32 %v1533_v61  ;;  %v4017_v60 = vld [vmem:[%s5519_s3 + $0x3ec] ss:$16 sps:$4 sm:$0xff]   ;;  %v4012_v61 = vld [vmem:[%s5519_s3 + $0x1e8] ss:$16 sps:$4 sm:$0xff]  }
 0x1a6   :  { %v4142_v8 = vpop.eup %4141 }
 0x1a7   :  { %v4144_v10 = vpop.eup %4143  ;;  %v1542_v12 = vmul.f32 %v4142_v8, %v1340_v7  ;;  %v4029_v7 = vld [vmem:[%s5519_s3 + $0x3ac] ss:$16 sps:$4 sm:$0xff]   ;;  %v4024_v8 = vld [vmem:[%s5519_s3 + $0x1a8] ss:$16 sps:$4 sm:$0xff]  }
 0x1a8   :  { %v4146_v17 = vpop.eup %4145  ;;  %v1544_v13 = vmul.f32 %v4144_v10, %v1381_v9  ;;  %v4027_v9 = vld [vmem:[%s5519_s3 + $0x3a8] ss:$16 sps:$4 sm:$0xff]   ;;  %v4032_v10 = vld [vmem:[%s5519_s3 + $0x18c] ss:$16 sps:$4 sm:$0xff]  }
 0x1a9   :  { %v4148_v14 = vpop.eup %4147  ;;  %v1543_v15 = vmul.f32 %v4146_v17, %v1342_v11  ;;  %v1548_v18 = vmax.f32 %v1542_v12, 0.0  ;;  %v4035_v11 = vld [vmem:[%s5519_s3 + $0x38c] ss:$16 sps:$4 sm:$0xff]   ;;  %v4030_v12 = vld [vmem:[%s5519_s3 + $0x188] ss:$16 sps:$4 sm:$0xff]  }
 0x1aa   :  { %v1545_v16 = vmul.f32 %v4148_v14, %v1383_v5  ;;  %v1550_v52 = vmax.f32 %v1544_v13, 0.0  ;;  %v4033_v17 = vld [vmem:[%s5519_s3 + $0x388] ss:$16 sps:$4 sm:$0xff]   ;;  %v4038_v5 = vld [vmem:[%s5519_s3 + $0x16c] ss:$16 sps:$4 sm:$0xff]  }
 0x1ab   :  { %v1549_v19 = vmax.f32 %v1543_v15, 0.0  ;;  %v5171_v25 = vpack.c.bf16 %v1548_v18, %v1548_v18  ;;  %v4041_v13 = vld [vmem:[%s5519_s3 + $0x36c] ss:$16 sps:$4 sm:$0xff]   ;;  %v4036_v14 = vld [vmem:[%s5519_s3 + $0x168] ss:$16 sps:$4 sm:$0xff]  }
 0x1ac   :  { %v1551_v20 = vmax.f32 %v1545_v16, 0.0  ;;  %v5173_v23 = vpack.c.bf16 %v1550_v52, %v1550_v52  ;;  %v4039_v15 = vld [vmem:[%s5519_s3 + $0x368] ss:$16 sps:$4 sm:$0xff]   ;;  %v4044_v16 = vld [vmem:[%s5519_s3 + $0x14c] ss:$16 sps:$4 sm:$0xff]  }
 0x1ad   :  { %v1555_v21 = vpack.c.bf16 %v1549_v19, %v1549_v19  ;;  %v4047_v18 = vld [vmem:[%s5519_s3 + $0x34c] ss:$16 sps:$4 sm:$0xff]   ;;  %v4042_v19 = vld [vmem:[%s5519_s3 + $0x148] ss:$16 sps:$4 sm:$0xff]  }
 0x1ae   :  { %v5166_v22 = vpack.c.bf16 %v1551_v20, %v1551_v20  ;;  %v4045_v52 = vld [vmem:[%s5519_s3 + $0x348] ss:$16 sps:$4 sm:$0xff]   ;;  %v4050_v20 = vld [vmem:[%s5519_s3 + $0x12c] ss:$16 sps:$4 sm:$0xff]  }
 0x1af   :  { %2690 = vmatprep.mubr.bf16.mxu1 %v1555_v21 }
 0x1b0   :  { %3519 = vmatprep.mubr.msk.bf16.mxu0 %vm2600_vm1, %v5166_v22  ;;  %2691 = vmatmul.mubr.bf16.vlgmr.msra.gmra.mxu1 %v5171_v25 }
 0x1b1   :  { %2732 = vmatmul.mubr.bf16.vlgmr.msra.gmra.mxu0 %v5173_v23  ;;  %2741 = vmatpush1.bf16.msra.mxu1 %v3964_v48  ;;  %v4048_v48 = vld [vmem:[%s5519_s3 + $0x128] ss:$16 sps:$4 sm:$0xff]  }
 0x1b2   :  { %2782 = vmatpush1.bf16.msra.mxu0 %v3967_v54  ;;  %2772 = vmatprep.mubr.bf16.mxu1 %v5067_v57  ;;  %v3976_v57 = vld [vmem:[%s5519_s3 + $0xa8] ss:$16 sps:$4 sm:$0xff]  }
 0x1b3   :  { %2813 = vmatprep.mubr.bf16.mxu0 %v1555_v21  ;;  %2742 = vmatprep.subr.bf16.mxu1 %v3972_v24  ;;  %v4053_v21 = vld [vmem:[%s5519_s3 + $0x32c] ss:$16 sps:$4 sm:$0xff]   ;;  %v4051_v54 = vld [vmem:[%s5519_s3 + $0x328] ss:$16 sps:$4 sm:$0xff]  }
 0x1b4   :  { %2783 = vmatprep.subr.bf16.mxu0 %v3975_v26  ;;  %v4056_v24 = vld [vmem:[%s5519_s3 + $0x10c] ss:$16 sps:$4 sm:$0xff]  }
 0x1b5   :  { %2743 = vmatpush1.bf16.msra.mxu1 %v3970_v27  ;;  %v4059_v26 = vld [vmem:[%s5519_s3 + $0x30c] ss:$16 sps:$4 sm:$0xff]   ;;  %v4054_v27 = vld [vmem:[%s5519_s3 + $0x108] ss:$16 sps:$4 sm:$0xff]  }
 0x1b6   :  { %2784 = vmatpush1.bf16.msra.mxu0 %v3973_v28  ;;  %2744 = vmatprep.subr.bf16.mxu1 %v3978_v29  ;;  %v4057_v28 = vld [vmem:[%s5519_s3 + $0x308] ss:$16 sps:$4 sm:$0xff]   ;;  %v4062_v29 = vld [vmem:[%s5519_s3 + $0x4ec] ss:$16 sps:$4 sm:$0xff]  }
 0x1b7   :  { %2785 = vmatprep.subr.bf16.mxu0 %v3981_v30  ;;  %v4060_v30 = vld [vmem:[%s5519_s3 + $0x4e8] ss:$16 sps:$4 sm:$0xff]  }
 0x1b9   :  { %2745 = vmatpush1.bf16.msra.mxu1 %v3976_v57  ;;  %v4065_v57 = vld [vmem:[%s5519_s3 + $0x4cc] ss:$16 sps:$4 sm:$0xff]  }
 0x1ba   :  { %2786 = vmatpush1.bf16.msra.mxu0 %v3979_v31  ;;  %2746 = vmatprep.subr.bf16.mxu1 %v3984_v32  ;;  %v4063_v31 = vld [vmem:[%s5519_s3 + $0x4c8] ss:$16 sps:$4 sm:$0xff]   ;;  %v4068_v32 = vld [vmem:[%s5519_s3 + $0x4ac] ss:$16 sps:$4 sm:$0xff]  }
 0x1bb   :  { %2787 = vmatprep.subr.bf16.mxu0 %v3987_v33  ;;  %v4074_v33 = vld [vmem:[%s5519_s3 + $0x46c] ss:$16 sps:$4 sm:$0xff]  }
 0x1bd   :  { %2747 = vmatpush1.bf16.msra.mxu1 %v3982_v34  ;;  %v4072_v34 = vld [vmem:[%s5519_s3 + $0x468] ss:$16 sps:$4 sm:$0xff]  }
 0x1be   :  { %2788 = vmatpush1.bf16.msra.mxu0 %v3985_v35  ;;  %2748 = vmatprep.subr.bf16.mxu1 %v3990_v36  ;;  %v4077_v35 = vld [vmem:[%s5519_s3 + $0x44c] ss:$16 sps:$4 sm:$0xff]   ;;  %v4075_v36 = vld [vmem:[%s5519_s3 + $0x448] ss:$16 sps:$4 sm:$0xff]  }
 0x1bf   :  { %2789 = vmatprep.subr.bf16.mxu0 %v3993_v37  ;;  %v4080_v37 = vld [vmem:[%s5519_s3 + $0x42c] ss:$16 sps:$4 sm:$0xff]  }
 0x1c1   :  { %2749 = vmatpush1.bf16.msra.mxu1 %v3988_v38  ;;  %v4078_v38 = vld [vmem:[%s5519_s3 + $0x428] ss:$16 sps:$4 sm:$0xff]  }
 0x1c2   :  { %2790 = vmatpush1.bf16.msra.mxu0 %v3991_v39  ;;  %2750 = vmatprep.subr.bf16.mxu1 %v3996_v42  ;;  %v4083_v39 = vld [vmem:[%s5519_s3 + $0x40c] ss:$16 sps:$4 sm:$0xff]  }
 0x1c3   :  { %2791 = vmatprep.subr.bf16.mxu0 %v3999_v43  ;;  %v1727_v42 = vld [vmem:[%s5519_s3 + $0x548] sm:$0x33] }
 0x1c4   :  { %v4081_v43 = vld [vmem:[%s5519_s3 + $0x408] ss:$16 sps:$4 sm:$0xff]  }
 0x1c5   :  { %2751 = vmatpush1.bf16.msra.mxu1 %v3994_v44  ;;  %v3517_v44 = vcombine.high %v1727_v42, %v1727_v42 }
 0x1c6   :  { %2792 = vmatpush1.bf16.msra.mxu0 %v3997_v45  ;;  %2752 = vmatprep.subr.bf16.mxu1 %v4002_v46  ;;  %v3516_v45 = vcombine.low %v1727_v42, %v1727_v42 }
 0x1c7   :  { %2793 = vmatprep.subr.bf16.mxu0 %v4005_v49  ;;  %v4088_v49 = vld [vmem:[%s5519_s3 + $0x52c] ss:$16 sps:$4 sm:$0xff]  }
 0x1c8   :  { %v2612_v46 = vsel %vm2604_vm0, %v3516_v45, 0 }
 0x1c9   :  { %2753 = vmatpush1.bf16.msra.mxu1 %v4000_v50  ;;  %v4086_v50 = vld [vmem:[%s5519_s3 + $0x528] ss:$16 sps:$4 sm:$0xff]  }
 0x1ca   :  { %2794 = vmatpush1.bf16.msra.mxu0 %v4003_v51  ;;  %2754 = vmatprep.subr.bf16.mxu1 %v4008_v55  ;;  %v4091_v51 = vld [vmem:[%s5519_s3 + $0x50c] ss:$16 sps:$4 sm:$0xff]   ;;  %v4089_v55 = vld [vmem:[%s5519_s3 + $0x508] ss:$16 sps:$4 sm:$0xff]  }
 0x1cb   :  { %2795 = vmatprep.subr.bf16.mxu0 %v4011_v56 }
 0x1cd   :  { %2755 = vmatpush1.bf16.msra.mxu1 %v4006_v58 }
 0x1ce   :  { %2796 = vmatpush1.bf16.msra.mxu0 %v4009_v47  ;;  %2756 = vmatprep.subr.bf16.mxu1 %v4014_v53 }
 0x1cf   :  { %2797 = vmatprep.subr.bf16.mxu0 %v4017_v60  ;;  %v4094_v60 = vld [vmem:[%s5521_s5 + $0x74] ss:$8 sps:$4 sm:$0xff]  }
 0x1d1   :  { %2757 = vmatpush2.bf16.msra.mxu1 %v4012_v61  ;;  %v4092_v61 = vld [vmem:[%s5521_s5 + $0x70] ss:$8 sps:$4 sm:$0xff]  }
 0x1d2   :  { %2798 = vmatpush2.bf16.msra.mxu0 %v4015_v62  ;;  %2758 = vmatprep.subr.bf16.mxu1 %v4020_v63  ;;  %v4097_v62 = vld [vmem:[%s5521_s5 + $0x64] ss:$8 sps:$4 sm:$0xff]   ;;  %v4095_v63 = vld [vmem:[%s5521_s5 + $0x60] ss:$8 sps:$4 sm:$0xff]  }
 0x1d3   :  { %2799 = vmatprep.subr.bf16.mxu0 %v4023_v0 }
 0x1d5   :  { %2759 = vmatpush2.bf16.msra.mxu1 %v4018_v1  ;;  %v4100_v1 = vld [vmem:[%s5521_s5 + $0x54] ss:$8 sps:$4 sm:$0xff]  }
 0x1d6   :  { %2800 = vmatpush2.bf16.msra.mxu0 %v4021_v3  ;;  %2760 = vmatprep.subr.bf16.mxu1 %v4026_v4  ;;  %v4098_v3 = vld [vmem:[%s5521_s5 + $0x50] ss:$8 sps:$4 sm:$0xff]  }
 0x1d7   :  { %2801 = vmatprep.subr.bf16.mxu0 %v4029_v7 }
 0x1d9   :  { %2761 = vmatpush2.bf16.msra.mxu1 %v4024_v8  ;;  %v4103_v8 = vld [vmem:[%s5521_s5 + $0x44] ss:$8 sps:$4 sm:$0xff]  }
 0x1da   :  { %2802 = vmatpush2.bf16.msra.mxu0 %v4027_v9  ;;  %2762 = vmatprep.subr.bf16.mxu1 %v4032_v10  ;;  %v4101_v10 = vld [vmem:[%s5521_s5 + $0x40] ss:$8 sps:$4 sm:$0xff]  }
 0x1db   :  { %2803 = vmatprep.subr.bf16.mxu0 %v4035_v11 }
 0x1dd   :  { %2763 = vmatpush2.bf16.msra.mxu1 %v4030_v12 }
 0x1de   :  { %2804 = vmatpush2.bf16.msra.mxu0 %v4033_v17  ;;  %2764 = vmatprep.subr.bf16.mxu1 %v4038_v5 }
 0x1df   :  { %2805 = vmatprep.subr.bf16.mxu0 %v4041_v13 }
 0x1e1   :  { %2765 = vmatpush2.bf16.msra.mxu1 %v4036_v14 }
 0x1e2   :  { %2806 = vmatpush2.bf16.msra.mxu0 %v4039_v15  ;;  %2766 = vmatprep.subr.bf16.mxu1 %v4044_v16  ;;  %v4106_v16 = vld [vmem:[%s5521_s5 + $0x34] ss:$8 sps:$4 sm:$0xff]  }
 0x1e3   :  { %2807 = vmatprep.subr.bf16.mxu0 %v4047_v18 }
 0x1e5   :  { %2767 = vmatpush2.bf16.msra.mxu1 %v4042_v19  ;;  %v4104_v19 = vld [vmem:[%s5521_s5 + $0x30] ss:$8 sps:$4 sm:$0xff]  }
 0x1e6   :  { %2808 = vmatpush2.bf16.msra.mxu0 %v4045_v52  ;;  %2768 = vmatprep.subr.bf16.mxu1 %v4050_v20 }
 0x1e7   :  { %2809 = vmatprep.subr.bf16.mxu0 %v4053_v21  ;;  %v4109_v21 = vld [vmem:[%s5521_s5 + $0x24] ss:$8 sps:$4 sm:$0xff]  }
 0x1e9   :  { %2769 = vmatpush2.bf16.msra.mxu1 %v4048_v48 }
 0x1ea   :  { %2810 = vmatpush2.bf16.msra.mxu0 %v4051_v54  ;;  %2770 = vmatprep.subr.bf16.mxu1 %v4056_v24  ;;  %v4107_v54 = vld [vmem:[%s5521_s5 + $0x20] ss:$8 sps:$4 sm:$0xff]  }
 0x1eb   :  { %2811 = vmatprep.subr.bf16.mxu0 %v4059_v26  ;;  %v4112_v26 = vld [vmem:[%s5521_s5 + $0x14] ss:$8 sps:$4 sm:$0xff]  }
 0x1ed   :  { %2771 = vmatpush2.bf16.msra.mxu1 %v4054_v27  ;;  %v4110_v27 = vld [vmem:[%s5521_s5 + $0x10] ss:$8 sps:$4 sm:$0xff]  }
 0x1ee   :  { %2812 = vmatpush2.bf16.msra.mxu0 %v4057_v28  ;;  %2822 = vmatprep.subr.bf16.mxu1 %v4062_v29  ;;  %v4115_v28 = vld [vmem:[%s5521_s5 + $0x4] ss:$8 sps:$4 sm:$0xff]   ;;  %v4113_v29 = vld [vmem:[%s5521_s5] ss:$8 sps:$4 sm:$0xff]  }
 0x1ef   :  { %3001 = vmatprep.subr.bf16.mxu0 %v4094_v60 }
 0x1f0   :  { %2773 = vmatmul.mubr.bf16.vlgmr.msra.gmra.mxu1 %v5072_v59  ;;  %v4066_v59 = vld [vmem:[%s5519_s3 + $0x4a8] ss:$16 sps:$4 sm:$0xff]  }
 0x1f1   :  { %2814 = vmatmul.mubr.bf16.vlgmr.msra.gmra.mxu0 %v5171_v25  ;;  %2823 = vmatpush1.bf16.msra.mxu1 %v4060_v30  ;;  %v4071_v25 = vld [vmem:[%s5519_s3 + $0x48c] ss:$16 sps:$4 sm:$0xff]  }
 0x1f2   :  { %3521 = vmatprep.mubr.msk.bf16.mxu1 %vm2600_vm1, %v5166_v22  ;;  %2824 = vmatprep.subr.bf16.mxu1 %v4065_v57  ;;  %v4069_v22 = vld [vmem:[%s5519_s3 + $0x488] ss:$16 sps:$4 sm:$0xff]   ;;  %v4118_v30 = vld [vmem:[%s5521_s5 + $0x84] ss:$8 sps:$4 sm:$0xff]  }
 0x1f3   :  { %3002 = vmatpush1.bf16.msra.mxu0 %v4092_v61  ;;  %v4116_v57 = vld [vmem:[%s5521_s5 + $0x80] ss:$8 sps:$4 sm:$0xff]  }
 0x1f4   :  { %3003 = vmatprep.subr.bf16.mxu0 %v4097_v62 }
 0x1f5   :  { %2825 = vmatpush1.bf16.msra.mxu1 %v4063_v31 }
 0x1f6   :  { %2826 = vmatprep.subr.bf16.mxu1 %v4068_v32 }
 0x1f7   :  { %3004 = vmatpush1.bf16.msra.mxu0 %v4095_v63 }
 0x1f8   :  { %3005 = vmatprep.subr.bf16.mxu0 %v4100_v1 }
 0x1f9   :  { %2827 = vmatpush1.bf16.msra.mxu1 %v4066_v59 }
 0x1fa   :  { %2828 = vmatprep.subr.bf16.mxu1 %v4071_v25 }
 0x1fb   :  { %3006 = vmatpush1.bf16.msra.mxu0 %v4098_v3  ;;  %v4119_v3 = vld [vmem:[%s5523_s7 + $0x10] ss:$8 sps:$4 sm:$0xff]  }
 0x1fc   :  { %3007 = vmatprep.subr.bf16.mxu0 %v4103_v8  ;;  %v4187_v8 = vmov 0  }
 0x1fd   :  { %2829 = vmatpush1.bf16.msra.mxu1 %v4069_v22 }
 0x1fe   :  { %2830 = vmatprep.subr.bf16.mxu1 %v4074_v33 }
 0x1ff   :  { %3008 = vmatpush1.bf16.msra.mxu0 %v4101_v10  ;;  %v2895_v10 = vld [vmem:[%s5522_s6] sm:$0x3] }
 0x200   :  { %3009 = vmatprep.subr.bf16.mxu0 %v4106_v16 }
 0x201   :  { %2831 = vmatpush1.bf16.msra.mxu1 %v4072_v34 }
 0x202   :  { %2832 = vmatprep.subr.bf16.mxu1 %v4077_v35 }
 0x203   :  { %3010 = vmatpush1.bf16.msra.mxu0 %v4104_v19 }
 0x204   :  { %3011 = vmatprep.subr.bf16.mxu0 %v4109_v21 }
 0x205   :  { %2833 = vmatpush1.bf16.msra.mxu1 %v4075_v36 }
 0x206   :  { %2834 = vmatprep.subr.bf16.mxu1 %v4080_v37 }
 0x207   :  { %3012 = vmatpush1.bf16.msra.mxu0 %v4107_v54 }
 0x208   :  { %3013 = vmatprep.subr.bf16.mxu0 %v4112_v26  ;;  %v3054_v26 = vld [vmem:[%s5524_s8] sm:$0x3]  ;;  %s4165_s8 = scalar_lea.vmem %s3146_s12, 32 }
 0x209   :  { %2835 = vmatpush1.bf16.msra.mxu1 %v4078_v38  ;;  %p4166_p0 = scmp.ne.s32.totalorder %s3146_s12, %s4165_s8  ;;  %p4171_p2 = scmp.lt.s32.totalorder %s4165_s8, %s4165_s8 }
 0x20a   :  { %2836 = vmatprep.subr.bf16.mxu1 %v4083_v39 }
 0x20b   :  { %3014 = vmatpush1.bf16.msra.mxu0 %v4110_v27  ;;  %v3063_v27 = vrot.slane %v3054_v26, %v5059_v41  ;;  %p4172_p3 = por %p4171_p2, %p4170_p1 }
 0x20c   :  { %3015 = vmatprep.subr.bf16.mxu0 %v4115_v28 }
 0x20d   :  { %2837 = vmatpush1.bf16.msra.mxu1 %v4081_v43  ;;  %p4173_p4 = pnand %p4172_p3, %p4166_p0 }
 0x20e   :  { %3520 = vmatprep.subr.msk.bf16.mxu1 %vm2604_vm0, %v3517_v44 }
 0x20f   :  { %3016 = vmatpush1.bf16.msra.mxu0 %v4113_v29 }
 0x210   :  { %3031 = vmatprep.subr.bf16.mxu0 %v4118_v30 }
 0x211   :  { %2849 = vmatpush2.bf16.msra.mxu1 %v2612_v46 }
 0x212   :  { %2850 = vmatprep.subr.bf16.mxu1 %v4088_v49 }
 0x213   :  { %3032 = vmatpush2.bf16.msra.mxu0 %v4116_v57 }
 0x215   :  { %2851 = vmatpush2.bf16.msra.mxu1 %v4086_v50 }
 0x216   :  { %2852 = vmatprep.subr.bf16.mxu1 %v4091_v51 }
 0x219   :  { %2853 = vmatpush2.bf16.msra.mxu1 %v4089_v55 }
 0x21c   :  { %2855 = vmatmul.mubr.bf16.vlgmr.msra.gmra.mxu1 %v5173_v23  ;;  %v1728_v23 = vld [vmem:[%s5520_s4] sm:$0xf] }
 0x21d   :  { %v1733_v0 = vrot.slane %v1728_v23, %v5056_v40  ;;  %v1737_v4 = vrot.slane %v1728_v23, %v5059_v41  ;;  %v1741_v36 = vrot.slane %v1728_v23, %v5101_v2  ;;  %v1745_v37 = vrot.slane %v1728_v23, %v5110_v6  ;;  %3122 = vmatprep.mubr.bf16.mxu1 %v4187_v8 }
 0x230   :  { %v2651_v56 = vpop.f32.mrf.mxu0 }
 0x231   :  { %v2652_v7 = vadd.f32 %v2651_v56, %v1733_v0 }
 0x232   :  { %v2653_v58 = vpop.f32.mrf.mxu0 }
 0x233   :  { %v2654_v11 = vadd.f32 %v2653_v58, %v1737_v4  ;;  %v4121_v4 = vld [vmem:[%s5523_s7 + $0x14] ss:$8 sps:$4 sm:$0xff]  }
 0x234   :  { %v2655_v47 = vpop.f32.mrf.mxu0  ;;  %3102 = vmatprep.subr.bf16.mxu1 %v4121_v4 }
 0x235   :  { %3103 = vmatpush1.bf16.msra.mxu1 %v4119_v3 }
 0x236   :  { %v2656_v53 = vpop.f32.mrf.mxu0 }
 0x270   :  { %v2692_v9 = vpop.f32.mrf.mxu1 }
 0x271   :  { %v2693_v12 = vadd.f32 %v2692_v9, %v2652_v7  ;;  %v2733_v17 = vpop.f32.mrf.mxu0  ;;  %v4124_v7 = vld [vmem:[%s5523_s7 + $0x4] ss:$8 sps:$4 sm:$0xff]   ;;  %v4122_v9 = vld [vmem:[%s5523_s7] ss:$8 sps:$4 sm:$0xff]  }
 0x272   :  { %v2694_v5 = vpop.f32.mrf.mxu1  ;;  %3104 = vmatprep.subr.bf16.mxu1 %v4124_v7 }
 0x273   :  { %v2734_v13 = vadd.f32 %v2733_v17, %v2693_v12  ;;  %v2695_v14 = vadd.f32 %v2694_v5, %v2654_v11  ;;  %v2735_v15 = vpop.f32.mrf.mxu0  ;;  %3105 = vmatpush1.bf16.msra.mxu1 %v4122_v9  ;;  %v2904_v11 = vrot.slane %v2895_v10, %v5059_v41 }
 0x274   :  { %v2696_v18 = vpop.f32.mrf.mxu1 }
 0x275   :  { %v2736_v52 = vadd.f32 %v2735_v15, %v2695_v14  ;;  %v2737_v20 = vpop.f32.mrf.mxu0 }
 0x276   :  { %v2697_v48 = vpop.f32.mrf.mxu1 }
 0x277   :  { %v2738_v24 = vpop.f32.mrf.mxu0 }
 0x2b0   :  { %v2774_v31 = vpop.f32.mrf.mxu1 }
 0x2b1   :  { %v2815_v32 = vpop.f32.mrf.mxu0  ;;  %v2775_v38 = vadd.f32 %v2774_v31, %v1741_v36 }
 0x2b2   :  { %v2776_v59 = vpop.f32.mrf.mxu1 }
 0x2b3   :  { %v2817_v25 = vpop.f32.mrf.mxu0  ;;  %v2777_v39 = vadd.f32 %v2776_v59, %v1745_v37  ;;  %v2816_v42 = vadd.f32 %v2815_v32, %v2775_v38 }
 0x2b4   :  { %v2778_v22 = vpop.f32.mrf.mxu1 }
 0x2b5   :  { %v2819_v33 = vpop.f32.mrf.mxu0  ;;  %v2818_v44 = vadd.f32 %v2817_v25, %v2777_v39 }
 0x2b6   :  { %v2779_v34 = vpop.f32.mrf.mxu1  ;;  %v3059_v33 = vrot.slane %v3054_v26, %v5056_v40 }
 0x2b7   :  { %v2820_v35 = vpop.f32.mrf.mxu0 }
 0x2dc   :  { %v2856_v43 = vpop.f32.mrf.mxu1 }
 0x2dd   :  { %v2857_v45 = vadd.f32 %v2856_v43, %v2816_v42 }
 0x2de   :  { %v2858_v46 = vpop.f32.mrf.mxu1 }
 0x2df   :  { %v2863_v49 = vsub.f32 0.0, %v2857_v45  ;;  %v2859_v50 = vadd.f32 %v2858_v46, %v2818_v44 }
 0x2e0   :  { %v2860_v51 = vpop.f32.mrf.mxu1 }
 0x2e1   :  { %v2865_v55 = vmul.f32 1.442695, %v2863_v49  ;;  %v2864_v56 = vsub.f32 0.0, %v2859_v50 }
 0x2e2   :  { %v2861_v58 = vpop.f32.mrf.mxu1 }
 0x2e3   :  { %4149 = vpow2.f32 %v2865_v55  ;;  %v2867_v47 = vmul.f32 1.442695, %v2864_v56 }
 0x2e5   :  { %4151 = vpow2.f32 %v2867_v47 }
 0x2f0   :  { %v4150_v53 = vpop.eup %4149 }
 0x2f1   :  { %v2869_v2 = vadd.f32 1.0, %v4150_v53 }
 0x2f2   :  { %v4152_v60 = vpop.eup %4151 }
 0x2f3   :  { %4153 = vrcp.f32 %v2869_v2  ;;  %v2870_v6 = vadd.f32 1.0, %v4152_v60 }
 0x2f5   :  { %4155 = vrcp.f32 %v2870_v6 }
 0x300   :  { %v4154_v61 = vpop.eup %4153 }
 0x301   :  { %v2873_v23 = vmul.f32 %v4154_v61, %v2734_v13 }
 0x302   :  { %v4156_v62 = vpop.eup %4155 }
 0x303   :  { %v2874_v63 = vmul.f32 %v4156_v62, %v2736_v52  ;;  %v2875_v1 = vpack.c.bf16 %v2873_v23, %v2873_v23  ;;  %v2900_v52 = vrot.slane %v2895_v10, %v5056_v40 }
 0x305   :  { %v2876_v0 = vpack.c.bf16 %v2874_v63, %v2874_v63 }
 0x307   :  { %3540 = vmatprep.mubr.msk.bf16.mxu0 %vm2997_vm2, %v2876_v0 }
 0x308   :  { %3034 = vmatmul.mubr.bf16.vlgmr.msra.gmra.mxu0 %v2875_v1 }
 0x3c8   :  { %v3035_v12 = vpop.f32.mrf.mxu0 }
 0x3c9   :  { %v3036_v20 = vadd.f32 %v3035_v12, %v2900_v52 }
 0x3ca   :  { %v3037_v17 = vpop.f32.mrf.mxu0 }
 0x3cb   :  { %v3038_v5 = vadd.f32 %v3037_v17, %v2904_v11 }
 0x3cc   :  { %v3039_v13 = vpop.f32.mrf.mxu0 }
 0x3cd   :  { %v3042_v14 = vsub.f32 0.0, %v3038_v5 }
 0x3ce   :  { %v3040_v15 = vpop.f32.mrf.mxu0 }
 0x3cf   :  { %v3043_v16 = vmul.f32 1.442695, %v3042_v14 }
 0x3d1   :  { %4157 = vpow2.f32 %v3043_v16 }
 0x3de   :  { %v4158_v18 = vpop.eup %4157 }
 0x3df   :  { %v3045_v19 = vadd.f32 1.0, %v4158_v18 }
 0x3e1   :  { %4159 = vrcp.f32 %v3045_v19 }
 0x3ee   :  { %v4160_v21 = vpop.eup %4159 }
 0x3ef   :  { %v3047_v48 = vmul.f32 %v4160_v21, %v3036_v20 }
 0x3f1   :  { %v3048_v54 = vmax.f32 %v3047_v48, 0.0 }
 0x3f3   :  { %v3049_v24 = vpack.c.bf16 %v3048_v54, %v3048_v54 }
 0x3f5   :  { %3545 = vmatmul.mubr.msk.bf16.vlgmr.msra.gmra.mxu1 %vm3086_vm3, %v3049_v24 }
 0x4b5   :  { %v3124_v28 = vpop.f32.mrf.mxu1 }
 0x4b6   :  { %v3125_v34 = vadd.f32 %v3124_v28, %v3059_v33 }
 0x4b7   :  { %v3126_v29 = vpop.f32.mrf.mxu1 }
 0x4b8   :  { %v3127_v30 = vadd.f32 %v3126_v29, %v3063_v27 }
 0x4b9   :  { %v3128_v57 = vpop.f32.mrf.mxu1 }
 0x4ba   :  { %v3131_v31 = vsub.f32 0.0, %v3127_v30 }
 0x4bb   :  { %v3129_v32 = vpop.f32.mrf.mxu1 }
 0x4bc   :  { %v3132_v59 = vmul.f32 1.442695, %v3131_v31 }
 0x4be   :  { %4161 = vpow2.f32 %v3132_v59 }
 0x4cb   :  { %v4162_v25 = vpop.eup %4161 }
 0x4cc   :  { %v3134_v22 = vadd.f32 1.0, %v4162_v25 }
 0x4ce   :  { %4163 = vrcp.f32 %v3134_v22 }
 0x4db   :  { %v4164_v35 = vpop.eup %4163 }
 0x4dc   :  { %v3136_v36 = vmul.f32 %v4164_v35, %v3125_v34 }
 0x4de   :  { %3138 = vst.msk [vmem:[#allocation2] sm:$0x3] %vm3137_vm4, %v3136_v36 }
 0x4df   :  { %4176 = shalt.err (!%p4173_p4)
}
 0x4e0   :  { %3148 = dma.vmem_to_hbm [thread:$0]  %s3146_s12, 32, %s5525_s9, [#allocation3]  }
 0x4e1   :  { %4185 = dma.done.wait [#allocation3], 32  }
 0x4e2   :  { %4186 = vsyncadd [#allocation3], 4294967264 }
 0x4e3   :  { %3152 = vsyncpa [#allocation3], 1 }

</bundles_post_ra>
